<compile_context>
chip_gen: v7x
topology: tpu7x:2x2x1
jax: 0.10.0
libtpu: 0.0.40
codegen_flags: <defaults>
</compile_context>

<pallas_src>
import functools

import jax
import jax.numpy as jnp
from jax.experimental import pallas as pl
from jax.experimental.pallas import tpu as pltpu


_COMPILER_PARAMS = pltpu.CompilerParams(
    # disjoint output tiles along both grid axes -> shard across TensorCores
    dimension_semantics=("parallel", "parallel"),
    vmem_limit_bytes=32 * 1024 * 1024,
)


# ----------------------------- Pallas kernels ------------------------------ #

def _conv3x3_acc(xm_ref, xt_ref, xb_ref, w_ref, *, TH, W):
    """f32 (TH*W, Cout) result of a 3x3 'SAME' conv over one row tile."""
    Cin = xm_ref.shape[-1]
    Cout = w_ref.shape[-1]
    hi = pl.program_id(1)
    nh = pl.num_programs(1)

    # Main tile + one-row halos.  Halo DMA row indices are clamped at the image
    # border by the BlockSpec index_map; mask them to zero here (the zero rows /
    # columns supply the implicit conv padding).
    top_ok = (hi > 0).astype(jnp.float32)
    bot_ok = (hi < nh - 1).astype(jnp.float32)
    xm = xm_ref[0].astype(jnp.float32)                         # (TH, W, Cin)
    xt = xt_ref[0].astype(jnp.float32) * top_ok                # (1,  W, Cin)
    xb = xb_ref[0].astype(jnp.float32) * bot_ok                # (1,  W, Cin)

    # Zero-padded window, built fully in-register (f32 -> unpacked sublane path).
    x_ext = jnp.concatenate([xt, xm, xb], axis=0)              # (TH+2, W, Cin)
    zcol = jnp.zeros((TH + 2, 1, Cin), jnp.float32)
    xpad = jnp.concatenate([zcol, x_ext, zcol], axis=1)        # (TH+2, W+2, Cin)

    acc = jnp.zeros((TH * W, Cout), jnp.float32)
    for ky in range(3):
        for kx in range(3):
            patch = xpad[ky:ky + TH, kx:kx + W, :]             # (TH, W, Cin)
            patch = patch.reshape(TH * W, Cin).astype(jnp.bfloat16)
            acc = acc + jnp.dot(patch, w_ref[ky * 3 + kx],
                                preferred_element_type=jnp.float32)
    return acc


def _conv_bn_relu_kernel(xm_ref, xt_ref, xb_ref, w_ref, sc_ref, sh_ref,
                         out_ref, *, TH, W):
    Cout = w_ref.shape[-1]
    acc = _conv3x3_acc(xm_ref, xt_ref, xb_ref, w_ref, TH=TH, W=W)
    acc = acc * sc_ref[...] + sh_ref[...]      # eval-mode BN folded affine
    acc = jnp.maximum(acc, 0.0)                # ReLU
    out_ref[0] = acc.reshape(TH, W, Cout).astype(out_ref.dtype)


def _conv_residual_kernel(xm_ref, xt_ref, xb_ref, w_ref, xres_ref,
                          out_ref, *, TH, W):
    Cout = w_ref.shape[-1]
    acc = _conv3x3_acc(xm_ref, xt_ref, xb_ref, w_ref, TH=TH, W=W)
    # TODO(synk): Cout == image channels (e.g. 4) leaves most store lanes masked;
    # a lane-dense (TH, W*Cout) output layout needs a cross-lane reshape, skipped
    # here for lowering portability.
    out_ref[0] = (xres_ref[0] - acc.reshape(TH, W, Cout)).astype(out_ref.dtype)


# ------------------------------ wrappers ----------------------------------- #

def _pick_tile_rows(H, W, Cin, Cout, budget_bytes=4 * 1024 * 1024):
    """Largest row-tile TH that divides H and keeps the working set small enough
    to fit comfortably in VMEM on every TPU generation."""
    def tile_bytes(th):
        window = (th + 2) * (W + 2) * Cin * 4                 # f32 padded window
        accum = th * W * Cout * 4                             # f32 accumulator
        io = 2 * (th * W * (Cin + Cout) * 2 + 2 * W * Cin * 2)  # dbl-buffered bf16 blocks
        return window + accum + io
    for th in (256, 128, 64, 32, 16, 8):
        if H % th == 0 and tile_bytes(th) <= budget_bytes:
            return th
    return H  # tiny / odd H: a single tile over the full height


def _common_specs(H, W, Cin, Cout, TH):
    x_spec = pl.BlockSpec((1, TH, W, Cin), lambda n, h: (n, h, 0, 0))
    # 1-row halos; block size 1 along H so the block index IS the row index.
    top_spec = pl.BlockSpec(
        (1, 1, W, Cin), lambda n, h: (n, jnp.maximum(h * TH - 1, 0), 0, 0))
    bot_spec = pl.BlockSpec(
        (1, 1, W, Cin), lambda n, h: (n, jnp.minimum((h + 1) * TH, H - 1), 0, 0))
    w_spec = pl.BlockSpec((9, Cin, Cout), lambda n, h: (0, 0, 0))
    out_spec = pl.BlockSpec((1, TH, W, Cout), lambda n, h: (n, h, 0, 0))
    return x_spec, top_spec, bot_spec, w_spec, out_spec


def conv3x3_bn_relu(x, w9, scale, shift):
    """x: (N,H,W,Cin) bf16; w9: (9,Cin,Cout) bf16; scale/shift: (1,Cout) f32."""
    N, H, W, Cin = x.shape
    Cout = w9.shape[-1]
    TH = _pick_tile_rows(H, W, Cin, Cout)
    x_spec, top_spec, bot_spec, w_spec, out_spec = _common_specs(H, W, Cin, Cout, TH)
    kernel = functools.partial(_conv_bn_relu_kernel, TH=TH, W=W)
    return pl.pallas_call(
        kernel,
        out_shape=jax.ShapeDtypeStruct((N, H, W, Cout), jnp.bfloat16),
        grid_spec=pltpu.PrefetchScalarGridSpec(
            num_scalar_prefetch=0,
            grid=(N, H // TH),
            in_specs=[x_spec, top_spec, bot_spec, w_spec,
                      pl.BlockSpec((1, Cout), lambda n, h: (0, 0)),
                      pl.BlockSpec((1, Cout), lambda n, h: (0, 0))],
            out_specs=out_spec,
        ),
        compiler_params=_COMPILER_PARAMS,
    )(x, x, x, w9, scale, shift)


def conv3x3_residual(h_act, w9, x_res):
    """Final conv fused with the residual: out = x_res - conv(h_act)."""
    N, H, W, Cin = h_act.shape
    Cout = w9.shape[-1]
    TH = _pick_tile_rows(H, W, Cin, Cout)
    x_spec, top_spec, bot_spec, w_spec, out_spec = _common_specs(H, W, Cin, Cout, TH)
    res_spec = pl.BlockSpec((1, TH, W, Cout), lambda n, h: (n, h, 0, 0))
    kernel = functools.partial(_conv_residual_kernel, TH=TH, W=W)
    return pl.pallas_call(
        kernel,
        out_shape=jax.ShapeDtypeStruct((N, H, W, Cout), jnp.float32),
        grid_spec=pltpu.PrefetchScalarGridSpec(
            num_scalar_prefetch=0,
            grid=(N, H // TH),
            in_specs=[x_spec, top_spec, bot_spec, w_spec, res_spec],
            out_specs=out_spec,
        ),
        compiler_params=_COMPILER_PARAMS,
    )(h_act, h_act, h_act, w9, x_res)


# --------------------------- parameter construction ------------------------ #

def _spectral_normalize(w, sigma, n_iter=30):
    """Scale the HWIO weight so the unfolded matrix's spectral norm equals sigma
    (power iteration at init time; approximates conv_spectral_norm as a
    parametrization, not part of the forward hot path)."""
    if sigma <= 0.0:
        return w
    cout = w.shape[-1]
    a = w.reshape(-1, cout)
    v = jnp.ones((cout,), w.dtype) / jnp.sqrt(jnp.asarray(cout, w.dtype))
    sv = jnp.asarray(1.0, w.dtype)
    for _ in range(n_iter):
        u = a @ v
        u = u / (jnp.linalg.norm(u) + 1e-12)
        v = a.T @ u
        sv = jnp.linalg.norm(v)
        v = v / (sv + 1e-12)
    return w * (sigma / jnp.maximum(sv, 1e-12))


def init_sndncnn_params(key, channels, num_of_layers=17, lip=1.0, no_bn=False,
                        features=64):
    if lip > 0.0:
        sigmas = [lip ** (1.0 / num_of_layers)] * num_of_layers
    else:
        sigmas = [0.0] * num_of_layers

    params = {"convs": [], "bn_scale": [], "bn_shift": []}
    keys = jax.random.split(key, 5 * num_of_layers)

    def conv_w(k, cin, cout, sigma):
        fan_in = 9 * cin
        w = jax.random.normal(k, (3, 3, cin, cout), jnp.float32) / jnp.sqrt(fan_in)
        return _spectral_normalize(w, sigma)

    eps = 1e-5
    # layer 0: conv(channels -> features), ReLU (no BN)
    params["convs"].append(conv_w(keys[0], channels, features, sigmas[0]))
    params["bn_scale"].append(jnp.ones((features,), jnp.float32))
    params["bn_shift"].append(jnp.zeros((features,), jnp.float32))

    # middle layers: conv(features -> features), [BN], ReLU
    for i in range(1, num_of_layers - 1):
        k = keys[5 * i:5 * (i + 1)]
        params["convs"].append(conv_w(k[0], features, features, sigmas[i]))
        if no_bn:
            sc = jnp.ones((features,), jnp.float32)
            sh = jnp.zeros((features,), jnp.float32)
        else:
            # eval-mode BatchNorm2d folded into a per-channel affine.
            # TODO(synk): training-mode BN (batch statistics) is not implemented.
            gamma = 1.0 + 0.1 * jax.random.normal(k[1], (features,))
            beta = 0.1 * jax.random.normal(k[2], (features,))
            mean = 0.05 * jax.random.normal(k[3], (features,))
            var = 1.0 + 0.1 * jax.random.uniform(k[4], (features,))
            sc = gamma / jnp.sqrt(var + eps)
            sh = beta - mean * sc
        params["bn_scale"].append(sc.astype(jnp.float32))
        params["bn_shift"].append(sh.astype(jnp.float32))

    # last layer: conv(features -> channels), no BN, no ReLU
    params["convs"].append(
        conv_w(keys[5 * (num_of_layers - 1)], features, channels, sigmas[-1]))
    return params


# ------------------------------- forward ----------------------------------- #

def sndncnn_forward(x_nchw, params):
    """Matches SNDnCNN.forward: x - dncnn(x).  Input/output NCHW, f32."""
    x = jnp.transpose(x_nchw, (0, 2, 3, 1)).astype(jnp.float32)   # -> NHWC f32
    h = x.astype(jnp.bfloat16)
    n_convs = len(params["convs"])
    for i in range(n_convs - 1):
        w = params["convs"][i]
        cin, cout = w.shape[2], w.shape[3]
        w9 = w.reshape(9, cin, cout).astype(jnp.bfloat16)
        sc = params["bn_scale"][i].reshape(1, -1).astype(jnp.float32)
        sh = params["bn_shift"][i].reshape(1, -1).astype(jnp.float32)
        h = conv3x3_bn_relu(h, w9, sc, sh)
    w = params["convs"][-1]
    cin, cout = w.shape[2], w.shape[3]
    w9 = w.reshape(9, cin, cout).astype(jnp.bfloat16)
    out = conv3x3_residual(h, w9, x)
    return jnp.transpose(out, (0, 3, 1, 2))                       # back to NCHW


def _reference_forward(x_nchw, params):
    """Pure-XLA reference with the same bf16 rounding as the Pallas path."""
    x = jnp.transpose(x_nchw, (0, 2, 3, 1)).astype(jnp.float32)
    h = x.astype(jnp.bfloat16)
    dn = ("NHWC", "HWIO", "NHWC")
    n_convs = len(params["convs"])
    for i in range(n_convs - 1):
        w = params["convs"][i].astype(jnp.bfloat16)
        y = jax.lax.conv_general_dilated(h, w, (1, 1), "SAME",
                                         dimension_numbers=dn,
                                         preferred_element_type=jnp.float32)
        y = y * params["bn_scale"][i] + params["bn_shift"][i]
        h = jnp.maximum(y, 0.0).astype(jnp.bfloat16)
    w = params["convs"][-1].astype(jnp.bfloat16)
    y = jax.lax.conv_general_dilated(h, w, (1, 1), "SAME",
                                     dimension_numbers=dn,
                                     preferred_element_type=jnp.float32)
    return jnp.transpose(x - y, (0, 3, 1, 2))


# --------------------------------- main ------------------------------------ #

if __name__ == "__main__":
    key = jax.random.PRNGKey(0)
    kx, kp = jax.random.split(key)

    N, C, H, W = 2, 4, 16, 16            # small NCHW input (PyTorch convention)
    num_of_layers = 5                     # shallow stack, features stays 64

    x = jax.random.normal(kx, (N, C, H, W), jnp.float32)
    params = init_sndncnn_params(kp, channels=C, num_of_layers=num_of_layers,
                                 lip=1.0, no_bn=False)

    fwd = jax.jit(sndncnn_forward)
    y = fwd(x, params)
    jax.block_until_ready(y)

    assert y.shape == (N, C, H, W) and y.dtype == jnp.float32

    # numerical check against a pure-XLA reference with matching bf16 rounding
    y_ref = _reference_forward(x, params)
    err = float(jnp.max(jnp.abs(y - y_ref)))
    assert err < 1e-1, f"max abs error vs reference: {err}"

    print("KERNEL_OK")
</pallas_src>

<mosaic_0001>
module attributes {stable_mosaic.version = 11 : i64} {
  func.func @_conv_bn_relu_kernel(%arg0: i32, %arg1: i32, %arg2: memref<1x16x16x4xbf16, #tpu.memory_space<vmem>>, %arg3: memref<1x1x16x4xbf16, #tpu.memory_space<vmem>>, %arg4: memref<1x1x16x4xbf16, #tpu.memory_space<vmem>>, %arg5: memref<9x4x64xbf16, #tpu.memory_space<vmem>>, %arg6: memref<1x64xf32, #tpu.memory_space<vmem>>, %arg7: memref<1x64xf32, #tpu.memory_space<vmem>>, %arg8: memref<1x16x16x64xbf16, #tpu.memory_space<vmem>>) attributes {dimension_semantics = [#tpu.dimension_semantics<parallel>, #tpu.dimension_semantics<parallel>], iteration_bounds = array<i64: 2, 1>, scalar_prefetch = 0 : i64, scratch_operands = 0 : i64, tpu.core_type = #tpu.core_type<tc>, window_params = [{transform_indices = @transform_0, window_bounds = array<i64: 1, 16, 16, 4>}, {transform_indices = @transform_1, window_bounds = array<i64: 1, 1, 16, 4>}, {transform_indices = @transform_2, window_bounds = array<i64: 1, 1, 16, 4>}, {pipeline_mode = #tpu.pipeline_mode<synchronous>, transform_indices = @transform_3, window_bounds = array<i64: 9, 4, 64>}, {pipeline_mode = #tpu.pipeline_mode<synchronous>, transform_indices = @transform_4, window_bounds = array<i64: 1, 64>}, {pipeline_mode = #tpu.pipeline_mode<synchronous>, transform_indices = @transform_5, window_bounds = array<i64: 1, 64>}, {transform_indices = @transform_6, window_bounds = array<i64: 1, 16, 16, 64>}]} {
    %c0_i32 = arith.constant 0 : i32
    %0 = arith.cmpi sgt, %arg1, %c0_i32 : i32
    %1 = arith.extui %0 : i1 to i32
    %2 = arith.sitofp %1 : i32 to f32
    %c0_i32_0 = arith.constant 0 : i32
    %3 = arith.cmpi slt, %arg1, %c0_i32_0 : i32
    %4 = arith.extui %3 : i1 to i32
    %5 = arith.sitofp %4 : i32 to f32
    %c0 = arith.constant 0 : index
    %c0_1 = arith.constant 0 : index
    %c0_2 = arith.constant 0 : index
    %c0_3 = arith.constant 0 : index
    %6 = vector.load %arg2[%c0, %c0_1, %c0_2, %c0_3] : memref<1x16x16x4xbf16, #tpu.memory_space<vmem>>, vector<1x16x16x4xbf16>
    %7 = vector.shape_cast %6 : vector<1x16x16x4xbf16> to vector<16x16x4xbf16>
    %8 = arith.extf %7 : vector<16x16x4xbf16> to vector<16x16x4xf32>
    %c0_4 = arith.constant 0 : index
    %c0_5 = arith.constant 0 : index
    %c0_6 = arith.constant 0 : index
    %c0_7 = arith.constant 0 : index
    %9 = vector.load %arg3[%c0_4, %c0_5, %c0_6, %c0_7] : memref<1x1x16x4xbf16, #tpu.memory_space<vmem>>, vector<1x1x16x4xbf16>
    %10 = vector.shape_cast %9 : vector<1x1x16x4xbf16> to vector<1x16x4xbf16>
    %11 = arith.extf %10 : vector<1x16x4xbf16> to vector<1x16x4xf32>
    %12 = vector.broadcast %2 : f32 to vector<1x16x4xf32>
    %13 = arith.mulf %11, %12 : vector<1x16x4xf32>
    %c0_8 = arith.constant 0 : index
    %c0_9 = arith.constant 0 : index
    %c0_10 = arith.constant 0 : index
    %c0_11 = arith.constant 0 : index
    %14 = vector.load %arg4[%c0_8, %c0_9, %c0_10, %c0_11] : memref<1x1x16x4xbf16, #tpu.memory_space<vmem>>, vector<1x1x16x4xbf16>
    %15 = vector.shape_cast %14 : vector<1x1x16x4xbf16> to vector<1x16x4xbf16>
    %16 = arith.extf %15 : vector<1x16x4xbf16> to vector<1x16x4xf32>
    %17 = vector.broadcast %5 : f32 to vector<1x16x4xf32>
    %18 = arith.mulf %16, %17 : vector<1x16x4xf32>
    %19 = tpu.concatenate %13, %8, %18 in 0 : vector<1x16x4xf32>, vector<16x16x4xf32>, vector<1x16x4xf32> -> vector<18x16x4xf32>
    %cst = arith.constant 0.000000e+00 : f32
    %20 = vector.broadcast %cst : f32 to vector<18x1x4xf32>
    %21 = tpu.concatenate %20, %19, %20 in 1 : vector<18x1x4xf32>, vector<18x16x4xf32>, vector<18x1x4xf32> -> vector<18x18x4xf32>
    %cst_12 = arith.constant 0.000000e+00 : f32
    %22 = vector.broadcast %cst_12 : f32 to vector<256x64xf32>
    %23 = vector.extract_strided_slice %21 {offsets = [0, 0, 0], sizes = [16, 16, 4], strides = [1, 1, 1]} : vector<18x18x4xf32> to vector<16x16x4xf32>
    %24 = vector.shape_cast %23 : vector<16x16x4xf32> to vector<256x4xf32>
    %25 = arith.truncf %24 : vector<256x4xf32> to vector<256x4xbf16>
    %c0_13 = arith.constant 0 : index
    %c0_14 = arith.constant 0 : index
    %c0_15 = arith.constant 0 : index
    %26 = vector.load %arg5[%c0_13, %c0_14, %c0_15] : memref<9x4x64xbf16, #tpu.memory_space<vmem>>, vector<1x4x64xbf16>
    %27 = vector.shape_cast %26 : vector<1x4x64xbf16> to vector<4x64xbf16>
    %cst_16 = arith.constant dense<0.000000e+00> : vector<256x64xf32>
    %28 = tpu.matmul %25, %27, %cst_16 {dimension_numbers = #tpu.dot_dimension_numbers<[1], [0], [0], [1], [0, 0, 1, 1], [], []>} : vector<256x4xbf16>, vector<4x64xbf16>, vector<256x64xf32> -> vector<256x64xf32>
    %29 = arith.addf %22, %28 : vector<256x64xf32>
    %30 = vector.extract_strided_slice %21 {offsets = [0, 1, 0], sizes = [16, 16, 4], strides = [1, 1, 1]} : vector<18x18x4xf32> to vector<16x16x4xf32>
    %31 = vector.shape_cast %30 : vector<16x16x4xf32> to vector<256x4xf32>
    %32 = arith.truncf %31 : vector<256x4xf32> to vector<256x4xbf16>
    %c1 = arith.constant 1 : index
    %c0_17 = arith.constant 0 : index
    %c0_18 = arith.constant 0 : index
    %33 = vector.load %arg5[%c1, %c0_17, %c0_18] : memref<9x4x64xbf16, #tpu.memory_space<vmem>>, vector<1x4x64xbf16>
    %34 = vector.shape_cast %33 : vector<1x4x64xbf16> to vector<4x64xbf16>
    %cst_19 = arith.constant dense<0.000000e+00> : vector<256x64xf32>
    %35 = tpu.matmul %32, %34, %cst_19 {dimension_numbers = #tpu.dot_dimension_numbers<[1], [0], [0], [1], [0, 0, 1, 1], [], []>} : vector<256x4xbf16>, vector<4x64xbf16>, vector<256x64xf32> -> vector<256x64xf32>
    %36 = arith.addf %29, %35 : vector<256x64xf32>
    %37 = vector.extract_strided_slice %21 {offsets = [0, 2, 0], sizes = [16, 16, 4], strides = [1, 1, 1]} : vector<18x18x4xf32> to vector<16x16x4xf32>
    %38 = vector.shape_cast %37 : vector<16x16x4xf32> to vector<256x4xf32>
    %39 = arith.truncf %38 : vector<256x4xf32> to vector<256x4xbf16>
    %c2 = arith.constant 2 : index
    %c0_20 = arith.constant 0 : index
    %c0_21 = arith.constant 0 : index
    %40 = vector.load %arg5[%c2, %c0_20, %c0_21] : memref<9x4x64xbf16, #tpu.memory_space<vmem>>, vector<1x4x64xbf16>
    %41 = vector.shape_cast %40 : vector<1x4x64xbf16> to vector<4x64xbf16>
    %cst_22 = arith.constant dense<0.000000e+00> : vector<256x64xf32>
    %42 = tpu.matmul %39, %41, %cst_22 {dimension_numbers = #tpu.dot_dimension_numbers<[1], [0], [0], [1], [0, 0, 1, 1], [], []>} : vector<256x4xbf16>, vector<4x64xbf16>, vector<256x64xf32> -> vector<256x64xf32>
    %43 = arith.addf %36, %42 : vector<256x64xf32>
    %44 = vector.extract_strided_slice %21 {offsets = [1, 0, 0], sizes = [16, 16, 4], strides = [1, 1, 1]} : vector<18x18x4xf32> to vector<16x16x4xf32>
    %45 = vector.shape_cast %44 : vector<16x16x4xf32> to vector<256x4xf32>
    %46 = arith.truncf %45 : vector<256x4xf32> to vector<256x4xbf16>
    %c3 = arith.constant 3 : index
    %c0_23 = arith.constant 0 : index
    %c0_24 = arith.constant 0 : index
    %47 = vector.load %arg5[%c3, %c0_23, %c0_24] : memref<9x4x64xbf16, #tpu.memory_space<vmem>>, vector<1x4x64xbf16>
    %48 = vector.shape_cast %47 : vector<1x4x64xbf16> to vector<4x64xbf16>
    %cst_25 = arith.constant dense<0.000000e+00> : vector<256x64xf32>
    %49 = tpu.matmul %46, %48, %cst_25 {dimension_numbers = #tpu.dot_dimension_numbers<[1], [0], [0], [1], [0, 0, 1, 1], [], []>} : vector<256x4xbf16>, vector<4x64xbf16>, vector<256x64xf32> -> vector<256x64xf32>
    %50 = arith.addf %43, %49 : vector<256x64xf32>
    %51 = vector.extract_strided_slice %21 {offsets = [1, 1, 0], sizes = [16, 16, 4], strides = [1, 1, 1]} : vector<18x18x4xf32> to vector<16x16x4xf32>
    %52 = vector.shape_cast %51 : vector<16x16x4xf32> to vector<256x4xf32>
    %53 = arith.truncf %52 : vector<256x4xf32> to vector<256x4xbf16>
    %c4 = arith.constant 4 : index
    %c0_26 = arith.constant 0 : index
    %c0_27 = arith.constant 0 : index
    %54 = vector.load %arg5[%c4, %c0_26, %c0_27] : memref<9x4x64xbf16, #tpu.memory_space<vmem>>, vector<1x4x64xbf16>
    %55 = vector.shape_cast %54 : vector<1x4x64xbf16> to vector<4x64xbf16>
    %cst_28 = arith.constant dense<0.000000e+00> : vector<256x64xf32>
    %56 = tpu.matmul %53, %55, %cst_28 {dimension_numbers = #tpu.dot_dimension_numbers<[1], [0], [0], [1], [0, 0, 1, 1], [], []>} : vector<256x4xbf16>, vector<4x64xbf16>, vector<256x64xf32> -> vector<256x64xf32>
    %57 = arith.addf %50, %56 : vector<256x64xf32>
    %58 = vector.extract_strided_slice %21 {offsets = [1, 2, 0], sizes = [16, 16, 4], strides = [1, 1, 1]} : vector<18x18x4xf32> to vector<16x16x4xf32>
    %59 = vector.shape_cast %58 : vector<16x16x4xf32> to vector<256x4xf32>
    %60 = arith.truncf %59 : vector<256x4xf32> to vector<256x4xbf16>
    %c5 = arith.constant 5 : index
    %c0_29 = arith.constant 0 : index
    %c0_30 = arith.constant 0 : index
    %61 = vector.load %arg5[%c5, %c0_29, %c0_30] : memref<9x4x64xbf16, #tpu.memory_space<vmem>>, vector<1x4x64xbf16>
    %62 = vector.shape_cast %61 : vector<1x4x64xbf16> to vector<4x64xbf16>
    %cst_31 = arith.constant dense<0.000000e+00> : vector<256x64xf32>
    %63 = tpu.matmul %60, %62, %cst_31 {dimension_numbers = #tpu.dot_dimension_numbers<[1], [0], [0], [1], [0, 0, 1, 1], [], []>} : vector<256x4xbf16>, vector<4x64xbf16>, vector<256x64xf32> -> vector<256x64xf32>
    %64 = arith.addf %57, %63 : vector<256x64xf32>
    %65 = vector.extract_strided_slice %21 {offsets = [2, 0, 0], sizes = [16, 16, 4], strides = [1, 1, 1]} : vector<18x18x4xf32> to vector<16x16x4xf32>
    %66 = vector.shape_cast %65 : vector<16x16x4xf32> to vector<256x4xf32>
    %67 = arith.truncf %66 : vector<256x4xf32> to vector<256x4xbf16>
    %c6 = arith.constant 6 : index
    %c0_32 = arith.constant 0 : index
    %c0_33 = arith.constant 0 : index
    %68 = vector.load %arg5[%c6, %c0_32, %c0_33] : memref<9x4x64xbf16, #tpu.memory_space<vmem>>, vector<1x4x64xbf16>
    %69 = vector.shape_cast %68 : vector<1x4x64xbf16> to vector<4x64xbf16>
    %cst_34 = arith.constant dense<0.000000e+00> : vector<256x64xf32>
    %70 = tpu.matmul %67, %69, %cst_34 {dimension_numbers = #tpu.dot_dimension_numbers<[1], [0], [0], [1], [0, 0, 1, 1], [], []>} : vector<256x4xbf16>, vector<4x64xbf16>, vector<256x64xf32> -> vector<256x64xf32>
    %71 = arith.addf %64, %70 : vector<256x64xf32>
    %72 = vector.extract_strided_slice %21 {offsets = [2, 1, 0], sizes = [16, 16, 4], strides = [1, 1, 1]} : vector<18x18x4xf32> to vector<16x16x4xf32>
    %73 = vector.shape_cast %72 : vector<16x16x4xf32> to vector<256x4xf32>
    %74 = arith.truncf %73 : vector<256x4xf32> to vector<256x4xbf16>
    %c7 = arith.constant 7 : index
    %c0_35 = arith.constant 0 : index
    %c0_36 = arith.constant 0 : index
    %75 = vector.load %arg5[%c7, %c0_35, %c0_36] : memref<9x4x64xbf16, #tpu.memory_space<vmem>>, vector<1x4x64xbf16>
    %76 = vector.shape_cast %75 : vector<1x4x64xbf16> to vector<4x64xbf16>
    %cst_37 = arith.constant dense<0.000000e+00> : vector<256x64xf32>
    %77 = tpu.matmul %74, %76, %cst_37 {dimension_numbers = #tpu.dot_dimension_numbers<[1], [0], [0], [1], [0, 0, 1, 1], [], []>} : vector<256x4xbf16>, vector<4x64xbf16>, vector<256x64xf32> -> vector<256x64xf32>
    %78 = arith.addf %71, %77 : vector<256x64xf32>
    %79 = vector.extract_strided_slice %21 {offsets = [2, 2, 0], sizes = [16, 16, 4], strides = [1, 1, 1]} : vector<18x18x4xf32> to vector<16x16x4xf32>
    %80 = vector.shape_cast %79 : vector<16x16x4xf32> to vector<256x4xf32>
    %81 = arith.truncf %80 : vector<256x4xf32> to vector<256x4xbf16>
    %c8 = arith.constant 8 : index
    %c0_38 = arith.constant 0 : index
    %c0_39 = arith.constant 0 : index
    %82 = vector.load %arg5[%c8, %c0_38, %c0_39] : memref<9x4x64xbf16, #tpu.memory_space<vmem>>, vector<1x4x64xbf16>
    %83 = vector.shape_cast %82 : vector<1x4x64xbf16> to vector<4x64xbf16>
    %cst_40 = arith.constant dense<0.000000e+00> : vector<256x64xf32>
    %84 = tpu.matmul %81, %83, %cst_40 {dimension_numbers = #tpu.dot_dimension_numbers<[1], [0], [0], [1], [0, 0, 1, 1], [], []>} : vector<256x4xbf16>, vector<4x64xbf16>, vector<256x64xf32> -> vector<256x64xf32>
    %85 = arith.addf %78, %84 : vector<256x64xf32>
    %c0_41 = arith.constant 0 : index
    %c0_42 = arith.constant 0 : index
    %86 = vector.load %arg6[%c0_41, %c0_42] : memref<1x64xf32, #tpu.memory_space<vmem>>, vector<1x64xf32>
    %87 = vector.broadcast %86 : vector<1x64xf32> to vector<256x64xf32>
    %88 = arith.mulf %85, %87 : vector<256x64xf32>
    %c0_43 = arith.constant 0 : index
    %c0_44 = arith.constant 0 : index
    %89 = vector.load %arg7[%c0_43, %c0_44] : memref<1x64xf32, #tpu.memory_space<vmem>>, vector<1x64xf32>
    %90 = vector.broadcast %89 : vector<1x64xf32> to vector<256x64xf32>
    %91 = arith.addf %88, %90 : vector<256x64xf32>
    %cst_45 = arith.constant 0.000000e+00 : f32
    %92 = vector.broadcast %cst_45 : f32 to vector<256x64xf32>
    %93 = arith.maximumf %91, %92 : vector<256x64xf32>
    %94 = vector.shape_cast %93 : vector<256x64xf32> to vector<16x16x64xf32>
    %95 = arith.truncf %94 : vector<16x16x64xf32> to vector<16x16x64xbf16>
    %c0_46 = arith.constant 0 : index
    %c0_47 = arith.constant 0 : index
    %c0_48 = arith.constant 0 : index
    %c0_49 = arith.constant 0 : index
    %96 = vector.load %arg8[%c0_46, %c0_47, %c0_48, %c0_49] : memref<1x16x16x64xbf16, #tpu.memory_space<vmem>>, vector<1x16x16x64xbf16>
    %97 = vector.shape_cast %96 : vector<1x16x16x64xbf16> to vector<16x16x64xbf16>
    %98 = vector.shape_cast %95 : vector<16x16x64xbf16> to vector<1x16x16x64xbf16>
    tpu.vector_store %arg8[%c0_46, %c0_47, %c0_48, %c0_49], %98 {strides = array<i32>} : memref<1x16x16x64xbf16, #tpu.memory_space<vmem>>, vector<1x16x16x64xbf16>,
    return
  }
  func.func @transform_0(%arg0: i32, %arg1: i32) -> (i32, i32, i32, i32) {
    %c0_i32 = arith.constant 0 : i32
    %c0_i32_0 = arith.constant 0 : i32
    %c0_i32_1 = arith.constant 0 : i32
    return %arg0, %arg1, %c0_i32, %c0_i32_0 : i32, i32, i32, i32
  }
  func.func @transform_1(%arg0: i32, %arg1: i32) -> (i32, i32, i32, i32) {
    %c16_i32 = arith.constant 16 : i32
    %0 = arith.muli %arg1, %c16_i32 : i32
    %c1_i32 = arith.constant 1 : i32
    %1 = arith.subi %0, %c1_i32 : i32
    %c0_i32 = arith.constant 0 : i32
    %2 = arith.maxsi %1, %c0_i32 : i32
    %c0_i32_0 = arith.constant 0 : i32
    %c0_i32_1 = arith.constant 0 : i32
    %c0_i32_2 = arith.constant 0 : i32
    return %arg0, %2, %c0_i32_0, %c0_i32_1 : i32, i32, i32, i32
  }
  func.func @transform_2(%arg0: i32, %arg1: i32) -> (i32, i32, i32, i32) {
    %c1_i32 = arith.constant 1 : i32
    %0 = arith.addi %arg1, %c1_i32 : i32
    %c16_i32 = arith.constant 16 : i32
    %1 = arith.muli %0, %c16_i32 : i32
    %c15_i32 = arith.constant 15 : i32
    %2 = arith.minsi %1, %c15_i32 : i32
    %c0_i32 = arith.constant 0 : i32
    %c0_i32_0 = arith.constant 0 : i32
    %c0_i32_1 = arith.constant 0 : i32
    return %arg0, %2, %c0_i32, %c0_i32_0 : i32, i32, i32, i32
  }
  func.func @transform_3(%arg0: i32, %arg1: i32) -> (i32, i32, i32) {
    %c0_i32 = arith.constant 0 : i32
    %c0_i32_0 = arith.constant 0 : i32
    %c0_i32_1 = arith.constant 0 : i32
    %c0_i32_2 = arith.constant 0 : i32
    return %c0_i32, %c0_i32_0, %c0_i32_1 : i32, i32, i32
  }
  func.func @transform_4(%arg0: i32, %arg1: i32) -> (i32, i32) {
    %c0_i32 = arith.constant 0 : i32
    %c0_i32_0 = arith.constant 0 : i32
    %c0_i32_1 = arith.constant 0 : i32
    return %c0_i32, %c0_i32_0 : i32, i32
  }
  func.func @transform_5(%arg0: i32, %arg1: i32) -> (i32, i32) {
    %c0_i32 = arith.constant 0 : i32
    %c0_i32_0 = arith.constant 0 : i32
    %c0_i32_1 = arith.constant 0 : i32
    return %c0_i32, %c0_i32_0 : i32, i32
  }
  func.func @transform_6(%arg0: i32, %arg1: i32) -> (i32, i32, i32, i32) {
    %c0_i32 = arith.constant 0 : i32
    %c0_i32_0 = arith.constant 0 : i32
    %c0_i32_1 = arith.constant 0 : i32
    return %arg0, %arg1, %c0_i32, %c0_i32_0 : i32, i32, i32, i32
  }
}

module attributes {stable_mosaic.version = 11 : i64} {
  func.func @_conv_bn_relu_kernel(%arg0: i32, %arg1: i32, %arg2: memref<1x16x16x64xbf16, #tpu.memory_space<vmem>>, %arg3: memref<1x1x16x64xbf16, #tpu.memory_space<vmem>>, %arg4: memref<1x1x16x64xbf16, #tpu.memory_space<vmem>>, %arg5: memref<9x64x64xbf16, #tpu.memory_space<vmem>>, %arg6: memref<1x64xf32, #tpu.memory_space<vmem>>, %arg7: memref<1x64xf32, #tpu.memory_space<vmem>>, %arg8: memref<1x16x16x64xbf16, #tpu.memory_space<vmem>>) attributes {dimension_semantics = [#tpu.dimension_semantics<parallel>, #tpu.dimension_semantics<parallel>], iteration_bounds = array<i64: 2, 1>, scalar_prefetch = 0 : i64, scratch_operands = 0 : i64, tpu.core_type = #tpu.core_type<tc>, window_params = [{transform_indices = @transform_0, window_bounds = array<i64: 1, 16, 16, 64>}, {transform_indices = @transform_1, window_bounds = array<i64: 1, 1, 16, 64>}, {transform_indices = @transform_2, window_bounds = array<i64: 1, 1, 16, 64>}, {pipeline_mode = #tpu.pipeline_mode<synchronous>, transform_indices = @transform_3, window_bounds = array<i64: 9, 64, 64>}, {pipeline_mode = #tpu.pipeline_mode<synchronous>, transform_indices = @transform_4, window_bounds = array<i64: 1, 64>}, {pipeline_mode = #tpu.pipeline_mode<synchronous>, transform_indices = @transform_5, window_bounds = array<i64: 1, 64>}, {transform_indices = @transform_6, window_bounds = array<i64: 1, 16, 16, 64>}]} {
    %c0_i32 = arith.constant 0 : i32
    %0 = arith.cmpi sgt, %arg1, %c0_i32 : i32
    %1 = arith.extui %0 : i1 to i32
    %2 = arith.sitofp %1 : i32 to f32
    %c0_i32_0 = arith.constant 0 : i32
    %3 = arith.cmpi slt, %arg1, %c0_i32_0 : i32
    %4 = arith.extui %3 : i1 to i32
    %5 = arith.sitofp %4 : i32 to f32
    %c0 = arith.constant 0 : index
    %c0_1 = arith.constant 0 : index
    %c0_2 = arith.constant 0 : index
    %c0_3 = arith.constant 0 : index
    %6 = vector.load %arg2[%c0, %c0_1, %c0_2, %c0_3] : memref<1x16x16x64xbf16, #tpu.memory_space<vmem>>, vector<1x16x16x64xbf16>
    %7 = vector.shape_cast %6 : vector<1x16x16x64xbf16> to vector<16x16x64xbf16>
    %8 = arith.extf %7 : vector<16x16x64xbf16> to vector<16x16x64xf32>
    %c0_4 = arith.constant 0 : index
    %c0_5 = arith.constant 0 : index
    %c0_6 = arith.constant 0 : index
    %c0_7 = arith.constant 0 : index
    %9 = vector.load %arg3[%c0_4, %c0_5, %c0_6, %c0_7] : memref<1x1x16x64xbf16, #tpu.memory_space<vmem>>, vector<1x1x16x64xbf16>
    %10 = vector.shape_cast %9 : vector<1x1x16x64xbf16> to vector<1x16x64xbf16>
    %11 = arith.extf %10 : vector<1x16x64xbf16> to vector<1x16x64xf32>
    %12 = vector.broadcast %2 : f32 to vector<1x16x64xf32>
    %13 = arith.mulf %11, %12 : vector<1x16x64xf32>
    %c0_8 = arith.constant 0 : index
    %c0_9 = arith.constant 0 : index
    %c0_10 = arith.constant 0 : index
    %c0_11 = arith.constant 0 : index
    %14 = vector.load %arg4[%c0_8, %c0_9, %c0_10, %c0_11] : memref<1x1x16x64xbf16, #tpu.memory_space<vmem>>, vector<1x1x16x64xbf16>
    %15 = vector.shape_cast %14 : vector<1x1x16x64xbf16> to vector<1x16x64xbf16>
    %16 = arith.extf %15 : vector<1x16x64xbf16> to vector<1x16x64xf32>
    %17 = vector.broadcast %5 : f32 to vector<1x16x64xf32>
    %18 = arith.mulf %16, %17 : vector<1x16x64xf32>
    %19 = tpu.concatenate %13, %8, %18 in 0 : vector<1x16x64xf32>, vector<16x16x64xf32>, vector<1x16x64xf32> -> vector<18x16x64xf32>
    %cst = arith.constant 0.000000e+00 : f32
    %20 = vector.broadcast %cst : f32 to vector<18x1x64xf32>
    %21 = tpu.concatenate %20, %19, %20 in 1 : vector<18x1x64xf32>, vector<18x16x64xf32>, vector<18x1x64xf32> -> vector<18x18x64xf32>
    %cst_12 = arith.constant 0.000000e+00 : f32
    %22 = vector.broadcast %cst_12 : f32 to vector<256x64xf32>
    %23 = vector.extract_strided_slice %21 {offsets = [0, 0, 0], sizes = [16, 16, 64], strides = [1, 1, 1]} : vector<18x18x64xf32> to vector<16x16x64xf32>
    %24 = vector.shape_cast %23 : vector<16x16x64xf32> to vector<256x64xf32>
    %25 = arith.truncf %24 : vector<256x64xf32> to vector<256x64xbf16>
    %c0_13 = arith.constant 0 : index
    %c0_14 = arith.constant 0 : index
    %c0_15 = arith.constant 0 : index
    %26 = vector.load %arg5[%c0_13, %c0_14, %c0_15] : memref<9x64x64xbf16, #tpu.memory_space<vmem>>, vector<1x64x64xbf16>
    %27 = vector.shape_cast %26 : vector<1x64x64xbf16> to vector<64x64xbf16>
    %cst_16 = arith.constant dense<0.000000e+00> : vector<256x64xf32>
    %28 = tpu.matmul %25, %27, %cst_16 {dimension_numbers = #tpu.dot_dimension_numbers<[1], [0], [0], [1], [0, 0, 1, 1], [], []>} : vector<256x64xbf16>, vector<64x64xbf16>, vector<256x64xf32> -> vector<256x64xf32>
    %29 = arith.addf %22, %28 : vector<256x64xf32>
    %30 = vector.extract_strided_slice %21 {offsets = [0, 1, 0], sizes = [16, 16, 64], strides = [1, 1, 1]} : vector<18x18x64xf32> to vector<16x16x64xf32>
    %31 = vector.shape_cast %30 : vector<16x16x64xf32> to vector<256x64xf32>
    %32 = arith.truncf %31 : vector<256x64xf32> to vector<256x64xbf16>
    %c1 = arith.constant 1 : index
    %c0_17 = arith.constant 0 : index
    %c0_18 = arith.constant 0 : index
    %33 = vector.load %arg5[%c1, %c0_17, %c0_18] : memref<9x64x64xbf16, #tpu.memory_space<vmem>>, vector<1x64x64xbf16>
    %34 = vector.shape_cast %33 : vector<1x64x64xbf16> to vector<64x64xbf16>
    %cst_19 = arith.constant dense<0.000000e+00> : vector<256x64xf32>
    %35 = tpu.matmul %32, %34, %cst_19 {dimension_numbers = #tpu.dot_dimension_numbers<[1], [0], [0], [1], [0, 0, 1, 1], [], []>} : vector<256x64xbf16>, vector<64x64xbf16>, vector<256x64xf32> -> vector<256x64xf32>
    %36 = arith.addf %29, %35 : vector<256x64xf32>
    %37 = vector.extract_strided_slice %21 {offsets = [0, 2, 0], sizes = [16, 16, 64], strides = [1, 1, 1]} : vector<18x18x64xf32> to vector<16x16x64xf32>
    %38 = vector.shape_cast %37 : vector<16x16x64xf32> to vector<256x64xf32>
    %39 = arith.truncf %38 : vector<256x64xf32> to vector<256x64xbf16>
    %c2 = arith.constant 2 : index
    %c0_20 = arith.constant 0 : index
    %c0_21 = arith.constant 0 : index
    %40 = vector.load %arg5[%c2, %c0_20, %c0_21] : memref<9x64x64xbf16, #tpu.memory_space<vmem>>, vector<1x64x64xbf16>
    %41 = vector.shape_cast %40 : vector<1x64x64xbf16> to vector<64x64xbf16>
    %cst_22 = arith.constant dense<0.000000e+00> : vector<256x64xf32>
    %42 = tpu.matmul %39, %41, %cst_22 {dimension_numbers = #tpu.dot_dimension_numbers<[1], [0], [0], [1], [0, 0, 1, 1], [], []>} : vector<256x64xbf16>, vector<64x64xbf16>, vector<256x64xf32> -> vector<256x64xf32>
    %43 = arith.addf %36, %42 : vector<256x64xf32>
    %44 = vector.extract_strided_slice %21 {offsets = [1, 0, 0], sizes = [16, 16, 64], strides = [1, 1, 1]} : vector<18x18x64xf32> to vector<16x16x64xf32>
    %45 = vector.shape_cast %44 : vector<16x16x64xf32> to vector<256x64xf32>
    %46 = arith.truncf %45 : vector<256x64xf32> to vector<256x64xbf16>
    %c3 = arith.constant 3 : index
    %c0_23 = arith.constant 0 : index
    %c0_24 = arith.constant 0 : index
    %47 = vector.load %arg5[%c3, %c0_23, %c0_24] : memref<9x64x64xbf16, #tpu.memory_space<vmem>>, vector<1x64x64xbf16>
    %48 = vector.shape_cast %47 : vector<1x64x64xbf16> to vector<64x64xbf16>
    %cst_25 = arith.constant dense<0.000000e+00> : vector<256x64xf32>
    %49 = tpu.matmul %46, %48, %cst_25 {dimension_numbers = #tpu.dot_dimension_numbers<[1], [0], [0], [1], [0, 0, 1, 1], [], []>} : vector<256x64xbf16>, vector<64x64xbf16>, vector<256x64xf32> -> vector<256x64xf32>
    %50 = arith.addf %43, %49 : vector<256x64xf32>
    %51 = vector.extract_strided_slice %21 {offsets = [1, 1, 0], sizes = [16, 16, 64], strides = [1, 1, 1]} : vector<18x18x64xf32> to vector<16x16x64xf32>
    %52 = vector.shape_cast %51 : vector<16x16x64xf32> to vector<256x64xf32>
    %53 = arith.truncf %52 : vector<256x64xf32> to vector<256x64xbf16>
    %c4 = arith.constant 4 : index
    %c0_26 = arith.constant 0 : index
    %c0_27 = arith.constant 0 : index
    %54 = vector.load %arg5[%c4, %c0_26, %c0_27] : memref<9x64x64xbf16, #tpu.memory_space<vmem>>, vector<1x64x64xbf16>
    %55 = vector.shape_cast %54 : vector<1x64x64xbf16> to vector<64x64xbf16>
    %cst_28 = arith.constant dense<0.000000e+00> : vector<256x64xf32>
    %56 = tpu.matmul %53, %55, %cst_28 {dimension_numbers = #tpu.dot_dimension_numbers<[1], [0], [0], [1], [0, 0, 1, 1], [], []>} : vector<256x64xbf16>, vector<64x64xbf16>, vector<256x64xf32> -> vector<256x64xf32>
    %57 = arith.addf %50, %56 : vector<256x64xf32>
    %58 = vector.extract_strided_slice %21 {offsets = [1, 2, 0], sizes = [16, 16, 64], strides = [1, 1, 1]} : vector<18x18x64xf32> to vector<16x16x64xf32>
    %59 = vector.shape_cast %58 : vector<16x16x64xf32> to vector<256x64xf32>
    %60 = arith.truncf %59 : vector<256x64xf32> to vector<256x64xbf16>
    %c5 = arith.constant 5 : index
    %c0_29 = arith.constant 0 : index
    %c0_30 = arith.constant 0 : index
    %61 = vector.load %arg5[%c5, %c0_29, %c0_30] : memref<9x64x64xbf16, #tpu.memory_space<vmem>>, vector<1x64x64xbf16>
    %62 = vector.shape_cast %61 : vector<1x64x64xbf16> to vector<64x64xbf16>
    %cst_31 = arith.constant dense<0.000000e+00> : vector<256x64xf32>
    %63 = tpu.matmul %60, %62, %cst_31 {dimension_numbers = #tpu.dot_dimension_numbers<[1], [0], [0], [1], [0, 0, 1, 1], [], []>} : vector<256x64xbf16>, vector<64x64xbf16>, vector<256x64xf32> -> vector<256x64xf32>
    %64 = arith.addf %57, %63 : vector<256x64xf32>
    %65 = vector.extract_strided_slice %21 {offsets = [2, 0, 0], sizes = [16, 16, 64], strides = [1, 1, 1]} : vector<18x18x64xf32> to vector<16x16x64xf32>
    %66 = vector.shape_cast %65 : vector<16x16x64xf32> to vector<256x64xf32>
    %67 = arith.truncf %66 : vector<256x64xf32> to vector<256x64xbf16>
    %c6 = arith.constant 6 : index
    %c0_32 = arith.constant 0 : index
    %c0_33 = arith.constant 0 : index
    %68 = vector.load %arg5[%c6, %c0_32, %c0_33] : memref<9x64x64xbf16, #tpu.memory_space<vmem>>, vector<1x64x64xbf16>
    %69 = vector.shape_cast %68 : vector<1x64x64xbf16> to vector<64x64xbf16>
    %cst_34 = arith.constant dense<0.000000e+00> : vector<256x64xf32>
    %70 = tpu.matmul %67, %69, %cst_34 {dimension_numbers = #tpu.dot_dimension_numbers<[1], [0], [0], [1], [0, 0, 1, 1], [], []>} : vector<256x64xbf16>, vector<64x64xbf16>, vector<256x64xf32> -> vector<256x64xf32>
    %71 = arith.addf %64, %70 : vector<256x64xf32>
    %72 = vector.extract_strided_slice %21 {offsets = [2, 1, 0], sizes = [16, 16, 64], strides = [1, 1, 1]} : vector<18x18x64xf32> to vector<16x16x64xf32>
    %73 = vector.shape_cast %72 : vector<16x16x64xf32> to vector<256x64xf32>
    %74 = arith.truncf %73 : vector<256x64xf32> to vector<256x64xbf16>
    %c7 = arith.constant 7 : index
    %c0_35 = arith.constant 0 : index
    %c0_36 = arith.constant 0 : index
    %75 = vector.load %arg5[%c7, %c0_35, %c0_36] : memref<9x64x64xbf16, #tpu.memory_space<vmem>>, vector<1x64x64xbf16>
    %76 = vector.shape_cast %75 : vector<1x64x64xbf16> to vector<64x64xbf16>
    %cst_37 = arith.constant dense<0.000000e+00> : vector<256x64xf32>
    %77 = tpu.matmul %74, %76, %cst_37 {dimension_numbers = #tpu.dot_dimension_numbers<[1], [0], [0], [1], [0, 0, 1, 1], [], []>} : vector<256x64xbf16>, vector<64x64xbf16>, vector<256x64xf32> -> vector<256x64xf32>
    %78 = arith.addf %71, %77 : vector<256x64xf32>
    %79 = vector.extract_strided_slice %21 {offsets = [2, 2, 0], sizes = [16, 16, 64], strides = [1, 1, 1]} : vector<18x18x64xf32> to vector<16x16x64xf32>
    %80 = vector.shape_cast %79 : vector<16x16x64xf32> to vector<256x64xf32>
    %81 = arith.truncf %80 : vector<256x64xf32> to vector<256x64xbf16>
    %c8 = arith.constant 8 : index
    %c0_38 = arith.constant 0 : index
    %c0_39 = arith.constant 0 : index
    %82 = vector.load %arg5[%c8, %c0_38, %c0_39] : memref<9x64x64xbf16, #tpu.memory_space<vmem>>, vector<1x64x64xbf16>
    %83 = vector.shape_cast %82 : vector<1x64x64xbf16> to vector<64x64xbf16>
    %cst_40 = arith.constant dense<0.000000e+00> : vector<256x64xf32>
    %84 = tpu.matmul %81, %83, %cst_40 {dimension_numbers = #tpu.dot_dimension_numbers<[1], [0], [0], [1], [0, 0, 1, 1], [], []>} : vector<256x64xbf16>, vector<64x64xbf16>, vector<256x64xf32> -> vector<256x64xf32>
    %85 = arith.addf %78, %84 : vector<256x64xf32>
    %c0_41 = arith.constant 0 : index
    %c0_42 = arith.constant 0 : index
    %86 = vector.load %arg6[%c0_41, %c0_42] : memref<1x64xf32, #tpu.memory_space<vmem>>, vector<1x64xf32>
    %87 = vector.broadcast %86 : vector<1x64xf32> to vector<256x64xf32>
    %88 = arith.mulf %85, %87 : vector<256x64xf32>
    %c0_43 = arith.constant 0 : index
    %c0_44 = arith.constant 0 : index
    %89 = vector.load %arg7[%c0_43, %c0_44] : memref<1x64xf32, #tpu.memory_space<vmem>>, vector<1x64xf32>
    %90 = vector.broadcast %89 : vector<1x64xf32> to vector<256x64xf32>
    %91 = arith.addf %88, %90 : vector<256x64xf32>
    %cst_45 = arith.constant 0.000000e+00 : f32
    %92 = vector.broadcast %cst_45 : f32 to vector<256x64xf32>
    %93 = arith.maximumf %91, %92 : vector<256x64xf32>
    %94 = vector.shape_cast %93 : vector<256x64xf32> to vector<16x16x64xf32>
    %95 = arith.truncf %94 : vector<16x16x64xf32> to vector<16x16x64xbf16>
    %c0_46 = arith.constant 0 : index
    %c0_47 = arith.constant 0 : index
    %c0_48 = arith.constant 0 : index
    %c0_49 = arith.constant 0 : index
    %96 = vector.load %arg8[%c0_46, %c0_47, %c0_48, %c0_49] : memref<1x16x16x64xbf16, #tpu.memory_space<vmem>>, vector<1x16x16x64xbf16>
    %97 = vector.shape_cast %96 : vector<1x16x16x64xbf16> to vector<16x16x64xbf16>
    %98 = vector.shape_cast %95 : vector<16x16x64xbf16> to vector<1x16x16x64xbf16>
    tpu.vector_store %arg8[%c0_46, %c0_47, %c0_48, %c0_49], %98 {strides = array<i32>} : memref<1x16x16x64xbf16, #tpu.memory_space<vmem>>, vector<1x16x16x64xbf16>,
    return
  }
  func.func @transform_0(%arg0: i32, %arg1: i32) -> (i32, i32, i32, i32) {
    %c0_i32 = arith.constant 0 : i32
    %c0_i32_0 = arith.constant 0 : i32
    %c0_i32_1 = arith.constant 0 : i32
    return %arg0, %arg1, %c0_i32, %c0_i32_0 : i32, i32, i32, i32
  }
  func.func @transform_1(%arg0: i32, %arg1: i32) -> (i32, i32, i32, i32) {
    %c16_i32 = arith.constant 16 : i32
    %0 = arith.muli %arg1, %c16_i32 : i32
    %c1_i32 = arith.constant 1 : i32
    %1 = arith.subi %0, %c1_i32 : i32
    %c0_i32 = arith.constant 0 : i32
    %2 = arith.maxsi %1, %c0_i32 : i32
    %c0_i32_0 = arith.constant 0 : i32
    %c0_i32_1 = arith.constant 0 : i32
    %c0_i32_2 = arith.constant 0 : i32
    return %arg0, %2, %c0_i32_0, %c0_i32_1 : i32, i32, i32, i32
  }
  func.func @transform_2(%arg0: i32, %arg1: i32) -> (i32, i32, i32, i32) {
    %c1_i32 = arith.constant 1 : i32
    %0 = arith.addi %arg1, %c1_i32 : i32
    %c16_i32 = arith.constant 16 : i32
    %1 = arith.muli %0, %c16_i32 : i32
    %c15_i32 = arith.constant 15 : i32
    %2 = arith.minsi %1, %c15_i32 : i32
    %c0_i32 = arith.constant 0 : i32
    %c0_i32_0 = arith.constant 0 : i32
    %c0_i32_1 = arith.constant 0 : i32
    return %arg0, %2, %c0_i32, %c0_i32_0 : i32, i32, i32, i32
  }
  func.func @transform_3(%arg0: i32, %arg1: i32) -> (i32, i32, i32) {
    %c0_i32 = arith.constant 0 : i32
    %c0_i32_0 = arith.constant 0 : i32
    %c0_i32_1 = arith.constant 0 : i32
    %c0_i32_2 = arith.constant 0 : i32
    return %c0_i32, %c0_i32_0, %c0_i32_1 : i32, i32, i32
  }
  func.func @transform_4(%arg0: i32, %arg1: i32) -> (i32, i32) {
    %c0_i32 = arith.constant 0 : i32
    %c0_i32_0 = arith.constant 0 : i32
    %c0_i32_1 = arith.constant 0 : i32
    return %c0_i32, %c0_i32_0 : i32, i32
  }
  func.func @transform_5(%arg0: i32, %arg1: i32) -> (i32, i32) {
    %c0_i32 = arith.constant 0 : i32
    %c0_i32_0 = arith.constant 0 : i32
    %c0_i32_1 = arith.constant 0 : i32
    return %c0_i32, %c0_i32_0 : i32, i32
  }
  func.func @transform_6(%arg0: i32, %arg1: i32) -> (i32, i32, i32, i32) {
    %c0_i32 = arith.constant 0 : i32
    %c0_i32_0 = arith.constant 0 : i32
    %c0_i32_1 = arith.constant 0 : i32
    return %arg0, %arg1, %c0_i32, %c0_i32_0 : i32, i32, i32, i32
  }
}

module attributes {stable_mosaic.version = 11 : i64} {
  func.func @_conv_residual_kernel(%arg0: i32, %arg1: i32, %arg2: memref<1x16x16x64xbf16, #tpu.memory_space<vmem>>, %arg3: memref<1x1x16x64xbf16, #tpu.memory_space<vmem>>, %arg4: memref<1x1x16x64xbf16, #tpu.memory_space<vmem>>, %arg5: memref<9x64x4xbf16, #tpu.memory_space<vmem>>, %arg6: memref<1x16x16x4xf32, #tpu.memory_space<vmem>>, %arg7: memref<1x16x16x4xf32, #tpu.memory_space<vmem>>) attributes {dimension_semantics = [#tpu.dimension_semantics<parallel>, #tpu.dimension_semantics<parallel>], iteration_bounds = array<i64: 2, 1>, scalar_prefetch = 0 : i64, scratch_operands = 0 : i64, tpu.core_type = #tpu.core_type<tc>, window_params = [{transform_indices = @transform_0, window_bounds = array<i64: 1, 16, 16, 64>}, {transform_indices = @transform_1, window_bounds = array<i64: 1, 1, 16, 64>}, {transform_indices = @transform_2, window_bounds = array<i64: 1, 1, 16, 64>}, {pipeline_mode = #tpu.pipeline_mode<synchronous>, transform_indices = @transform_3, window_bounds = array<i64: 9, 64, 4>}, {transform_indices = @transform_4, window_bounds = array<i64: 1, 16, 16, 4>}, {transform_indices = @transform_5, window_bounds = array<i64: 1, 16, 16, 4>}]} {
    %c0_i32 = arith.constant 0 : i32
    %0 = arith.cmpi sgt, %arg1, %c0_i32 : i32
    %1 = arith.extui %0 : i1 to i32
    %2 = arith.sitofp %1 : i32 to f32
    %c0_i32_0 = arith.constant 0 : i32
    %3 = arith.cmpi slt, %arg1, %c0_i32_0 : i32
    %4 = arith.extui %3 : i1 to i32
    %5 = arith.sitofp %4 : i32 to f32
    %c0 = arith.constant 0 : index
    %c0_1 = arith.constant 0 : index
    %c0_2 = arith.constant 0 : index
    %c0_3 = arith.constant 0 : index
    %6 = vector.load %arg2[%c0, %c0_1, %c0_2, %c0_3] : memref<1x16x16x64xbf16, #tpu.memory_space<vmem>>, vector<1x16x16x64xbf16>
    %7 = vector.shape_cast %6 : vector<1x16x16x64xbf16> to vector<16x16x64xbf16>
    %8 = arith.extf %7 : vector<16x16x64xbf16> to vector<16x16x64xf32>
    %c0_4 = arith.constant 0 : index
    %c0_5 = arith.constant 0 : index
    %c0_6 = arith.constant 0 : index
    %c0_7 = arith.constant 0 : index
    %9 = vector.load %arg3[%c0_4, %c0_5, %c0_6, %c0_7] : memref<1x1x16x64xbf16, #tpu.memory_space<vmem>>, vector<1x1x16x64xbf16>
    %10 = vector.shape_cast %9 : vector<1x1x16x64xbf16> to vector<1x16x64xbf16>
    %11 = arith.extf %10 : vector<1x16x64xbf16> to vector<1x16x64xf32>
    %12 = vector.broadcast %2 : f32 to vector<1x16x64xf32>
    %13 = arith.mulf %11, %12 : vector<1x16x64xf32>
    %c0_8 = arith.constant 0 : index
    %c0_9 = arith.constant 0 : index
    %c0_10 = arith.constant 0 : index
    %c0_11 = arith.constant 0 : index
    %14 = vector.load %arg4[%c0_8, %c0_9, %c0_10, %c0_11] : memref<1x1x16x64xbf16, #tpu.memory_space<vmem>>, vector<1x1x16x64xbf16>
    %15 = vector.shape_cast %14 : vector<1x1x16x64xbf16> to vector<1x16x64xbf16>
    %16 = arith.extf %15 : vector<1x16x64xbf16> to vector<1x16x64xf32>
    %17 = vector.broadcast %5 : f32 to vector<1x16x64xf32>
    %18 = arith.mulf %16, %17 : vector<1x16x64xf32>
    %19 = tpu.concatenate %13, %8, %18 in 0 : vector<1x16x64xf32>, vector<16x16x64xf32>, vector<1x16x64xf32> -> vector<18x16x64xf32>
    %cst = arith.constant 0.000000e+00 : f32
    %20 = vector.broadcast %cst : f32 to vector<18x1x64xf32>
    %21 = tpu.concatenate %20, %19, %20 in 1 : vector<18x1x64xf32>, vector<18x16x64xf32>, vector<18x1x64xf32> -> vector<18x18x64xf32>
    %cst_12 = arith.constant 0.000000e+00 : f32
    %22 = vector.broadcast %cst_12 : f32 to vector<256x4xf32>
    %23 = vector.extract_strided_slice %21 {offsets = [0, 0, 0], sizes = [16, 16, 64], strides = [1, 1, 1]} : vector<18x18x64xf32> to vector<16x16x64xf32>
    %24 = vector.shape_cast %23 : vector<16x16x64xf32> to vector<256x64xf32>
    %25 = arith.truncf %24 : vector<256x64xf32> to vector<256x64xbf16>
    %c0_13 = arith.constant 0 : index
    %c0_14 = arith.constant 0 : index
    %c0_15 = arith.constant 0 : index
    %26 = vector.load %arg5[%c0_13, %c0_14, %c0_15] : memref<9x64x4xbf16, #tpu.memory_space<vmem>>, vector<1x64x4xbf16>
    %27 = vector.shape_cast %26 : vector<1x64x4xbf16> to vector<64x4xbf16>
    %cst_16 = arith.constant dense<0.000000e+00> : vector<256x4xf32>
    %28 = tpu.matmul %25, %27, %cst_16 {dimension_numbers = #tpu.dot_dimension_numbers<[1], [0], [0], [1], [0, 0, 1, 1], [], []>} : vector<256x64xbf16>, vector<64x4xbf16>, vector<256x4xf32> -> vector<256x4xf32>
    %29 = arith.addf %22, %28 : vector<256x4xf32>
    %30 = vector.extract_strided_slice %21 {offsets = [0, 1, 0], sizes = [16, 16, 64], strides = [1, 1, 1]} : vector<18x18x64xf32> to vector<16x16x64xf32>
    %31 = vector.shape_cast %30 : vector<16x16x64xf32> to vector<256x64xf32>
    %32 = arith.truncf %31 : vector<256x64xf32> to vector<256x64xbf16>
    %c1 = arith.constant 1 : index
    %c0_17 = arith.constant 0 : index
    %c0_18 = arith.constant 0 : index
    %33 = vector.load %arg5[%c1, %c0_17, %c0_18] : memref<9x64x4xbf16, #tpu.memory_space<vmem>>, vector<1x64x4xbf16>
    %34 = vector.shape_cast %33 : vector<1x64x4xbf16> to vector<64x4xbf16>
    %cst_19 = arith.constant dense<0.000000e+00> : vector<256x4xf32>
    %35 = tpu.matmul %32, %34, %cst_19 {dimension_numbers = #tpu.dot_dimension_numbers<[1], [0], [0], [1], [0, 0, 1, 1], [], []>} : vector<256x64xbf16>, vector<64x4xbf16>, vector<256x4xf32> -> vector<256x4xf32>
    %36 = arith.addf %29, %35 : vector<256x4xf32>
    %37 = vector.extract_strided_slice %21 {offsets = [0, 2, 0], sizes = [16, 16, 64], strides = [1, 1, 1]} : vector<18x18x64xf32> to vector<16x16x64xf32>
    %38 = vector.shape_cast %37 : vector<16x16x64xf32> to vector<256x64xf32>
    %39 = arith.truncf %38 : vector<256x64xf32> to vector<256x64xbf16>
    %c2 = arith.constant 2 : index
    %c0_20 = arith.constant 0 : index
    %c0_21 = arith.constant 0 : index
    %40 = vector.load %arg5[%c2, %c0_20, %c0_21] : memref<9x64x4xbf16, #tpu.memory_space<vmem>>, vector<1x64x4xbf16>
    %41 = vector.shape_cast %40 : vector<1x64x4xbf16> to vector<64x4xbf16>
    %cst_22 = arith.constant dense<0.000000e+00> : vector<256x4xf32>
    %42 = tpu.matmul %39, %41, %cst_22 {dimension_numbers = #tpu.dot_dimension_numbers<[1], [0], [0], [1], [0, 0, 1, 1], [], []>} : vector<256x64xbf16>, vector<64x4xbf16>, vector<256x4xf32> -> vector<256x4xf32>
    %43 = arith.addf %36, %42 : vector<256x4xf32>
    %44 = vector.extract_strided_slice %21 {offsets = [1, 0, 0], sizes = [16, 16, 64], strides = [1, 1, 1]} : vector<18x18x64xf32> to vector<16x16x64xf32>
    %45 = vector.shape_cast %44 : vector<16x16x64xf32> to vector<256x64xf32>
    %46 = arith.truncf %45 : vector<256x64xf32> to vector<256x64xbf16>
    %c3 = arith.constant 3 : index
    %c0_23 = arith.constant 0 : index
    %c0_24 = arith.constant 0 : index
    %47 = vector.load %arg5[%c3, %c0_23, %c0_24] : memref<9x64x4xbf16, #tpu.memory_space<vmem>>, vector<1x64x4xbf16>
    %48 = vector.shape_cast %47 : vector<1x64x4xbf16> to vector<64x4xbf16>
    %cst_25 = arith.constant dense<0.000000e+00> : vector<256x4xf32>
    %49 = tpu.matmul %46, %48, %cst_25 {dimension_numbers = #tpu.dot_dimension_numbers<[1], [0], [0], [1], [0, 0, 1, 1], [], []>} : vector<256x64xbf16>, vector<64x4xbf16>, vector<256x4xf32> -> vector<256x4xf32>
    %50 = arith.addf %43, %49 : vector<256x4xf32>
    %51 = vector.extract_strided_slice %21 {offsets = [1, 1, 0], sizes = [16, 16, 64], strides = [1, 1, 1]} : vector<18x18x64xf32> to vector<16x16x64xf32>
    %52 = vector.shape_cast %51 : vector<16x16x64xf32> to vector<256x64xf32>
    %53 = arith.truncf %52 : vector<256x64xf32> to vector<256x64xbf16>
    %c4 = arith.constant 4 : index
    %c0_26 = arith.constant 0 : index
    %c0_27 = arith.constant 0 : index
    %54 = vector.load %arg5[%c4, %c0_26, %c0_27] : memref<9x64x4xbf16, #tpu.memory_space<vmem>>, vector<1x64x4xbf16>
    %55 = vector.shape_cast %54 : vector<1x64x4xbf16> to vector<64x4xbf16>
    %cst_28 = arith.constant dense<0.000000e+00> : vector<256x4xf32>
    %56 = tpu.matmul %53, %55, %cst_28 {dimension_numbers = #tpu.dot_dimension_numbers<[1], [0], [0], [1], [0, 0, 1, 1], [], []>} : vector<256x64xbf16>, vector<64x4xbf16>, vector<256x4xf32> -> vector<256x4xf32>
    %57 = arith.addf %50, %56 : vector<256x4xf32>
    %58 = vector.extract_strided_slice %21 {offsets = [1, 2, 0], sizes = [16, 16, 64], strides = [1, 1, 1]} : vector<18x18x64xf32> to vector<16x16x64xf32>
    %59 = vector.shape_cast %58 : vector<16x16x64xf32> to vector<256x64xf32>
    %60 = arith.truncf %59 : vector<256x64xf32> to vector<256x64xbf16>
    %c5 = arith.constant 5 : index
    %c0_29 = arith.constant 0 : index
    %c0_30 = arith.constant 0 : index
    %61 = vector.load %arg5[%c5, %c0_29, %c0_30] : memref<9x64x4xbf16, #tpu.memory_space<vmem>>, vector<1x64x4xbf16>
    %62 = vector.shape_cast %61 : vector<1x64x4xbf16> to vector<64x4xbf16>
    %cst_31 = arith.constant dense<0.000000e+00> : vector<256x4xf32>
    %63 = tpu.matmul %60, %62, %cst_31 {dimension_numbers = #tpu.dot_dimension_numbers<[1], [0], [0], [1], [0, 0, 1, 1], [], []>} : vector<256x64xbf16>, vector<64x4xbf16>, vector<256x4xf32> -> vector<256x4xf32>
    %64 = arith.addf %57, %63 : vector<256x4xf32>
    %65 = vector.extract_strided_slice %21 {offsets = [2, 0, 0], sizes = [16, 16, 64], strides = [1, 1, 1]} : vector<18x18x64xf32> to vector<16x16x64xf32>
    %66 = vector.shape_cast %65 : vector<16x16x64xf32> to vector<256x64xf32>
    %67 = arith.truncf %66 : vector<256x64xf32> to vector<256x64xbf16>
    %c6 = arith.constant 6 : index
    %c0_32 = arith.constant 0 : index
    %c0_33 = arith.constant 0 : index
    %68 = vector.load %arg5[%c6, %c0_32, %c0_33] : memref<9x64x4xbf16, #tpu.memory_space<vmem>>, vector<1x64x4xbf16>
    %69 = vector.shape_cast %68 : vector<1x64x4xbf16> to vector<64x4xbf16>
    %cst_34 = arith.constant dense<0.000000e+00> : vector<256x4xf32>
    %70 = tpu.matmul %67, %69, %cst_34 {dimension_numbers = #tpu.dot_dimension_numbers<[1], [0], [0], [1], [0, 0, 1, 1], [], []>} : vector<256x64xbf16>, vector<64x4xbf16>, vector<256x4xf32> -> vector<256x4xf32>
    %71 = arith.addf %64, %70 : vector<256x4xf32>
    %72 = vector.extract_strided_slice %21 {offsets = [2, 1, 0], sizes = [16, 16, 64], strides = [1, 1, 1]} : vector<18x18x64xf32> to vector<16x16x64xf32>
    %73 = vector.shape_cast %72 : vector<16x16x64xf32> to vector<256x64xf32>
    %74 = arith.truncf %73 : vector<256x64xf32> to vector<256x64xbf16>
    %c7 = arith.constant 7 : index
    %c0_35 = arith.constant 0 : index
    %c0_36 = arith.constant 0 : index
    %75 = vector.load %arg5[%c7, %c0_35, %c0_36] : memref<9x64x4xbf16, #tpu.memory_space<vmem>>, vector<1x64x4xbf16>
    %76 = vector.shape_cast %75 : vector<1x64x4xbf16> to vector<64x4xbf16>
    %cst_37 = arith.constant dense<0.000000e+00> : vector<256x4xf32>
    %77 = tpu.matmul %74, %76, %cst_37 {dimension_numbers = #tpu.dot_dimension_numbers<[1], [0], [0], [1], [0, 0, 1, 1], [], []>} : vector<256x64xbf16>, vector<64x4xbf16>, vector<256x4xf32> -> vector<256x4xf32>
    %78 = arith.addf %71, %77 : vector<256x4xf32>
    %79 = vector.extract_strided_slice %21 {offsets = [2, 2, 0], sizes = [16, 16, 64], strides = [1, 1, 1]} : vector<18x18x64xf32> to vector<16x16x64xf32>
    %80 = vector.shape_cast %79 : vector<16x16x64xf32> to vector<256x64xf32>
    %81 = arith.truncf %80 : vector<256x64xf32> to vector<256x64xbf16>
    %c8 = arith.constant 8 : index
    %c0_38 = arith.constant 0 : index
    %c0_39 = arith.constant 0 : index
    %82 = vector.load %arg5[%c8, %c0_38, %c0_39] : memref<9x64x4xbf16, #tpu.memory_space<vmem>>, vector<1x64x4xbf16>
    %83 = vector.shape_cast %82 : vector<1x64x4xbf16> to vector<64x4xbf16>
    %cst_40 = arith.constant dense<0.000000e+00> : vector<256x4xf32>
    %84 = tpu.matmul %81, %83, %cst_40 {dimension_numbers = #tpu.dot_dimension_numbers<[1], [0], [0], [1], [0, 0, 1, 1], [], []>} : vector<256x64xbf16>, vector<64x4xbf16>, vector<256x4xf32> -> vector<256x4xf32>
    %85 = arith.addf %78, %84 : vector<256x4xf32>
    %c0_41 = arith.constant 0 : index
    %c0_42 = arith.constant 0 : index
    %c0_43 = arith.constant 0 : index
    %c0_44 = arith.constant 0 : index
    %86 = vector.load %arg6[%c0_41, %c0_42, %c0_43, %c0_44] : memref<1x16x16x4xf32, #tpu.memory_space<vmem>>, vector<1x16x16x4xf32>
    %87 = vector.shape_cast %86 : vector<1x16x16x4xf32> to vector<16x16x4xf32>
    %88 = vector.shape_cast %85 : vector<256x4xf32> to vector<16x16x4xf32>
    %89 = arith.subf %87, %88 : vector<16x16x4xf32>
    %c0_45 = arith.constant 0 : index
    %c0_46 = arith.constant 0 : index
    %c0_47 = arith.constant 0 : index
    %c0_48 = arith.constant 0 : index
    %90 = vector.load %arg7[%c0_45, %c0_46, %c0_47, %c0_48] : memref<1x16x16x4xf32, #tpu.memory_space<vmem>>, vector<1x16x16x4xf32>
    %91 = vector.shape_cast %90 : vector<1x16x16x4xf32> to vector<16x16x4xf32>
    %92 = vector.shape_cast %89 : vector<16x16x4xf32> to vector<1x16x16x4xf32>
    tpu.vector_store %arg7[%c0_45, %c0_46, %c0_47, %c0_48], %92 {strides = array<i32>} : memref<1x16x16x4xf32, #tpu.memory_space<vmem>>, vector<1x16x16x4xf32>,
    return
  }
  func.func @transform_0(%arg0: i32, %arg1: i32) -> (i32, i32, i32, i32) {
    %c0_i32 = arith.constant 0 : i32
    %c0_i32_0 = arith.constant 0 : i32
    %c0_i32_1 = arith.constant 0 : i32
    return %arg0, %arg1, %c0_i32, %c0_i32_0 : i32, i32, i32, i32
  }
  func.func @transform_1(%arg0: i32, %arg1: i32) -> (i32, i32, i32, i32) {
    %c16_i32 = arith.constant 16 : i32
    %0 = arith.muli %arg1, %c16_i32 : i32
    %c1_i32 = arith.constant 1 : i32
    %1 = arith.subi %0, %c1_i32 : i32
    %c0_i32 = arith.constant 0 : i32
    %2 = arith.maxsi %1, %c0_i32 : i32
    %c0_i32_0 = arith.constant 0 : i32
    %c0_i32_1 = arith.constant 0 : i32
    %c0_i32_2 = arith.constant 0 : i32
    return %arg0, %2, %c0_i32_0, %c0_i32_1 : i32, i32, i32, i32
  }
  func.func @transform_2(%arg0: i32, %arg1: i32) -> (i32, i32, i32, i32) {
    %c1_i32 = arith.constant 1 : i32
    %0 = arith.addi %arg1, %c1_i32 : i32
    %c16_i32 = arith.constant 16 : i32
    %1 = arith.muli %0, %c16_i32 : i32
    %c15_i32 = arith.constant 15 : i32
    %2 = arith.minsi %1, %c15_i32 : i32
    %c0_i32 = arith.constant 0 : i32
    %c0_i32_0 = arith.constant 0 : i32
    %c0_i32_1 = arith.constant 0 : i32
    return %arg0, %2, %c0_i32, %c0_i32_0 : i32, i32, i32, i32
  }
  func.func @transform_3(%arg0: i32, %arg1: i32) -> (i32, i32, i32) {
    %c0_i32 = arith.constant 0 : i32
    %c0_i32_0 = arith.constant 0 : i32
    %c0_i32_1 = arith.constant 0 : i32
    %c0_i32_2 = arith.constant 0 : i32
    return %c0_i32, %c0_i32_0, %c0_i32_1 : i32, i32, i32
  }
  func.func @transform_4(%arg0: i32, %arg1: i32) -> (i32, i32, i32, i32) {
    %c0_i32 = arith.constant 0 : i32
    %c0_i32_0 = arith.constant 0 : i32
    %c0_i32_1 = arith.constant 0 : i32
    return %arg0, %arg1, %c0_i32, %c0_i32_0 : i32, i32, i32, i32
  }
  func.func @transform_5(%arg0: i32, %arg1: i32) -> (i32, i32, i32, i32) {
    %c0_i32 = arith.constant 0 : i32
    %c0_i32_0 = arith.constant 0 : i32
    %c0_i32_1 = arith.constant 0 : i32
    return %arg0, %arg1, %c0_i32, %c0_i32_0 : i32, i32, i32, i32
  }
}

</mosaic_0001>

<bundles_post_ra>
// kernel: sndncnn_forward.5
= control target key start
LH: loop header
LB: loop body
LE: loop exit
PB: predicated region body
PF: predicated region fallthrough
CT: control target
= control target key end

     0   :  { %s4456_s21 = smov 0   ;;  %s4458_s22 = smov 0   ;;  %s5510_s0 = inlined_call_operand.vmem [shape: bf16[2,16,16,4], index: 0, kind: input, shape index: {}, may-alias: {0,1,2}]   ;;  %s5511_s1 = inlined_call_operand.vmem [shape: bf16[2,16,16,4], index: 1, kind: input, shape index: {}, may-alias: {0,1,2}]   ;;  %s5512_s2 = inlined_call_operand.vmem [shape: bf16[2,16,16,4], index: 2, kind: input, shape index: {}, may-alias: {0,1,2}]   ;;  %s5513_s3 = inlined_call_operand.vmem [shape: bf16[9,4,64], index: 3, kind: input, shape index: {}]   ;;  %s5514_s4 = inlined_call_operand.vmem [shape: f32[1,64], index: 4, kind: input, shape index: {}]   ;;  %s5515_s5 = inlined_call_operand.vmem [shape: f32[1,64], index: 5, kind: input, shape index: {}]   ;;  %s5516_s6 = inlined_call_operand.vmem [shape: bf16[2,16,16,64], index: 6, kind: output, shape index: {}]  }
   0x1   :  { %s4460_s23 = smov 0  }
   0x2 LB: > { %s28_s24 = sadd.s32 1, %s4415_s22  ;;  %p3324_p0 = scmp.ge.s32.totalorder %s4419_s23, 1  ;;  %s4419_s23 = sphi %s4460_s23, %s16_s23   ;;  %s4415_s22 = sphi %s4458_s22, %s5578_s22   ;;  %s4411_s21 = sphi %s4456_s21, %s5577_s21  }
   0x3   : > { %p30_p1 = scmp.ge.s32.totalorder %s28_s24, 2  ;;  %p298_p2 = scmp.lt.s32.totalorder %s4419_s23, 3 }
   0x5   : > { %s5580_s24 = smov (%p30_p1, %s28_s24), 0  ;;  %p299_p3 = pnand %p3324_p0, %p298_p2 }
   0x7   : > { %302 = sbr.rel (%p299_p3) target bundleno = 543 (0x21f), region = 44 }
   0xe   : > { %vm915_vm0 = vcmask 1041408   ;;  %v4477_v0 = vld [vmem:[%s5513_s3 + $0x8] sm:$0x3]  ;;  %v3333_v1 = vld [vmem:[%s5513_s3 + $0x2] sm:$0x3]  ;;  %p365_p4 = scmp.lt.s32.totalorder %s4411_s21, 1 }
   0xf   : > { %4367 = vmatprep.subr.msk.bf16.mxu0 %vm915_vm0, %v4477_v0  ;;  %4363 = vmatprep.subr.msk.bf16.mxu1 %vm915_vm0, %v3333_v1  ;;  %v4487_v2 = vsel %vm915_vm0, %v4477_v0, 0  ;;  %v917_v3 = vsel %vm915_vm0, %v3333_v1, 0  ;;  %v702_v4 = vld [vmem:[%s5513_s3] sm:$0x3]  ;;  %v3417_v5 = vld [vmem:[%s5513_s3 + $0xa] sm:$0x3] }
  0x10   : > { %5543 = vst [vmem:[#allocation2_spill] sm:$0xff] %v4487_v2  ;;  %3936 = vmatpush3.bf16.msra.mxu0 %v4487_v2  ;;  %3800 = vmatpush3.bf16.msra.mxu1 %v917_v3  ;;  %s5582_s21 = smov (!%p365_p4, %s4411_s21), 1  ;;  %vm541_vm1 = vcmask 1040384   ;;  %vm735_vm2 = vcmask 1046528   ;;  %vm866_vm3 = vcmask 31744   ;;  %v1129_v43 = vsel %vm915_vm0, %v702_v4, 0 }
  0x11   : > { %4364 = vmatprep.subr.msk.bf16.mxu1 %vm915_vm0, %v702_v4  ;;  %4369 = vmatprep.subr.msk.bf16.mxu0 %vm915_vm0, %v3417_v5  ;;  %s4499_s9 = sshll.u32 %s5582_s21, 7  ;;  %v3434_v35 = vld [vmem:[%s5513_s3 + $0xc] sm:$0x3]  ;;  %v2094_v46 = vsel %vm915_vm0, %v3417_v5, 0  ;;  %vm1292_vm4 = vcmask 1045504   ;;  %vm3149_vm5 = vcmask 519168  }
  0x12   : > { %s4505_s12 = scalar_lea.vmem %s5510_s0, %s4499_s9  ;;  %s387_s15 = scalar_lea.vmem %s5511_s1, %s4499_s9  ;;  %v4550_v47 = vsel %vm915_vm0, %v3434_v35, 0 }
  0x13   : > { %v3559_v6 = vld [vmem:[%s4505_s12] sm:$0xff]   ;;  %v3631_v7 = vld [vmem:[%s4505_s12 + $0x8] sm:$0xff]   ;;  %v3632_v8 = vld [vmem:[%s4505_s12 + $0x10] sm:$0xff]   ;;  %s3524_s29 = sadd.s32 120, %s4499_s9  ;;  %s5371_s16 = scalar_lea.vmem %s5516_s6, %s4499_s9 }
  0x14   : > { %v3560_v9 = vunpack.c.l.bf16 %v3559_v6  ;;  %v3561_v10 = vunpack.c.h.bf16 %v3559_v6  ;;  %v3564_v11 = vunpack.c.l.bf16 %v3631_v7  ;;  %v3565_v12 = vunpack.c.h.bf16 %v3631_v7  ;;  %v3623_v13 = vld [vmem:[%s387_s15] sm:$0xff]   ;;  %v3633_v60 = vld [vmem:[%s4505_s12 + $0x18] sm:$0xff]   ;;  %v3635_v4 = vld [vmem:[%s4505_s12 + $0x28] sm:$0xff]   ;;  %s404_s8 = scalar_lea.vmem %s5512_s2, %s3524_s29 }
  0x15   : > { %v3624_v14 = vunpack.c.l.bf16 %v3623_v13  ;;  %v3625_v15 = vunpack.c.h.bf16 %v3623_v13  ;;  %v3568_v16 = vunpack.c.l.bf16 %v3632_v8  ;;  %v3569_v17 = vunpack.c.h.bf16 %v3632_v8  ;;  %v3634_v61 = vld [vmem:[%s4505_s12 + $0x20] sm:$0xff]   ;;  %v3636_v13 = vld [vmem:[%s4505_s12 + $0x30] sm:$0xff]  }
  0x16   : > { %v545_v18 = vrot.slane %v3560_v9, 7  ;;  %v546_v19 = vrot.slane %v3561_v10, 7  ;;  %v548_v20 = vrot.slane %v3564_v11, 7  ;;  %v549_v21 = vrot.slane %v3565_v12, 7 }
  0x17   : > { %v496_v22 = vmul.f32 0.0, %v3624_v14  ;;  %v497_v23 = vmul.f32 0.0, %v3625_v15  ;;  %v551_v33 = vrot.slane %v3568_v16, 7  ;;  %v552_v34 = vrot.slane %v3569_v17, 7 }
  0x18   : > { %v4515_v24 = vsel %vm541_vm1, %v545_v18, %v546_v19  ;;  %v4518_v25 = vsel %vm541_vm1, 0.0, %v545_v18  ;;  %v4521_v26 = vsel %vm541_vm1, %v546_v19, 0.0  ;;  %v4524_v27 = vsel %vm541_vm1, %v548_v20, %v549_v21 }
  0x19   : > { %v4528_v28 = vpack.c.bf16 %v4515_v24, %v4518_v25  ;;  %v741_v29 = vrot.slane %v4518_v25, 1  ;;  %v742_v30 = vrot.slane %v4515_v24, 1  ;;  %v744_v31 = vrot.slane %v4521_v26, 1 }
  0x1a   : > { %v4534_v32 = vsel %vm541_vm1, 0.0, %v548_v20  ;;  %v4542_v38 = vsel %vm541_vm1, %v549_v21, 0.0  ;;  %v747_v41 = vrot.slane %v4524_v27, 1  ;;  %v542_v44 = vrot.slane %v496_v22, 7  ;;  %v4601_v22 = vld [vmem:[%s5513_s3 + $0x4] sm:$0x3] }
  0x1b   : > { %v743_v36 = vsel %vm735_vm2, %v741_v29, %v742_v30  ;;  %v745_v37 = vsel %vm735_vm2, %v742_v30, %v744_v31  ;;  %v746_v39 = vrot.slane %v4534_v32, 1  ;;  %v749_v42 = vrot.slane %v4542_v38, 1 }
  0x1c   : > { %v849_v40 = vpack.c.bf16 %v745_v37, %v743_v36  ;;  %v543_v45 = vrot.slane %v497_v23, 7  ;;  %v4556_v50 = vsel %vm541_vm1, %v551_v33, %v552_v34  ;;  %v4559_v51 = vsel %vm541_vm1, 0.0, %v551_v33 }
  0x1d   : > { %v748_v48 = vsel %vm735_vm2, %v746_v39, %v747_v41  ;;  %v750_v49 = vsel %vm735_vm2, %v747_v41, %v749_v42  ;;  %v4567_v54 = vsel %vm541_vm1, 0.0, %v542_v44  ;;  %v1298_v56 = vrot.slane %v4518_v25, 2 }
  0x1e   : > { %3937 = vmatprep.mubr.msk.bf16.mxu0 %vm866_vm3, %v849_v40  ;;  %v4561_v52 = vpack.c.bf16 %v750_v49, %v748_v48  ;;  %v4564_v53 = vsel %vm541_vm1, %v542_v44, %v543_v45  ;;  %v4570_v55 = vsel %vm541_vm1, %v543_v45, 0.0  ;;  %v736_v57 = vrot.slane %v4567_v54, 1 }
  0x1f   : > { %v737_v58 = vrot.slane %v4564_v53, 1  ;;  %v739_v59 = vrot.slane %v4570_v55, 1  ;;  %v1299_v62 = vrot.slane %v4515_v24, 2  ;;  %v1301_v63 = vrot.slane %v4521_v26, 2  ;;  %v3639_v24 = vld [vmem:[%s4505_s12 + $0x48] sm:$0xff]  }
  0x20   : > { %5544 = vst [vmem:[#allocation3_spill] sm:$0xff] %v4561_v52  ;;  %3938 = vmatmul.mubr.msk.bf16.vlgmr.msra.gmra.mrb[0].mxu0 %vm866_vm3, %v4561_v52  ;;  %v4583_v1 = vsel %vm541_vm1, %v552_v34, 0.0  ;;  %v751_v3 = vrot.slane %v4559_v51, 1  ;;  %v752_v7 = vrot.slane %v4556_v50, 1  ;;  %v3572_v10 = vunpack.c.l.bf16 %v3633_v60 }
  0x21   : > { %v738_v5 = vsel %vm735_vm2, %v736_v57, %v737_v58  ;;  %v740_v6 = vsel %vm735_vm2, %v737_v58, %v739_v59  ;;  %3970 = vmatpush3.bf16.msra.mxu0 %v2094_v46  ;;  %v754_v8 = vrot.slane %v4583_v1, 1  ;;  %v3573_v11 = vunpack.c.h.bf16 %v3633_v60  ;;  %v3637_v58 = vld [vmem:[%s4505_s12 + $0x38] sm:$0xff]  }
  0x22   : > { %v848_v9 = vpack.c.bf16 %v740_v6, %v738_v5  ;;  %v3576_v12 = vunpack.c.l.bf16 %v3634_v61  ;;  %4370 = vmatprep.subr.msk.bf16.mxu0 %vm915_vm0, %v3434_v35  ;;  %v753_v14 = vsel %vm735_vm2, %v751_v3, %v752_v7  ;;  %v3577_v16 = vunpack.c.h.bf16 %v3634_v61 }
  0x23   : > { %v755_v15 = vsel %vm735_vm2, %v752_v7, %v754_v8  ;;  %v3580_v17 = vunpack.c.l.bf16 %v3635_v4  ;;  %v554_v19 = vrot.slane %v3572_v10, 7  ;;  %v555_v20 = vrot.slane %v3573_v11, 7 }
  0x24   : > { %3801 = vmatprep.mubr.msk.bf16.mxu1 %vm866_vm3, %v848_v9  ;;  %v4596_v18 = vpack.c.bf16 %v755_v15, %v753_v14  ;;  %v557_v21 = vrot.slane %v3576_v12, 7  ;;  %v558_v23 = vrot.slane %v3577_v16, 7  ;;  %v3581_v29 = vunpack.c.h.bf16 %v3635_v4 }
  0x25   : > { %3802 = vmatmul.mubr.msk.bf16.vlgmr.msra.gmra.mrb[0].mxu1 %vm866_vm3, %v849_v40  ;;  %v560_v30 = vrot.slane %v3580_v17, 7  ;;  %v3584_v31 = vunpack.c.l.bf16 %v3636_v13  ;;  %v4607_v33 = vsel %vm541_vm1, %v554_v19, %v555_v20  ;;  %v4610_v34 = vsel %vm541_vm1, 0.0, %v554_v19 }
  0x26   : > { %5545 = vst [vmem:[#allocation4_spill] sm:$0xff] %v4596_v18  ;;  %3834 = vmatpush3.bf16.msra.mxu1 %v1129_v43  ;;  %3941 = vmatprep.mubr.msk.bf16.mxu0 %vm866_vm3, %v4596_v18  ;;  %v4613_v35 = vsel %vm541_vm1, %v555_v20, 0.0  ;;  %v4616_v36 = vsel %vm541_vm1, 0.0, %v557_v21  ;;  %v756_v37 = vrot.slane %v4610_v34, 1  ;;  %v757_v39 = vrot.slane %v4607_v33, 1 }
  0x27   : > { %v759_v40 = vrot.slane %v4613_v35, 1  ;;  %3805 = vmatprep.mubr.msk.bf16.mxu1 %vm866_vm3, %v4561_v52  ;;  %v4624_v41 = vsel %vm541_vm1, %v557_v21, %v558_v23  ;;  %4365 = vmatprep.subr.msk.bf16.mxu1 %vm915_vm0, %v4601_v22  ;;  %v4629_v42 = vsel %vm541_vm1, %v558_v23, 0.0  ;;  %v761_v43 = vrot.slane %v4616_v36, 1 }
  0x28   : > { %v762_v44 = vrot.slane %v4624_v41, 1  ;;  %v561_v45 = vrot.slane %v3581_v29, 7  ;;  %v758_v46 = vsel %vm735_vm2, %v756_v37, %v757_v39  ;;  %v764_v49 = vrot.slane %v4629_v42, 1 }
  0x29   : > { %v760_v48 = vsel %vm735_vm2, %v757_v39, %v759_v40  ;;  %v4637_v57 = vsel %vm541_vm1, 0.0, %v560_v30  ;;  %v3585_v9 = vunpack.c.h.bf16 %v3636_v13  ;;  %v563_v10 = vrot.slane %v3584_v31, 7 }
  0x2a   : > { %v4640_v59 = vpack.c.bf16 %v760_v48, %v758_v46  ;;  %v763_v60 = vsel %vm735_vm2, %v761_v43, %v762_v44  ;;  %v4644_v61 = vsel %vm541_vm1, %v560_v30, %v561_v45  ;;  %v4647_v3 = vsel %vm541_vm1, %v561_v45, 0.0 }
  0x2b   : > { %v765_v4 = vsel %vm735_vm2, %v762_v44, %v764_v49  ;;  %v766_v5 = vrot.slane %v4637_v57, 1  ;;  %v767_v6 = vrot.slane %v4644_v61, 1  ;;  %v769_v7 = vrot.slane %v4647_v3, 1 }
  0x2c   : > { %5546 = vst [vmem:[#allocation5_spill] sm:$0xff] %v4640_v59  ;;  %3942 = vmatmul.mubr.msk.bf16.gmra.mrb[4].mxu0 %vm866_vm3, %v4640_v59  ;;  %v4655_v8 = vpack.c.bf16 %v765_v4, %v763_v60  ;;  %v3588_v11 = vunpack.c.l.bf16 %v3637_v58  ;;  %v1303_v12 = vrot.slane %v4534_v32, 2  ;;  %v3589_v16 = vunpack.c.h.bf16 %v3637_v58 }
  0x2d   : > { %3806 = vmatmul.mubr.msk.bf16.gmra.mrb[4].mxu1 %vm866_vm3, %v4596_v18  ;;  %v768_v14 = vsel %vm735_vm2, %v766_v5, %v767_v6  ;;  %v770_v15 = vsel %vm735_vm2, %v767_v6, %v769_v7  ;;  %v1304_v17 = vrot.slane %v4524_v27, 2  ;;  %v564_v13 = vrot.slane %v3585_v9, 7  ;;  %v3644_v18 = vld [vmem:[%s4505_s12 + $0x70] sm:$0xff]  }
  0x2e   : > { %5547 = vst [vmem:[#allocation6_spill] sm:$0xff] %v4655_v8  ;;  %3945 = vmatprep.mubr.msk.bf16.mxu0 %vm866_vm3, %v4655_v8  ;;  %3809 = vmatprep.mubr.msk.bf16.mxu1 %vm866_vm3, %v4640_v59  ;;  %v4668_v19 = vsel %vm541_vm1, 0.0, %v563_v10  ;;  %v566_v20 = vrot.slane %v3588_v11, 7  ;;  %v1306_v21 = vrot.slane %v4542_v38, 2  ;;  %v567_v29 = vrot.slane %v3589_v16, 7  ;;  %v3638_v38 = vld [vmem:[%s4505_s12 + $0x40] sm:$0xff]  }
  0x2f   : > { %v771_v23 = vrot.slane %v4668_v19, 1  ;;  %v1300_v30 = vsel %vm1292_vm4, %v1298_v56, %v1299_v62  ;;  %v4677_v31 = vpack.c.bf16 %v770_v15, %v768_v14  ;;  %v4680_v37 = vsel %vm541_vm1, %v563_v10, %v564_v13 }
  0x30   : > { %v4683_v39 = vsel %vm541_vm1, %v564_v13, 0.0  ;;  %v4686_v40 = vsel %vm541_vm1, 0.0, %v566_v20  ;;  %v772_v43 = vrot.slane %v4680_v37, 1  ;;  %v4692_v25 = vsel %vm541_vm1, %v566_v20, %v567_v29 }
  0x31   : > { %5548 = vst [vmem:[#allocation7_spill] sm:$0xff] %v4677_v31  ;;  %v774_v44 = vrot.slane %v4683_v39, 1  ;;  %v4695_v56 = vsel %vm541_vm1, %v567_v29, 0.0  ;;  %v776_v45 = vrot.slane %v4686_v40, 1  ;;  %v777_v46 = vrot.slane %v4692_v25, 1 }
  0x32   : > { %v779_v48 = vrot.slane %v4695_v56, 1  ;;  %v1302_v49 = vsel %vm1292_vm4, %v1299_v62, %v1301_v63  ;;  %v773_v58 = vsel %vm735_vm2, %v771_v23, %v772_v43  ;;  %v1305_v4 = vsel %vm1292_vm4, %v1303_v12, %v1304_v17  ;;  %v3640_v23 = vld [vmem:[%s4505_s12 + $0x50] sm:$0xff]  }
  0x33   : > { %v775_v60 = vsel %vm735_vm2, %v772_v43, %v774_v44  ;;  %v3592_v5 = vunpack.c.l.bf16 %v3638_v38  ;;  %v778_v7 = vsel %vm735_vm2, %v776_v45, %v777_v46  ;;  %v3593_v9 = vunpack.c.h.bf16 %v3638_v38 }
  0x34   : > { %3946 = vmatmul.mubr.msk.bf16.gmra.mrb[8].mxu0 %vm866_vm3, %v4677_v31  ;;  %v4710_v6 = vpack.c.bf16 %v775_v60, %v773_v58  ;;  %v780_v26 = vsel %vm735_vm2, %v777_v46, %v779_v48  ;;  %v1307_v62 = vsel %vm1292_vm4, %v1304_v17, %v1306_v21  ;;  %v1308_v10 = vrot.slane %v4559_v51, 2 }
  0x35   : > { %3810 = vmatmul.mubr.msk.bf16.gmra.mrb[8].mxu1 %vm866_vm3, %v4655_v8  ;;  %v569_v63 = vrot.slane %v3592_v5, 7  ;;  %v1309_v11 = vrot.slane %v4556_v50, 2  ;;  %v4722_v12 = vpack.c.bf16 %v780_v26, %v778_v7  ;;  %v570_v14 = vrot.slane %v3593_v9, 7 }
  0x36   : > { %5549 = vst [vmem:[#allocation8_spill] sm:$0xff] %v4710_v6  ;;  %3949 = vmatprep.mubr.msk.bf16.mxu0 %vm866_vm3, %v4710_v6  ;;  %3813 = vmatprep.mubr.msk.bf16.mxu1 %vm866_vm3, %v4677_v31  ;;  %v1311_v15 = vrot.slane %v4583_v1, 2  ;;  %v1313_v16 = vrot.slane %v4610_v34, 2  ;;  %v1314_v20 = vrot.slane %v4607_v33, 2  ;;  %v3596_v21 = vunpack.c.l.bf16 %v3639_v24 }
  0x37   : > { %5550 = vst [vmem:[#allocation9_spill] sm:$0xff] %v4722_v12  ;;  %v4729_v17 = vsel %vm541_vm1, 0.0, %v569_v63  ;;  %v1310_v13 = vsel %vm1292_vm4, %v1308_v10, %v1309_v11  ;;  %v4735_v29 = vsel %vm541_vm1, %v569_v63, %v570_v14  ;;  %v4738_v38 = vsel %vm541_vm1, %v570_v14, 0.0 }
  0x38   : > { %v781_v43 = vrot.slane %v4729_v17, 1  ;;  %v1312_v1 = vsel %vm1292_vm4, %v1309_v11, %v1311_v15  ;;  %v4742_v44 = vpack.c.bf16 %v1302_v49, %v1300_v30  ;;  %v4744_v45 = vpack.c.bf16 %v1307_v62, %v1305_v4 }
  0x39   : > { %v782_v46 = vrot.slane %v4735_v29, 1  ;;  %v784_v48 = vrot.slane %v4738_v38, 1  ;;  %v1316_v58 = vrot.slane %v4613_v35, 2  ;;  %v3597_v60 = vunpack.c.h.bf16 %v3639_v24 }
  0x3a   : > { %v572_v5 = vrot.slane %v3596_v21, 7  ;;  %v3600_v7 = vunpack.c.l.bf16 %v3640_v23  ;;  %v4750_v9 = vpack.c.bf16 %v1312_v1, %v1310_v13  ;;  %v1315_v63 = vsel %vm1292_vm4, %v1313_v16, %v1314_v20 }
  0x3b   : > { %v783_v26 = vsel %vm735_vm2, %v781_v43, %v782_v46  ;;  %v3601_v10 = vunpack.c.h.bf16 %v3640_v23  ;;  %v785_v30 = vsel %vm735_vm2, %v782_v46, %v784_v48  ;;  %v573_v49 = vrot.slane %v3597_v60, 7 }
  0x3c   : > { %3950 = vmatmul.mubr.msk.bf16.gmra.mrb[12].mxu0 %vm866_vm3, %v4722_v12  ;;  %v4757_v4 = vsel %vm541_vm1, 0.0, %v572_v5  ;;  %v575_v35 = vrot.slane %v3600_v7, 7  ;;  %v1318_v11 = vrot.slane %v4616_v36, 2  ;;  %v1319_v14 = vrot.slane %v4624_v41, 2 }
  0x3d   : > { %3814 = vmatmul.mubr.msk.bf16.gmra.mrb[12].mxu1 %vm866_vm3, %v4710_v6  ;;  %3971 = vmatprep.mubr.msk.bf16.mxu0 %vm866_vm3, %v4742_v44  ;;  %v786_v24 = vrot.slane %v4757_v4, 1  ;;  %v576_v62 = vrot.slane %v3601_v10, 7  ;;  %v4769_v15 = vsel %vm541_vm1, %v572_v5, %v573_v49  ;;  %v4772_v16 = vsel %vm541_vm1, %v573_v49, 0.0  ;;  %v3641_v10 = vld [vmem:[%s4505_s12 + $0x58] sm:$0xff]  }
  0x3e   : > { %3817 = vmatprep.mubr.msk.bf16.mxu1 %vm866_vm3, %v4722_v12  ;;  %v4775_v13 = vsel %vm541_vm1, 0.0, %v575_v35  ;;  %v1321_v21 = vrot.slane %v4629_v42, 2  ;;  %v787_v23 = vrot.slane %v4769_v15, 1  ;;  %v789_v43 = vrot.slane %v4772_v16, 1  ;;  %v3642_v12 = vld [vmem:[%s4505_s12 + $0x60] sm:$0xff]  }
  0x3f   : > { %v4781_v1 = vsel %vm541_vm1, %v575_v35, %v576_v62  ;;  %v4784_v46 = vsel %vm541_vm1, %v576_v62, 0.0  ;;  %v1317_v48 = vsel %vm1292_vm4, %v1314_v20, %v1316_v58  ;;  %v791_v60 = vrot.slane %v4775_v13, 1 }
  0x40   : > { %v792_v5 = vrot.slane %v4781_v1, 1  ;;  %v794_v7 = vrot.slane %v4784_v46, 1  ;;  %v4791_v42 = vpack.c.bf16 %v785_v30, %v783_v26  ;;  %v788_v49 = vsel %vm735_vm2, %v786_v24, %v787_v23 }
  0x41   : > { %v790_v2 = vsel %vm735_vm2, %v787_v23, %v789_v43  ;;  %v1320_v35 = vsel %vm1292_vm4, %v1318_v11, %v1319_v14  ;;  %v1322_v6 = vsel %vm1292_vm4, %v1319_v14, %v1321_v21  ;;  %v1323_v31 = vrot.slane %v4637_v57, 2  ;;  %v4811_v43 = vld [vmem:[%s5513_s3 + $0xe] sm:$0x3] }
  0x42   : > { %5551 = vst [vmem:[#allocation10_spill] sm:$0xff] %v4791_v42  ;;  %v4797_v62 = vpack.c.bf16 %v790_v2, %v788_v49  ;;  %v793_v20 = vsel %vm735_vm2, %v791_v60, %v792_v5  ;;  %v795_v58 = vsel %vm735_vm2, %v792_v5, %v794_v7  ;;  %v1324_v26 = vrot.slane %v4644_v61, 2 }
  0x43   : > { %v3604_v30 = vunpack.c.l.bf16 %v3641_v10  ;;  %v4806_v24 = vpack.c.bf16 %v1317_v48, %v1315_v63  ;;  %v3605_v11 = vunpack.c.h.bf16 %v3641_v10  ;;  %v3608_v23 = vunpack.c.l.bf16 %v3642_v12 }
  0x44   : > { %5552 = vst [vmem:[#allocation11_spill] sm:$0xff] %v4797_v62  ;;  %3972 = vmatmul.mubr.msk.bf16.vlgmr.msra.gmra.mrb[0].mxu0 %vm866_vm3, %v4744_v45  ;;  %v3609_v2 = vunpack.c.h.bf16 %v3642_v12  ;;  %v4816_v14 = vpack.c.bf16 %v795_v58, %v793_v20  ;;  %v4818_v21 = vpack.c.bf16 %v1322_v6, %v1320_v35  ;;  %v1326_v63 = vrot.slane %v4647_v3, 2 }
  0x45   : > { %5553 = vst [vmem:[#allocation12_spill] sm:$0xff] %v4806_v24  ;;  %3818 = vmatmul.mubr.msk.bf16.gmra.mrb[16].mxu1 %vm866_vm3, %v4791_v42  ;;  %4004 = vmatpush3.bf16.msra.mxu0 %v4550_v47  ;;  %v578_v48 = vrot.slane %v3604_v30, 7  ;;  %v579_v12 = vrot.slane %v3605_v11, 7  ;;  %v581_v60 = vrot.slane %v3608_v23, 7  ;;  %v1328_v7 = vrot.slane %v4668_v19, 2 }
  0x46   : > { %5554 = vst [vmem:[#allocation13_spill] sm:$0xff] %v4816_v14  ;;  %5555 = vst [vmem:[#allocation14_spill] sm:$0xff] %v4818_v21  ;;  %3975 = vmatprep.mubr.msk.bf16.mxu0 %vm866_vm3, %v4750_v9  ;;  %3821 = vmatprep.mubr.msk.bf16.mxu1 %vm866_vm3, %v4797_v62  ;;  %v582_v5 = vrot.slane %v3609_v2, 7  ;;  %v1325_v47 = vsel %vm1292_vm4, %v1323_v31, %v1324_v26  ;;  %v1329_v3 = vrot.slane %v4680_v37, 2  ;;  %v1331_v6 = vrot.slane %v4683_v39, 2  ;;  %v3643_v62 = vld [vmem:[%s4505_s12 + $0x68] sm:$0xff]  }
  0x47   : > { %v4828_v10 = vsel %vm541_vm1, 0.0, %v578_v48  ;;  %4371 = vmatprep.subr.msk.bf16.mxu0 %vm915_vm0, %v4811_v43  ;;  %v4835_v49 = vsel %vm541_vm1, %v578_v48, %v579_v12  ;;  %v4838_v35 = vsel %vm541_vm1, %v579_v12, 0.0  ;;  %v4847_v39 = vsel %vm541_vm1, 0.0, %v581_v60 }
  0x48   : > { %v796_v31 = vrot.slane %v4828_v10, 1  ;;  %v4842_v20 = vsel %vm541_vm1, %v581_v60, %v582_v5  ;;  %v797_v58 = vrot.slane %v4835_v49, 1  ;;  %v799_v30 = vrot.slane %v4838_v35, 1 }
  0x49   : > { %v4850_v11 = vsel %vm541_vm1, %v582_v5, 0.0  ;;  %v1327_v23 = vsel %vm1292_vm4, %v1324_v26, %v1326_v63  ;;  %v801_v2 = vrot.slane %v4847_v39, 1  ;;  %v802_v48 = vrot.slane %v4842_v20, 1 }
  0x4a   : > { %v804_v12 = vrot.slane %v4850_v11, 1  ;;  %v798_v42 = vsel %vm735_vm2, %v796_v31, %v797_v58  ;;  %v800_v8 = vsel %vm735_vm2, %v797_v58, %v799_v30  ;;  %v1330_v59 = vsel %vm1292_vm4, %v1328_v7, %v1329_v3 }
  0x4b   : > { %v1332_v60 = vsel %vm1292_vm4, %v1329_v3, %v1331_v6  ;;  %v4864_v26 = vpack.c.bf16 %v800_v8, %v798_v42  ;;  %v803_v63 = vsel %vm735_vm2, %v801_v2, %v802_v48  ;;  %v4872_v31 = vpack.c.bf16 %v1327_v23, %v1325_v47 }
  0x4c   : > { %3976 = vmatmul.mubr.msk.bf16.gmra.mrb[4].mxu0 %vm866_vm3, %v4806_v24  ;;  %v805_v5 = vsel %vm735_vm2, %v802_v48, %v804_v12  ;;  %v1333_v7 = vrot.slane %v4686_v40, 2  ;;  %v3612_v3 = vunpack.c.l.bf16 %v3643_v62  ;;  %v3613_v6 = vunpack.c.h.bf16 %v3643_v62 }
  0x4d   : > { %5556 = vst [vmem:[#allocation15_spill] sm:$0xff] %v4864_v26  ;;  %3822 = vmatmul.mubr.msk.bf16.gmra.mrb[20].mxu1 %vm866_vm3, %v4816_v14  ;;  %3979 = vmatprep.mubr.msk.bf16.mxu0 %vm866_vm3, %v4818_v21  ;;  %5557 = vst [vmem:[#allocation16_spill] sm:$0xff] %v4872_v31  ;;  %v4877_v8 = vpack.c.bf16 %v1332_v60, %v1330_v59  ;;  %v1334_v42 = vrot.slane %v4692_v25, 2  ;;  %v3616_v58 = vunpack.c.l.bf16 %v3644_v18  ;;  %v3617_v30 = vunpack.c.h.bf16 %v3644_v18 }
  0x4e   : > { %3825 = vmatprep.mubr.msk.bf16.mxu1 %vm866_vm3, %v4864_v26  ;;  %v4880_v2 = vpack.c.bf16 %v805_v5, %v803_v63  ;;  %v1336_v48 = vrot.slane %v4695_v56, 2  ;;  %v584_v12 = vrot.slane %v3612_v3, 7  ;;  %v585_v47 = vrot.slane %v3613_v6, 7 }
  0x4f   : > { %5558 = vst [vmem:[#allocation17_spill] sm:$0xff] %v4877_v8  ;;  %v587_v23 = vrot.slane %v3616_v58, 7  ;;  %v588_v14 = vrot.slane %v3617_v30, 7  ;;  %v1338_v52 = vrot.slane %v4729_v17, 2  ;;  %v1339_v62 = vrot.slane %v4735_v29, 2 }
  0x50   : > { %5559 = vst [vmem:[#allocation18_spill] sm:$0xff] %v4880_v2  ;;  %v4886_v26 = vsel %vm541_vm1, %v584_v12, %v585_v47  ;;  %v4889_v59 = vsel %vm541_vm1, 0.0, %v584_v12  ;;  %v4892_v18 = vsel %vm541_vm1, %v585_v47, 0.0  ;;  %v1341_v60 = vrot.slane %v4738_v38, 2 }
  0x51   : > { %v806_v56 = vrot.slane %v4889_v59, 1  ;;  %v807_v63 = vrot.slane %v4886_v26, 1  ;;  %v809_v5 = vrot.slane %v4892_v18, 1  ;;  %v4899_v3 = vsel %vm541_vm1, %v587_v23, %v588_v14 }
  0x52   : > { %v4902_v6 = vsel %vm541_vm1, 0.0, %v587_v23  ;;  %v4905_v58 = vsel %vm541_vm1, %v588_v14, 0.0  ;;  %v812_v30 = vrot.slane %v4899_v3, 1  ;;  %v1335_v14 = vsel %vm1292_vm4, %v1333_v7, %v1334_v42 }
  0x53   : > { %v808_v38 = vsel %vm735_vm2, %v806_v56, %v807_v63  ;;  %v810_v12 = vsel %vm735_vm2, %v807_v63, %v809_v5  ;;  %v811_v47 = vrot.slane %v4902_v6, 1  ;;  %v814_v21 = vrot.slane %v4905_v58, 1 }
  0x54   : > { %3980 = vmatmul.mubr.msk.bf16.gmra.mrb[8].mxu0 %vm866_vm3, %v4872_v31  ;;  %v1337_v23 = vsel %vm1292_vm4, %v1334_v42, %v1336_v48  ;;  %v4920_v24 = vpack.c.bf16 %v810_v12, %v808_v38  ;;  %v1340_v5 = vsel %vm1292_vm4, %v1338_v52, %v1339_v62  ;;  %v1342_v31 = vsel %vm1292_vm4, %v1339_v62, %v1341_v60 }
  0x55   : > { %3826 = vmatmul.mubr.msk.bf16.gmra.mrb[24].mxu1 %vm866_vm3, %v4880_v2  ;;  %3983 = vmatprep.mubr.msk.bf16.mxu0 %vm866_vm3, %v4877_v8  ;;  %v813_v56 = vsel %vm735_vm2, %v811_v47, %v812_v30  ;;  %v815_v63 = vsel %vm735_vm2, %v812_v30, %v814_v21  ;;  %v4928_v2 = vpack.c.bf16 %v1337_v23, %v1335_v14  ;;  %v1343_v8 = vrot.slane %v4757_v4, 2 }
  0x56   : > { %3829 = vmatprep.mubr.msk.bf16.mxu1 %vm866_vm3, %v4920_v24  ;;  %v1344_v7 = vrot.slane %v4769_v15, 2  ;;  %v1346_v42 = vrot.slane %v4772_v16, 2  ;;  %v4933_v48 = vpack.c.bf16 %v815_v63, %v813_v56  ;;  %v4935_v38 = vpack.c.bf16 %v1342_v31, %v1340_v5  ;;  %v3645_v63 = vld [vmem:[%s4505_s12 + $0x78] sm:$0xff]  }
  0x57   : > { %v4939_v52 = vpack.c.bf16 %v4524_v27, %v4534_v32  ;;  %v4943_v21 = vpack.c.bf16 %v4556_v50, %v4559_v51  ;;  %v686_v62 = vpack.c.bf16 %v4564_v53, %v4567_v54  ;;  %v1348_v60 = vrot.slane %v4775_v13, 2 }
  0x58   : > { %v1349_v30 = vrot.slane %v4781_v1, 2  ;;  %v1351_v16 = vrot.slane %v4784_v46, 2  ;;  %v1345_v31 = vsel %vm1292_vm4, %v1343_v8, %v1344_v7  ;;  %v1347_v27 = vsel %vm1292_vm4, %v1344_v7, %v1346_v42 }
  0x59   : > { %v4960_v32 = vpack.c.bf16 %v4607_v33, %v4610_v34  ;;  %v4964_v50 = vpack.c.bf16 %v4624_v41, %v4616_v36  ;;  %v1293_v51 = vrot.slane %v4567_v54, 2  ;;  %v1294_v46 = vrot.slane %v4564_v53, 2 }
  0x5a   : > { %v1350_v8 = vsel %vm1292_vm4, %v1348_v60, %v1349_v30  ;;  %v1352_v12 = vsel %vm1292_vm4, %v1349_v30, %v1351_v16  ;;  %v1296_v47 = vrot.slane %v4570_v55, 2  ;;  %v4972_v14 = vpack.c.bf16 %v1347_v27, %v1345_v31 }
  0x5b   : > { %v1353_v33 = vrot.slane %v4828_v10, 2  ;;  %v1354_v34 = vrot.slane %v4835_v49, 2  ;;  %v1356_v36 = vrot.slane %v4838_v35, 2  ;;  %v4979_v54 = vpack.c.bf16 %v4644_v61, %v4637_v57 }
  0x5c   : > { %3984 = vmatmul.mubr.msk.bf16.gmra.mrb[12].mxu0 %vm866_vm3, %v4928_v2  ;;  %v4983_v53 = vpack.c.bf16 %v4680_v37, %v4668_v19  ;;  %v4987_v41 = vpack.c.bf16 %v4692_v25, %v4686_v40  ;;  %v4989_v55 = vpack.c.bf16 %v1352_v12, %v1350_v8  ;;  %v1358_v23 = vrot.slane %v4847_v39, 2 }
  0x5d   : > { %3830 = vmatmul.mubr.msk.bf16.gmra.mrb[28].mxu1 %vm866_vm3, %v4933_v48  ;;  %3987 = vmatprep.mubr.msk.bf16.mxu0 %vm866_vm3, %v4935_v38  ;;  %v1359_v56 = vrot.slane %v4842_v20, 2  ;;  %v4996_v35 = vpack.c.bf16 %v4735_v29, %v4729_v17  ;;  %v1361_v57 = vrot.slane %v4850_v11, 2  ;;  %v5001_v61 = vpack.c.bf16 %v4769_v15, %v4757_v4 }
  0x5e   : > { %3835 = vmatprep.mubr.msk.bf16.mxu1 %vm866_vm3, %v686_v62  ;;  %v5005_v19 = vpack.c.bf16 %v4781_v1, %v4775_v13  ;;  %v5009_v37 = vpack.c.bf16 %v4835_v49, %v4828_v10  ;;  %v1472_v40 = vsel %vm915_vm0, %v4601_v22, 0  ;;  %v5015_v25 = vpack.c.bf16 %v4842_v20, %v4847_v39  ;;  %v5028_v22 = vld [vmem:[%s5513_s3 + $0x6] sm:$0x3] }
  0x5f   : > { %v1355_v17 = vsel %vm1292_vm4, %v1353_v33, %v1354_v34  ;;  %v1357_v29 = vsel %vm1292_vm4, %v1354_v34, %v1356_v36  ;;  %v3620_v4 = vunpack.c.l.bf16 %v3645_v63  ;;  %v5023_v15 = vpack.c.bf16 %v4886_v26, %v4889_v59 }
  0x60   : > { %v3621_v13 = vunpack.c.h.bf16 %v3645_v63  ;;  %v5036_v1 = vpack.c.bf16 %v4899_v3, %v4902_v6  ;;  %v5039_v10 = vsel %vm1292_vm4, %v1293_v51, %v1294_v46  ;;  %v5042_v49 = vsel %vm1292_vm4, %v1294_v46, %v1296_v47 }
  0x61   : > { %v1360_v20 = vsel %vm1292_vm4, %v1358_v23, %v1359_v56  ;;  %v1362_v39 = vsel %vm1292_vm4, %v1359_v56, %v1361_v57  ;;  %v1405_v11 = vpack.c.bf16 %v5042_v49, %v5039_v10  ;;  %v5052_v5 = vpack.c.bf16 %v1357_v29, %v1355_v17 }
  0x62   : > { %v1363_v7 = vrot.slane %v4889_v59, 2  ;;  %v1364_v42 = vrot.slane %v4886_v26, 2  ;;  %v5056_v62 = vpack.c.bf16 %v1362_v39, %v1360_v20  ;;  %v1366_v60 = vrot.slane %v4892_v18, 2  ;;  %v3468_v20 = vld [vmem:[%s5513_s3 + $0x10] sm:$0x3] }
  0x63   : > { %v590_v30 = vrot.slane %v3620_v4, 7  ;;  %v591_v16 = vrot.slane %v3621_v13, 7  ;;  %v1368_v31 = vrot.slane %v4902_v6, 2  ;;  %v1369_v27 = vrot.slane %v4899_v3, 2 }
  0x64   : > { %3988 = vmatmul.mubr.msk.bf16.gmra.mrb[16].mxu0 %vm866_vm3, %v4972_v14  ;;  %v1371_v51 = vrot.slane %v4905_v58, 2  ;;  %v1365_v26 = vsel %vm1292_vm4, %v1363_v7, %v1364_v42  ;;  %v1367_v59 = vsel %vm1292_vm4, %v1364_v42, %v1366_v60  ;;  %v2507_v13 = vsel %vm915_vm0, %v4811_v43, 0  ;;  %v3627_v43 = vld [vmem:[%s404_s8] sm:$0xff]  }
  0x65   : > { %3836 = vmatmul.mubr.msk.bf16.vlgmr.msra.gmra.mrb[0].mxu1 %vm866_vm3, %v4528_v28  ;;  %3991 = vmatprep.mubr.msk.bf16.mxu0 %vm866_vm3, %v4989_v55  ;;  %v5071_v18 = vsel %vm541_vm1, %v590_v30, %v591_v16  ;;  %v5074_v3 = vsel %vm541_vm1, 0.0, %v590_v30  ;;  %v1370_v6 = vsel %vm1292_vm4, %v1368_v31, %v1369_v27  ;;  %v684_v46 = vsel %vm541_vm1, %v591_v16, 0.0 }
  0x66   : > { %3868 = vmatpush3.bf16.msra.mxu1 %v1472_v40  ;;  %3839 = vmatprep.mubr.msk.bf16.mxu1 %vm866_vm3, %v4939_v52  ;;  %v1372_v58 = vsel %vm1292_vm4, %v1369_v27, %v1371_v51  ;;  %v5081_v8 = vpack.c.bf16 %v1367_v59, %v1365_v26  ;;  %v2080_v12 = vrot.slane %v5074_v3, 2  ;;  %v2081_v47 = vrot.slane %v5071_v18, 2  ;;  %v5561_v51 = vld [vmem:[#allocation14_spill] sm:$0xff] }
  0x67   : > { %4366 = vmatprep.subr.msk.bf16.mxu1 %vm915_vm0, %v5028_v22  ;;  %v5085_v33 = vpack.c.bf16 %v1372_v58, %v1370_v6  ;;  %v2083_v34 = vrot.slane %v684_v46, 2  ;;  %v1871_v56 = vrot.slane %v5074_v3, 1  ;;  %v1872_v63 = vrot.slane %v5071_v18, 1  ;;  %v5562_v6 = vld [vmem:[#allocation16_spill] sm:$0xff] }
  0x68   : > { %v2082_v36 = vsel %vm1292_vm4, %v2080_v12, %v2081_v47  ;;  %v1874_v57 = vrot.slane %v684_v46, 1  ;;  %v1674_v39 = vsel %vm915_vm0, %v5028_v22, 0  ;;  %v3628_v7 = vunpack.c.l.bf16 %v3627_v43  ;;  %v5563_v46 = vld [vmem:[#allocation17_spill] sm:$0xff]  ;;  %v5564_v12 = vld [vmem:[#allocation3_spill] sm:$0xff] }
  0x69   : > { %v2084_v23 = vsel %vm1292_vm4, %v2081_v47, %v2083_v34  ;;  %v1873_v40 = vsel %vm735_vm2, %v1871_v56, %v1872_v63  ;;  %v3629_v42 = vunpack.c.h.bf16 %v3627_v43  ;;  %v5181_v30 = vpack.c.bf16 %v5071_v18, %v5074_v3  ;;  %v5565_v34 = vld [vmem:[#allocation4_spill] sm:$0xff]  ;;  %v5568_v56 = vld [vmem:[#allocation7_spill] sm:$0xff]  ;;  %v5575_v43 = vld [vmem:[#allocation2_spill] sm:$0xff] }
  0x6a   : > { %v1875_v17 = vsel %vm735_vm2, %v1872_v63, %v1874_v57  ;;  %v5101_v29 = vpack.c.bf16 %v2084_v23, %v2082_v36  ;;  %v503_v10 = vmul.f32 0.0, %v3628_v7  ;;  %v2716_v47 = vsel %vm915_vm0, %v3468_v20, 0  ;;  %v5566_v36 = vld [vmem:[#allocation5_spill] sm:$0xff]  ;;  %v5567_v23 = vld [vmem:[#allocation6_spill] sm:$0xff]  ;;  %v5569_v63 = vld [vmem:[#allocation8_spill] sm:$0xff] }
  0x6b   : > { %v5103_v4 = vpack.c.bf16 %v1875_v17, %v1873_v40  ;;  %v504_v22 = vmul.f32 0.0, %v3629_v42  ;;  %v5570_v57 = vld [vmem:[#allocation9_spill] sm:$0xff]  ;;  %v5571_v40 = vld [vmem:[#allocation10_spill] sm:$0xff]  ;;  %v5572_v17 = vld [vmem:[#allocation11_spill] sm:$0xff] }
  0x6c   : > { %3992 = vmatmul.mubr.msk.bf16.gmra.mrb[20].mxu0 %vm866_vm3, %v5052_v5  ;;  %v593_v49 = vrot.slane %v503_v10, 7 }
  0x6d   : > { %3840 = vmatmul.mubr.msk.bf16.gmra.mrb[4].mxu1 %vm866_vm3, %v4943_v21  ;;  %3995 = vmatprep.mubr.msk.bf16.mxu0 %vm866_vm3, %v5056_v62 }
  0x6e   : > { %3843 = vmatprep.mubr.msk.bf16.mxu1 %vm866_vm3, %v4960_v32 }
  0x74   : > { %3996 = vmatmul.mubr.msk.bf16.gmra.mrb[24].mxu0 %vm866_vm3, %v5081_v8 }
  0x75   : > { %3844 = vmatmul.mubr.msk.bf16.gmra.mrb[8].mxu1 %vm866_vm3, %v4964_v50  ;;  %3999 = vmatprep.mubr.msk.bf16.mxu0 %vm866_vm3, %v5085_v33 }
  0x76   : > { %3847 = vmatprep.mubr.msk.bf16.mxu1 %vm866_vm3, %v4979_v54 }
  0x7c   : > { %4000 = vmatmul.mubr.msk.bf16.gmra.mrb[28].mxu0 %vm866_vm3, %v5101_v29 }
  0x7d   : > { %3848 = vmatmul.mubr.msk.bf16.gmra.mrb[12].mxu1 %vm866_vm3, %v4983_v53  ;;  %4005 = vmatprep.mubr.msk.bf16.mxu0 %vm866_vm3, %v4939_v52 }
  0x7e   : > { %3851 = vmatprep.mubr.msk.bf16.mxu1 %vm866_vm3, %v4987_v41 }
  0x84   : > { %4006 = vmatmul.mubr.msk.bf16.vlgmr.msra.gmra.mrb[0].mxu0 %vm866_vm3, %v4943_v21 }
  0x85   : > { %3852 = vmatmul.mubr.msk.bf16.gmra.mrb[16].mxu1 %vm866_vm3, %v4996_v35  ;;  %4038 = vmatpush3.bf16.msra.mxu0 %v2507_v13  ;;  %v5573_v13 = vld [vmem:[#allocation13_spill] sm:$0xff] }
  0x86   : > { %4009 = vmatprep.mubr.msk.bf16.mxu0 %vm866_vm3, %v4960_v32  ;;  %3855 = vmatprep.mubr.msk.bf16.mxu1 %vm866_vm3, %v5001_v61 }
  0x87   : > { %4372 = vmatprep.subr.msk.bf16.mxu0 %vm915_vm0, %v3468_v20  ;;  %v5574_v20 = vld [vmem:[#allocation15_spill] sm:$0xff] }
  0x8c   : > { %4010 = vmatmul.mubr.msk.bf16.gmra.mrb[4].mxu0 %vm866_vm3, %v4964_v50 }
  0x8d   : > { %3856 = vmatmul.mubr.msk.bf16.gmra.mrb[20].mxu1 %vm866_vm3, %v5005_v19  ;;  %4013 = vmatprep.mubr.msk.bf16.mxu0 %vm866_vm3, %v4979_v54 }
  0x8e   : > { %3859 = vmatprep.mubr.msk.bf16.mxu1 %vm866_vm3, %v5009_v37 }
  0x94   : > { %4014 = vmatmul.mubr.msk.bf16.gmra.mrb[8].mxu0 %vm866_vm3, %v4983_v53 }
  0x95   : > { %3860 = vmatmul.mubr.msk.bf16.gmra.mrb[24].mxu1 %vm866_vm3, %v5015_v25  ;;  %4017 = vmatprep.mubr.msk.bf16.mxu0 %vm866_vm3, %v4987_v41 }
  0x96   : > { %3863 = vmatprep.mubr.msk.bf16.mxu1 %vm866_vm3, %v5023_v15 }
  0x9c   : > { %4018 = vmatmul.mubr.msk.bf16.gmra.mrb[12].mxu0 %vm866_vm3, %v4996_v35 }
  0x9d   : > { %3864 = vmatmul.mubr.msk.bf16.gmra.mrb[28].mxu1 %vm866_vm3, %v5036_v1  ;;  %4021 = vmatprep.mubr.msk.bf16.mxu0 %vm866_vm3, %v5001_v61 }
  0x9e   : > { %3869 = vmatprep.mubr.msk.bf16.mxu1 %vm866_vm3, %v1405_v11  ;;  %v594_v11 = vrot.slane %v504_v22, 7 }
  0xa0   : > { %v595_v60 = vsel %vm541_vm1, %v593_v49, %v594_v11  ;;  %v685_v27 = vsel %vm541_vm1, %v594_v11, 0.0 }
  0xa1   : > { %v2703_v31 = vrot.slane %v595_v60, 2  ;;  %v2705_v59 = vrot.slane %v685_v27, 2  ;;  %v2496_v7 = vrot.slane %v685_v27, 1 }
  0xa3   : > { %v5196_v18 = vsel %vm1292_vm4, %v2703_v31, %v2705_v59 }
  0xa4   : > { %4022 = vmatmul.mubr.msk.bf16.gmra.mrb[16].mxu0 %vm866_vm3, %v5005_v19 }
  0xa5   : > { %3870 = vmatmul.mubr.msk.bf16.vlgmr.msra.gmra.mrb[0].mxu1 %vm866_vm3, %v4742_v44  ;;  %4025 = vmatprep.mubr.msk.bf16.mxu0 %vm866_vm3, %v5009_v37  ;;  %v5560_v44 = vld [vmem:[#allocation12_spill] sm:$0xff] }
  0xa6   : > { %3902 = vmatpush3.bf16.msra.mxu1 %v1674_v39  ;;  %3873 = vmatprep.mubr.msk.bf16.mxu1 %vm866_vm3, %v4744_v45  ;;  %v5576_v39 = vld [vmem:[#allocation18_spill] sm:$0xff] }
  0xa7   : > { %4368 = vmatprep.subr.msk.bf16.mxu1 %vm915_vm0, %v4477_v0  ;;  %v667_v0 = vsel %vm541_vm1, 0.0, %v593_v49 }
  0xa8   : > { %v2702_v16 = vrot.slane %v667_v0, 2  ;;  %v2289_v3 = vpack.c.bf16 %v595_v60, %v667_v0 }
  0xaa   : > { %v5191_v26 = vsel %vm1292_vm4, %v2702_v16, %v2703_v31 }
  0xab   : > { %v2709_v58 = vpack.c.bf16 %v5196_v18, %v5191_v26 }
  0xac   : > { %4026 = vmatmul.mubr.msk.bf16.gmra.mrb[20].mxu0 %vm866_vm3, %v5015_v25 }
  0xad   : > { %3874 = vmatmul.mubr.msk.bf16.gmra.mrb[4].mxu1 %vm866_vm3, %v4750_v9  ;;  %4029 = vmatprep.mubr.msk.bf16.mxu0 %vm866_vm3, %v5023_v15 }
  0xae   : > { %3877 = vmatprep.mubr.msk.bf16.mxu1 %vm866_vm3, %v5560_v44 }
  0xb4   : > { %4030 = vmatmul.mubr.msk.bf16.gmra.mrb[24].mxu0 %vm866_vm3, %v5036_v1 }
  0xb5   : > { %3878 = vmatmul.mubr.msk.bf16.gmra.mrb[8].mxu1 %vm866_vm3, %v5561_v51  ;;  %4033 = vmatprep.mubr.msk.bf16.mxu0 %vm866_vm3, %v5181_v30 }
  0xb6   : > { %3881 = vmatprep.mubr.msk.bf16.mxu1 %vm866_vm3, %v5562_v6 }
  0xbc   : > { %4034 = vmatmul.mubr.msk.bf16.gmra.mrb[28].mxu0 %vm866_vm3, %v2289_v3 }
  0xbd   : > { %3882 = vmatmul.mubr.msk.bf16.gmra.mrb[12].mxu1 %vm866_vm3, %v5563_v46  ;;  %4039 = vmatprep.mubr.msk.bf16.mxu0 %vm866_vm3, %v5564_v12 }
  0xbe   : > { %3885 = vmatprep.mubr.msk.bf16.mxu1 %vm866_vm3, %v4928_v2 }
  0xc4   : > { %4040 = vmatmul.mubr.msk.bf16.vlgmr.msra.gmra.mrb[0].mxu0 %vm866_vm3, %v5565_v34 }
  0xc5   : > { %3886 = vmatmul.mubr.msk.bf16.gmra.mrb[16].mxu1 %vm866_vm3, %v4935_v38  ;;  %4072 = vmatpush3.bf16.msra.mxu0 %v2716_v47 }
  0xc6   : > { %4043 = vmatprep.mubr.msk.bf16.mxu0 %vm866_vm3, %v5566_v36  ;;  %3889 = vmatprep.mubr.msk.bf16.mxu1 %vm866_vm3, %v4972_v14 }
  0xcc   : > { %4044 = vmatmul.mubr.msk.bf16.gmra.mrb[4].mxu0 %vm866_vm3, %v5567_v23 }
  0xcd   : > { %3890 = vmatmul.mubr.msk.bf16.gmra.mrb[20].mxu1 %vm866_vm3, %v4989_v55  ;;  %4047 = vmatprep.mubr.msk.bf16.mxu0 %vm866_vm3, %v5568_v56 }
  0xce   : > { %3893 = vmatprep.mubr.msk.bf16.mxu1 %vm866_vm3, %v5052_v5 }
  0xd4   : > { %4048 = vmatmul.mubr.msk.bf16.gmra.mrb[8].mxu0 %vm866_vm3, %v5569_v63 }
  0xd5   : > { %3894 = vmatmul.mubr.msk.bf16.gmra.mrb[24].mxu1 %vm866_vm3, %v5056_v62  ;;  %4051 = vmatprep.mubr.msk.bf16.mxu0 %vm866_vm3, %v5570_v57 }
  0xd6   : > { %3897 = vmatprep.mubr.msk.bf16.mxu1 %vm866_vm3, %v5081_v8 }
  0xdc   : > { %4052 = vmatmul.mubr.msk.bf16.gmra.mrb[12].mxu0 %vm866_vm3, %v5571_v40 }
  0xdd   : > { %3898 = vmatmul.mubr.msk.bf16.gmra.mrb[28].mxu1 %vm866_vm3, %v5085_v33  ;;  %4055 = vmatprep.mubr.msk.bf16.mxu0 %vm866_vm3, %v5572_v17 }
  0xde   : > { %3903 = vmatprep.mubr.msk.bf16.mxu1 %vm866_vm3, %v4528_v28  ;;  %v2493_v28 = vrot.slane %v667_v0, 1 }
  0xe4   : > { %4056 = vmatmul.mubr.msk.bf16.gmra.mrb[16].mxu0 %vm866_vm3, %v5573_v13 }
  0xe5   : > { %3904 = vmatmul.mubr.msk.bf16.vlgmr.msra.gmra.mrb[0].mxu1 %vm866_vm3, %v4939_v52  ;;  %4059 = vmatprep.mubr.msk.bf16.mxu0 %vm866_vm3, %v5574_v20  ;;  %v2494_v52 = vrot.slane %v595_v60, 1 }
  0xe6   : > { %4106 = vmatpush3.bf16.msra.mxu1 %v5575_v43  ;;  %3907 = vmatprep.mubr.msk.bf16.mxu1 %vm866_vm3, %v4943_v21 }
  0xe7   : > { %v2495_v21 = vsel %vm735_vm2, %v2493_v28, %v2494_v52 }
  0xec   : > { %4060 = vmatmul.mubr.msk.bf16.gmra.mrb[20].mxu0 %vm866_vm3, %v5576_v39 }
  0xed   : > { %3908 = vmatmul.mubr.msk.bf16.gmra.mrb[4].mxu1 %vm866_vm3, %v4960_v32  ;;  %4063 = vmatprep.mubr.msk.bf16.mxu0 %vm866_vm3, %v4920_v24  ;;  %v2497_v32 = vsel %vm735_vm2, %v2494_v52, %v2496_v7 }
  0xee   : > { %3911 = vmatprep.mubr.msk.bf16.mxu1 %vm866_vm3, %v4964_v50  ;;  %v2500_v50 = vpack.c.bf16 %v2497_v32, %v2495_v21 }
  0xf4   : > { %4064 = vmatmul.mubr.msk.bf16.gmra.mrb[24].mxu0 %vm866_vm3, %v4933_v48 }
  0xf5   : > { %3912 = vmatmul.mubr.msk.bf16.gmra.mrb[8].mxu1 %vm866_vm3, %v4979_v54  ;;  %4067 = vmatprep.mubr.msk.bf16.mxu0 %vm866_vm3, %v5103_v4 }
  0xf6   : > { %3915 = vmatprep.mubr.msk.bf16.mxu1 %vm866_vm3, %v4983_v53 }
  0xfc   : > { %4068 = vmatmul.mubr.msk.bf16.gmra.mrb[28].mxu0 %vm866_vm3, %v2500_v50 }
  0xfd   : > { %3916 = vmatmul.mubr.msk.bf16.gmra.mrb[12].mxu1 %vm866_vm3, %v4987_v41  ;;  %4073 = vmatprep.mubr.msk.bf16.mxu0 %vm866_vm3, %v4744_v45 }
  0xfe   : > { %3919 = vmatprep.mubr.msk.bf16.mxu1 %vm866_vm3, %v4996_v35 }
 0x104   : > { %4074 = vmatmul.mubr.msk.bf16.vlgmr.msra.gmra.mrb[0].mxu0 %vm866_vm3, %v4750_v9 }
 0x105   : > { %3920 = vmatmul.mubr.msk.bf16.gmra.mrb[16].mxu1 %vm866_vm3, %v5001_v61  ;;  %4077 = vmatprep.mubr.msk.bf16.mxu0 %vm866_vm3, %v5560_v44 }
 0x106   : > { %3923 = vmatprep.mubr.msk.bf16.mxu1 %vm866_vm3, %v5005_v19 }
 0x10c   : > { %4078 = vmatmul.mubr.msk.bf16.gmra.mrb[4].mxu0 %vm866_vm3, %v5561_v51 }
 0x10d   : > { %3924 = vmatmul.mubr.msk.bf16.gmra.mrb[20].mxu1 %vm866_vm3, %v5009_v37  ;;  %4081 = vmatprep.mubr.msk.bf16.mxu0 %vm866_vm3, %v5562_v6 }
 0x10e   : > { %3927 = vmatprep.mubr.msk.bf16.mxu1 %vm866_vm3, %v5015_v25 }
 0x114   : > { %4082 = vmatmul.mubr.msk.bf16.gmra.mrb[8].mxu0 %vm866_vm3, %v5563_v46 }
 0x115   : > { %3928 = vmatmul.mubr.msk.bf16.gmra.mrb[24].mxu1 %vm866_vm3, %v5023_v15  ;;  %4085 = vmatprep.mubr.msk.bf16.mxu0 %vm866_vm3, %v4928_v2 }
 0x116   : > { %3931 = vmatprep.mubr.msk.bf16.mxu1 %vm866_vm3, %v5036_v1  ;;  %v5353_v1 = vld [vmem:[%s5514_s4] ss:$0 sm:$0xff] }
 0x11c   : > { %4086 = vmatmul.mubr.msk.bf16.gmra.mrb[12].mxu0 %vm866_vm3, %v4935_v38 }
 0x11d   : > { %3932 = vmatmul.mubr.msk.bf16.gmra.mrb[28].mxu1 %vm866_vm3, %v5181_v30  ;;  %4089 = vmatprep.mubr.msk.bf16.mxu0 %vm866_vm3, %v4972_v14 }
 0x11e   : > { %3953 = vmatprep.mubr.msk.bf16.mxu1 %vm866_vm3, %v5571_v40 }
 0x124   : > { %4090 = vmatmul.mubr.msk.bf16.gmra.mrb[16].mxu0 %vm866_vm3, %v4989_v55 }
 0x125   : > { %3954 = vmatmul.mubr.msk.bf16.vlgmr.msra.gmra.mrb[16].mxu1 %vm866_vm3, %v5572_v17  ;;  %4093 = vmatprep.mubr.msk.bf16.mxu0 %vm866_vm3, %v5052_v5 }
 0x126   : > { %3957 = vmatprep.mubr.msk.bf16.mxu1 %vm866_vm3, %v5573_v13 }
 0x12c   : > { %4094 = vmatmul.mubr.msk.bf16.gmra.mrb[20].mxu0 %vm866_vm3, %v5056_v62 }
 0x12d   : > { %3958 = vmatmul.mubr.msk.bf16.gmra.mrb[20].mxu1 %vm866_vm3, %v5574_v20  ;;  %4097 = vmatprep.mubr.msk.bf16.mxu0 %vm866_vm3, %v5081_v8  ;;  %v5358_v8 = vld [vmem:[%s5515_s5] ss:$0 sm:$0xff] }
 0x12e   : > { %3961 = vmatprep.mubr.msk.bf16.mxu1 %vm866_vm3, %v5576_v39 }
 0x134   : > { %4098 = vmatmul.mubr.msk.bf16.gmra.mrb[24].mxu0 %vm866_vm3, %v5085_v33 }
 0x135   : > { %3962 = vmatmul.mubr.msk.bf16.gmra.mrb[24].mxu1 %vm866_vm3, %v4920_v24  ;;  %4101 = vmatprep.mubr.msk.bf16.mxu0 %vm866_vm3, %v5101_v29 }
 0x136   : > { %3965 = vmatprep.mubr.msk.bf16.mxu1 %vm866_vm3, %v4933_v48 }
 0x13c   : > { %4102 = vmatmul.mubr.msk.bf16.gmra.mrb[28].mxu0 %vm866_vm3, %v2709_v58 }
 0x13d   : > { %3966 = vmatmul.mubr.msk.bf16.gmra.mrb[28].mxu1 %vm866_vm3, %v5103_v4 }
 0x1b8   : > { %v3905_v45 = vpop.f32.mrb[0].mxu1 }
 0x1b9   : > { %v1710_v9 = vpop.f32.mrb[1].mxu1 }
 0x1ba   : > { %v3906_v2 = vpop.f32.mrb[2].mxu1 }
 0x1bb   : > { %v1713_v38 = vpop.f32.mrb[3].mxu1 }
 0x1c0   : > { %v3909_v14 = vpop.f32.mrb[4].mxu1 }
 0x1c1   : > { %v1726_v24 = vpop.f32.mrb[5].mxu1 }
 0x1c2   : > { %v3910_v54 = vpop.f32.mrb[6].mxu1 }
 0x1c3   : > { %v1729_v53 = vpop.f32.mrb[7].mxu1 }
 0x1c8   : > { %v3913_v41 = vpop.f32.mrb[8].mxu1 }
 0x1c9   : > { %v5336_v55 = vpop.f32.mrb[9].mxu1 }
 0x1ca   : > { %v5338_v48 = vpop.f32.mrb[10].mxu1 }
 0x1cb   : > { %v5340_v35 = vpop.f32.mrb[11].mxu1 }
 0x1d0   : > { %v5342_v61 = vpop.f32.mrb[12].mxu1 }
 0x1d1   : > { %v5344_v19 = vpop.f32.mrb[13].mxu1 }
 0x1d2   : > { %v5346_v37 = vpop.f32.mrb[14].mxu1 }
 0x1d3   : > { %v5348_v25 = vpop.f32.mrb[15].mxu1 }
 0x1d7   : > { %v4075_v15 = vpop.f32.mrb[0].mxu0 }
 0x1d8   : > { %v4107_v5 = vadd.f32 %v4075_v15, %v3905_v45  ;;  %v2752_v62 = vpop.f32.mrb[1].mxu0 }
 0x1d9   : > { %v4108_v33 = vadd.f32 %v2752_v62, %v1710_v9  ;;  %v4076_v29 = vpop.f32.mrb[2].mxu0 }
 0x1da   : > { %v2920_v4 = vmul.f32 %v4107_v5, %v5353_v1  ;;  %v4109_v42 = vadd.f32 %v4076_v29, %v3906_v2  ;;  %v2755_v10 = vpop.f32.mrb[3].mxu0 }
 0x1db   : > { %v2918_v22 = vmul.f32 %v4108_v33, %v5353_v1  ;;  %v4110_v49 = vadd.f32 %v2755_v10, %v1713_v38 }
 0x1dc   : > { %v2959_v11 = vadd.f32 %v5358_v8, %v2920_v4  ;;  %v2921_v44 = vmul.f32 %v4109_v42, %v5353_v1 }
 0x1dd   : > { %v2957_v60 = vadd.f32 %v5358_v8, %v2918_v22  ;;  %v2919_v0 = vmul.f32 %v4110_v49, %v5353_v1 }
 0x1de   : > { %v2991_v30 = vmax.f32 %v2959_v11, 0.0  ;;  %v2960_v16 = vadd.f32 %v5358_v8, %v2921_v44 }
 0x1df   : > { %v2989_v31 = vmax.f32 %v2957_v60, 0.0  ;;  %v2958_v27 = vadd.f32 %v5358_v8, %v2919_v0  ;;  %v4079_v51 = vpop.f32.mrb[4].mxu0 }
 0x1e0   : > { %v3528_v26 = vpack.c.bf16 %v2991_v30, %v2991_v30  ;;  %v2992_v59 = vmax.f32 %v2960_v16, 0.0  ;;  %v4111_v6 = vadd.f32 %v4079_v51, %v3909_v14  ;;  %v2768_v18 = vpop.f32.mrb[5].mxu0 }
 0x1e1   : > { %v3526_v3 = vpack.c.bf16 %v2989_v31, %v2989_v31  ;;  %v2990_v58 = vmax.f32 %v2958_v27, 0.0  ;;  %v4112_v46 = vadd.f32 %v2768_v18, %v1726_v24  ;;  %v4080_v12 = vpop.f32.mrb[6].mxu0 }
 0x1e2   : > { %3152 = vst.msk [vmem:[%s5371_s16 + $0x8] sm:$0xf] %vm3149_vm5, %v3528_v26  ;;  %v3529_v47 = vpack.c.bf16 %v2992_v59, %v2992_v59  ;;  %v2924_v34 = vmul.f32 %v4111_v6, %v5353_v1  ;;  %v4113_v36 = vadd.f32 %v4080_v12, %v3910_v54  ;;  %v2771_v23 = vpop.f32.mrb[7].mxu0 }
 0x1e3   : > { %3150 = vst.msk [vmem:[%s5371_s16] sm:$0xf] %vm3149_vm5, %v3526_v3  ;;  %v3527_v56 = vpack.c.bf16 %v2990_v58, %v2990_v58  ;;  %v2922_v63 = vmul.f32 %v4112_v46, %v5353_v1  ;;  %v4114_v57 = vadd.f32 %v2771_v23, %v1729_v53 }
 0x1e4   : > { %3153 = vst.msk [vmem:[%s5371_s16 + $0xc] sm:$0xf] %vm3149_vm5, %v3529_v47  ;;  %v2963_v40 = vadd.f32 %v5358_v8, %v2924_v34  ;;  %v2925_v17 = vmul.f32 %v4113_v36, %v5353_v1 }
 0x1e5   : > { %3151 = vst.msk [vmem:[%s5371_s16 + $0x4] sm:$0xf] %vm3149_vm5, %v3527_v56  ;;  %v2961_v13 = vadd.f32 %v5358_v8, %v2922_v63  ;;  %v2923_v20 = vmul.f32 %v4114_v57, %v5353_v1 }
 0x1e6   : > { %v2995_v43 = vmax.f32 %v2963_v40, 0.0  ;;  %v2964_v39 = vadd.f32 %v5358_v8, %v2925_v17 }
 0x1e7   : > { %v2993_v28 = vmax.f32 %v2961_v13, 0.0  ;;  %v2962_v52 = vadd.f32 %v5358_v8, %v2923_v20  ;;  %v4083_v7 = vpop.f32.mrb[8].mxu0 }
 0x1e8   : > { %v3532_v21 = vpack.c.bf16 %v2995_v43, %v2995_v43  ;;  %v2996_v32 = vmax.f32 %v2964_v39, 0.0  ;;  %v4115_v50 = vadd.f32 %v4083_v7, %v3913_v41  ;;  %v2784_v45 = vpop.f32.mrb[9].mxu0 }
 0x1e9   : > { %v3530_v9 = vpack.c.bf16 %v2993_v28, %v2993_v28  ;;  %v2994_v2 = vmax.f32 %v2962_v52, 0.0  ;;  %v4116_v38 = vadd.f32 %v2784_v45, %v5336_v55  ;;  %v4084_v14 = vpop.f32.mrb[10].mxu0 }
 0x1ea   : > { %3156 = vst.msk [vmem:[%s5371_s16 + $0x18] sm:$0xf] %vm3149_vm5, %v3532_v21  ;;  %v3533_v24 = vpack.c.bf16 %v2996_v32, %v2996_v32  ;;  %v2928_v54 = vmul.f32 %v4115_v50, %v5353_v1  ;;  %v4117_v53 = vadd.f32 %v4084_v14, %v5338_v48  ;;  %v2787_v15 = vpop.f32.mrb[11].mxu0 }
 0x1eb   : > { %3154 = vst.msk [vmem:[%s5371_s16 + $0x10] sm:$0xf] %vm3149_vm5, %v3530_v9  ;;  %v3531_v5 = vpack.c.bf16 %v2994_v2, %v2994_v2  ;;  %v2926_v41 = vmul.f32 %v4116_v38, %v5353_v1  ;;  %v4118_v62 = vadd.f32 %v2787_v15, %v5340_v35 }
 0x1ec   : > { %3157 = vst.msk [vmem:[%s5371_s16 + $0x1c] sm:$0xf] %vm3149_vm5, %v3533_v24  ;;  %v2967_v55 = vadd.f32 %v5358_v8, %v2928_v54  ;;  %v2929_v33 = vmul.f32 %v4117_v53, %v5353_v1 }
 0x1ed   : > { %3155 = vst.msk [vmem:[%s5371_s16 + $0x14] sm:$0xf] %vm3149_vm5, %v3531_v5  ;;  %v2965_v29 = vadd.f32 %v5358_v8, %v2926_v41  ;;  %v2927_v48 = vmul.f32 %v4118_v62, %v5353_v1 }
 0x1ee   : > { %v2999_v4 = vmax.f32 %v2967_v55, 0.0  ;;  %v2968_v42 = vadd.f32 %v5358_v8, %v2929_v33 }
 0x1ef   : > { %v2997_v10 = vmax.f32 %v2965_v29, 0.0  ;;  %v2966_v35 = vadd.f32 %v5358_v8, %v2927_v48  ;;  %v4087_v22 = vpop.f32.mrb[12].mxu0 }
 0x1f0   : > { %v3536_v49 = vpack.c.bf16 %v2999_v4, %v2999_v4  ;;  %v3000_v11 = vmax.f32 %v2968_v42, 0.0  ;;  %v4119_v44 = vadd.f32 %v4087_v22, %v5342_v61  ;;  %v2800_v60 = vpop.f32.mrb[13].mxu0 }
 0x1f1   : > { %v3534_v0 = vpack.c.bf16 %v2997_v10, %v2997_v10  ;;  %v2998_v30 = vmax.f32 %v2966_v35, 0.0  ;;  %v4120_v16 = vadd.f32 %v2800_v60, %v5344_v19  ;;  %v4088_v31 = vpop.f32.mrb[14].mxu0 }
 0x1f2   : > { %3160 = vst.msk [vmem:[%s5371_s16 + $0x28] sm:$0xf] %vm3149_vm5, %v3536_v49  ;;  %v3537_v27 = vpack.c.bf16 %v3000_v11, %v3000_v11  ;;  %v2932_v51 = vmul.f32 %v4119_v44, %v5353_v1  ;;  %v4121_v26 = vadd.f32 %v4088_v31, %v5346_v37  ;;  %v2803_v59 = vpop.f32.mrb[15].mxu0 }
 0x1f3   : > { %3158 = vst.msk [vmem:[%s5371_s16 + $0x20] sm:$0xf] %vm3149_vm5, %v3534_v0  ;;  %v3535_v6 = vpack.c.bf16 %v2998_v30, %v2998_v30  ;;  %v2930_v61 = vmul.f32 %v4120_v16, %v5353_v1  ;;  %v4122_v18 = vadd.f32 %v2803_v59, %v5348_v25 }
 0x1f4   : > { %3161 = vst.msk [vmem:[%s5371_s16 + $0x2c] sm:$0xf] %vm3149_vm5, %v3537_v27  ;;  %v2971_v19 = vadd.f32 %v5358_v8, %v2932_v51  ;;  %v2933_v3 = vmul.f32 %v4121_v26, %v5353_v1 }
 0x1f5   : > { %3159 = vst.msk [vmem:[%s5371_s16 + $0x24] sm:$0xf] %vm3149_vm5, %v3535_v6  ;;  %v2969_v58 = vadd.f32 %v5358_v8, %v2930_v61  ;;  %v2931_v37 = vmul.f32 %v4122_v18, %v5353_v1 }
 0x1f6   : > { %v3003_v46 = vmax.f32 %v2971_v19, 0.0  ;;  %v2972_v12 = vadd.f32 %v5358_v8, %v2933_v3 }
 0x1f7   : > { %v3001_v47 = vmax.f32 %v2969_v58, 0.0  ;;  %v2970_v34 = vadd.f32 %v5358_v8, %v2931_v37  ;;  %v4091_v25 = vpop.f32.mrb[16].mxu0 }
 0x1f8   : > { %v3540_v36 = vpack.c.bf16 %v3003_v46, %v3003_v46  ;;  %v3004_v23 = vmax.f32 %v2972_v12, 0.0  ;;  %v2816_v56 = vpop.f32.mrb[17].mxu0  ;;  %v3955_v63 = vpop.f32.mrb[16].mxu1 }
 0x1f9   : > { %v3538_v57 = vpack.c.bf16 %v3001_v47, %v3001_v47  ;;  %v3002_v40 = vmax.f32 %v2970_v34, 0.0  ;;  %v4123_v17 = vadd.f32 %v4091_v25, %v3955_v63  ;;  %v4092_v13 = vpop.f32.mrb[18].mxu0  ;;  %v1985_v20 = vpop.f32.mrb[17].mxu1 }
 0x1fa   : > { %3164 = vst.msk [vmem:[%s5371_s16 + $0x38] sm:$0xf] %vm3149_vm5, %v3540_v36  ;;  %v3541_v43 = vpack.c.bf16 %v3004_v23, %v3004_v23  ;;  %v4124_v39 = vadd.f32 %v2816_v56, %v1985_v20  ;;  %v2819_v28 = vpop.f32.mrb[19].mxu0  ;;  %v3956_v52 = vpop.f32.mrb[18].mxu1 }
 0x1fb   : > { %3162 = vst.msk [vmem:[%s5371_s16 + $0x30] sm:$0xf] %vm3149_vm5, %v3538_v57  ;;  %v3539_v7 = vpack.c.bf16 %v3002_v40, %v3002_v40  ;;  %v2936_v21 = vmul.f32 %v4123_v17, %v5353_v1  ;;  %v4125_v32 = vadd.f32 %v4092_v13, %v3956_v52  ;;  %v1988_v50 = vpop.f32.mrb[19].mxu1 }
 0x1fc   : > { %3165 = vst.msk [vmem:[%s5371_s16 + $0x3c] sm:$0xf] %vm3149_vm5, %v3541_v43  ;;  %v2934_v45 = vmul.f32 %v4124_v39, %v5353_v1  ;;  %v4126_v9 = vadd.f32 %v2819_v28, %v1988_v50 }
 0x1fd   : > { %3163 = vst.msk [vmem:[%s5371_s16 + $0x34] sm:$0xf] %vm3149_vm5, %v3539_v7  ;;  %v2975_v2 = vadd.f32 %v5358_v8, %v2936_v21  ;;  %v2937_v38 = vmul.f32 %v4125_v32, %v5353_v1 }
 0x1fe   : > { %v2973_v14 = vadd.f32 %v5358_v8, %v2934_v45  ;;  %v2935_v24 = vmul.f32 %v4126_v9, %v5353_v1 }
 0x1ff   : > { %v3007_v54 = vmax.f32 %v2975_v2, 0.0  ;;  %v2976_v53 = vadd.f32 %v5358_v8, %v2937_v38  ;;  %v4095_v15 = vpop.f32.mrb[20].mxu0 }
 0x200   : > { %v3005_v5 = vmax.f32 %v2973_v14, 0.0  ;;  %v2974_v41 = vadd.f32 %v5358_v8, %v2935_v24  ;;  %v2832_v62 = vpop.f32.mrb[21].mxu0  ;;  %v3959_v55 = vpop.f32.mrb[20].mxu1 }
 0x201   : > { %v3544_v33 = vpack.c.bf16 %v3007_v54, %v3007_v54  ;;  %v3008_v29 = vmax.f32 %v2976_v53, 0.0  ;;  %v4127_v48 = vadd.f32 %v4095_v15, %v3959_v55  ;;  %v4096_v4 = vpop.f32.mrb[22].mxu0  ;;  %v2001_v42 = vpop.f32.mrb[21].mxu1 }
 0x202   : > { %v3542_v10 = vpack.c.bf16 %v3005_v5, %v3005_v5  ;;  %v3006_v35 = vmax.f32 %v2974_v41, 0.0  ;;  %v4128_v22 = vadd.f32 %v2832_v62, %v2001_v42  ;;  %v2835_v49 = vpop.f32.mrb[23].mxu0  ;;  %v3960_v11 = vpop.f32.mrb[22].mxu1 }
 0x203   : > { %3168 = vst.msk [vmem:[%s5371_s16 + $0x48] sm:$0xf] %vm3149_vm5, %v3544_v33  ;;  %v3545_v44 = vpack.c.bf16 %v3008_v29, %v3008_v29  ;;  %v2940_v60 = vmul.f32 %v4127_v48, %v5353_v1  ;;  %v4129_v0 = vadd.f32 %v4096_v4, %v3960_v11  ;;  %v2004_v30 = vpop.f32.mrb[23].mxu1 }
 0x204   : > { %3166 = vst.msk [vmem:[%s5371_s16 + $0x40] sm:$0xf] %vm3149_vm5, %v3542_v10  ;;  %v3543_v16 = vpack.c.bf16 %v3006_v35, %v3006_v35  ;;  %v2938_v31 = vmul.f32 %v4128_v22, %v5353_v1  ;;  %v4130_v27 = vadd.f32 %v2835_v49, %v2004_v30 }
 0x205   : > { %3169 = vst.msk [vmem:[%s5371_s16 + $0x4c] sm:$0xf] %vm3149_vm5, %v3545_v44  ;;  %v2979_v51 = vadd.f32 %v5358_v8, %v2940_v60  ;;  %v2941_v26 = vmul.f32 %v4129_v0, %v5353_v1 }
 0x206   : > { %3167 = vst.msk [vmem:[%s5371_s16 + $0x44] sm:$0xf] %vm3149_vm5, %v3543_v16  ;;  %v2977_v59 = vadd.f32 %v5358_v8, %v2938_v31  ;;  %v2939_v6 = vmul.f32 %v4130_v27, %v5353_v1 }
 0x207   : > { %v3011_v61 = vmax.f32 %v2979_v51, 0.0  ;;  %v2980_v18 = vadd.f32 %v5358_v8, %v2941_v26  ;;  %v4099_v19 = vpop.f32.mrb[24].mxu0 }
 0x208   : > { %v3009_v3 = vmax.f32 %v2977_v59, 0.0  ;;  %v2978_v58 = vadd.f32 %v5358_v8, %v2939_v6  ;;  %v2848_v37 = vpop.f32.mrb[25].mxu0  ;;  %v3963_v46 = vpop.f32.mrb[24].mxu1 }
 0x209   : > { %v3548_v12 = vpack.c.bf16 %v3011_v61, %v3011_v61  ;;  %v3012_v47 = vmax.f32 %v2980_v18, 0.0  ;;  %v4131_v34 = vadd.f32 %v4099_v19, %v3963_v46  ;;  %v4100_v25 = vpop.f32.mrb[26].mxu0  ;;  %v2017_v36 = vpop.f32.mrb[25].mxu1 }
 0x20a   : > { %v3546_v23 = vpack.c.bf16 %v3009_v3, %v3009_v3  ;;  %v3010_v56 = vmax.f32 %v2978_v58, 0.0  ;;  %v4132_v63 = vadd.f32 %v2848_v37, %v2017_v36  ;;  %v2851_v57 = vpop.f32.mrb[27].mxu0  ;;  %v3964_v40 = vpop.f32.mrb[26].mxu1 }
 0x20b   : > { %3172 = vst.msk [vmem:[%s5371_s16 + $0x58] sm:$0xf] %vm3149_vm5, %v3548_v12  ;;  %v3549_v17 = vpack.c.bf16 %v3012_v47, %v3012_v47  ;;  %v2944_v13 = vmul.f32 %v4131_v34, %v5353_v1  ;;  %v4133_v20 = vadd.f32 %v4100_v25, %v3964_v40  ;;  %v2020_v43 = vpop.f32.mrb[27].mxu1 }
 0x20c   : > { %3170 = vst.msk [vmem:[%s5371_s16 + $0x50] sm:$0xf] %vm3149_vm5, %v3546_v23  ;;  %v3547_v39 = vpack.c.bf16 %v3010_v56, %v3010_v56  ;;  %v2942_v28 = vmul.f32 %v4132_v63, %v5353_v1  ;;  %v4134_v52 = vadd.f32 %v2851_v57, %v2020_v43 }
 0x20d   : > { %3173 = vst.msk [vmem:[%s5371_s16 + $0x5c] sm:$0xf] %vm3149_vm5, %v3549_v17  ;;  %v2983_v7 = vadd.f32 %v5358_v8, %v2944_v13  ;;  %v2945_v21 = vmul.f32 %v4133_v20, %v5353_v1 }
 0x20e   : > { %3171 = vst.msk [vmem:[%s5371_s16 + $0x54] sm:$0xf] %vm3149_vm5, %v3547_v39  ;;  %v2981_v32 = vadd.f32 %v5358_v8, %v2942_v28  ;;  %v2943_v50 = vmul.f32 %v4134_v52, %v5353_v1 }
 0x20f   : > { %v3015_v45 = vmax.f32 %v2983_v7, 0.0  ;;  %v2984_v9 = vadd.f32 %v5358_v8, %v2945_v21  ;;  %v4103_v2 = vpop.f32.mrb[28].mxu0 }
 0x210   : > { %v3013_v38 = vmax.f32 %v2981_v32, 0.0  ;;  %v2982_v14 = vadd.f32 %v5358_v8, %v2943_v50  ;;  %v2864_v24 = vpop.f32.mrb[29].mxu0  ;;  %v3967_v54 = vpop.f32.mrb[28].mxu1 }
 0x211   : > { %v3552_v53 = vpack.c.bf16 %v3015_v45, %v3015_v45  ;;  %v3016_v15 = vmax.f32 %v2984_v9, 0.0  ;;  %v4135_v5 = vadd.f32 %v4103_v2, %v3967_v54  ;;  %v4104_v41 = vpop.f32.mrb[30].mxu0  ;;  %v2033_v62 = vpop.f32.mrb[29].mxu1 }
 0x212   : > { %v3550_v55 = vpack.c.bf16 %v3013_v38, %v3013_v38  ;;  %v3014_v33 = vmax.f32 %v2982_v14, 0.0  ;;  %v4136_v29 = vadd.f32 %v2864_v24, %v2033_v62  ;;  %v2867_v48 = vpop.f32.mrb[31].mxu0  ;;  %v3968_v4 = vpop.f32.mrb[30].mxu1 }
 0x213   : > { %3176 = vst.msk [vmem:[%s5371_s16 + $0x68] sm:$0xf] %vm3149_vm5, %v3552_v53  ;;  %v3553_v42 = vpack.c.bf16 %v3016_v15, %v3016_v15  ;;  %v2948_v10 = vmul.f32 %v4135_v5, %v5353_v1  ;;  %v4137_v35 = vadd.f32 %v4104_v41, %v3968_v4  ;;  %v2036_v22 = vpop.f32.mrb[31].mxu1 }
 0x214   : > { %3174 = vst.msk [vmem:[%s5371_s16 + $0x60] sm:$0xf] %vm3149_vm5, %v3550_v55  ;;  %v3551_v49 = vpack.c.bf16 %v3014_v33, %v3014_v33  ;;  %v2946_v11 = vmul.f32 %v4136_v29, %v5353_v1  ;;  %v4138_v44 = vadd.f32 %v2867_v48, %v2036_v22 }
 0x215   : > { %3177 = vst.msk [vmem:[%s5371_s16 + $0x6c] sm:$0xf] %vm3149_vm5, %v3553_v42  ;;  %v2987_v60 = vadd.f32 %v5358_v8, %v2948_v10  ;;  %v2949_v0 = vmul.f32 %v4137_v35, %v5353_v1 }
 0x216   : > { %3175 = vst.msk [vmem:[%s5371_s16 + $0x64] sm:$0xf] %vm3149_vm5, %v3551_v49  ;;  %v2985_v30 = vadd.f32 %v5358_v8, %v2946_v11  ;;  %v2947_v16 = vmul.f32 %v4138_v44, %v5353_v1 }
 0x217   : > { %v3019_v31 = vmax.f32 %v2987_v60, 0.0  ;;  %v2988_v27 = vadd.f32 %v5358_v8, %v2949_v0 }
 0x218   : > { %v3017_v51 = vmax.f32 %v2985_v30, 0.0  ;;  %v2986_v26 = vadd.f32 %v5358_v8, %v2947_v16 }
 0x219   : > { %v3556_v59 = vpack.c.bf16 %v3019_v31, %v3019_v31  ;;  %v3020_v6 = vmax.f32 %v2988_v27, 0.0 }
 0x21a   : > { %v3554_v61 = vpack.c.bf16 %v3017_v51, %v3017_v51  ;;  %v3018_v18 = vmax.f32 %v2986_v26, 0.0 }
 0x21b   : > { %3180 = vst.msk [vmem:[%s5371_s16 + $0x78] sm:$0xf] %vm3149_vm5, %v3556_v59  ;;  %v3557_v19 = vpack.c.bf16 %v3020_v6, %v3020_v6 }
 0x21c   : > { %3178 = vst.msk [vmem:[%s5371_s16 + $0x70] sm:$0xf] %vm3149_vm5, %v3554_v61  ;;  %v3555_v3 = vpack.c.bf16 %v3018_v18, %v3018_v18 }
 0x21d   : > { %3181 = vst.msk [vmem:[%s5371_s16 + $0x7c] sm:$0xf] %vm3149_vm5, %v3557_v19 }
 0x21e   : > { %3179 = vst.msk [vmem:[%s5371_s16 + $0x74] sm:$0xf] %vm3149_vm5, %v3555_v3 }
 0x21f PF: > { %s16_s23 = sadd.s32 1, %s4419_s23   ;;  %s5577_s21 = smov %s4415_s22 }
 0x220   : > { %p13_p5 = scmp.ge.s32.totalorder %s16_s23, 4   ;;  %s5578_s22 = smov %s5580_s24 }
 0x222   :  { %15 = sbr.rel (!%p13_p5) target bundleno = 2 (0x2), region = 88 }

// kernel: sndncnn_forward.6
= control target key start
LH: loop header
LB: loop body
LE: loop exit
PB: predicated region body
PF: predicated region fallthrough
CT: control target
= control target key end

     0   :  { %s4916_s21 = smov 0   ;;  %s4918_s22 = smov 0   ;;  %s6060_s0 = inlined_call_operand.vmem [shape: bf16[2,16,16,64], index: 0, kind: input, shape index: {}, may-alias: {0,1,2}]   ;;  %s6061_s1 = inlined_call_operand.vmem [shape: bf16[2,16,16,64], index: 1, kind: input, shape index: {}, may-alias: {0,1,2}]   ;;  %s6062_s2 = inlined_call_operand.vmem [shape: bf16[2,16,16,64], index: 2, kind: input, shape index: {}, may-alias: {0,1,2}]   ;;  %s6063_s3 = inlined_call_operand.vmem [shape: bf16[9,64,64], index: 3, kind: input, shape index: {}]   ;;  %s6064_s4 = inlined_call_operand.vmem [shape: f32[1,64], index: 4, kind: input, shape index: {}]   ;;  %s6065_s5 = inlined_call_operand.vmem [shape: f32[1,64], index: 5, kind: input, shape index: {}]   ;;  %s6066_s6 = inlined_call_operand.vmem [shape: bf16[2,16,16,64], index: 6, kind: output, shape index: {}]  }
   0x1   :  { %s4920_s23 = smov 0  }
   0x2 LB: > { %s28_s24 = sadd.s32 1, %s4875_s22  ;;  %p3575_p0 = scmp.ge.s32.totalorder %s4879_s23, 1  ;;  %s4879_s23 = sphi %s4920_s23, %s16_s23   ;;  %s4875_s22 = sphi %s4918_s22, %s6109_s22   ;;  %s4871_s21 = sphi %s4916_s21, %s6108_s21  }
   0x3   : > { %p30_p1 = scmp.ge.s32.totalorder %s28_s24, 2  ;;  %p298_p2 = scmp.lt.s32.totalorder %s4879_s23, 3 }
   0x5   : > { %s6111_s24 = smov (%p30_p1, %s28_s24), 0  ;;  %p299_p3 = pnand %p3575_p0, %p298_p2 }
   0x7   : > { %302 = sbr.rel (%p299_p3) target bundleno = 541 (0x21d), region = 44 }
   0xe   : > { %v4817_v0 = vld [vmem:[%s6063_s3 + $0x20] sm:$0xff]   ;;  %p365_p4 = scmp.lt.s32.totalorder %s4871_s21, 1  ;;  %v4819_v2 = vld [vmem:[%s6063_s3 + $0x28] sm:$0xff]   ;;  %v4821_v4 = vld [vmem:[%s6063_s3 + $0x30] sm:$0xff]   ;;  %vm541_vm0 = vcmask 1040384   ;;  %vm742_vm1 = vcmask 1046528  }
   0xf   : > { %v4818_v1 = vld [vmem:[%s6063_s3 + $0x80] sm:$0xff]   ;;  %4169 = vmatprep.subr.bf16.mxu1 %v4817_v0  ;;  %v4820_v3 = vld [vmem:[%s6063_s3 + $0x88] sm:$0xff]   ;;  %v4822_v5 = vld [vmem:[%s6063_s3 + $0x90] sm:$0xff]   ;;  %vm904_vm2 = vcmask 523264   ;;  %vm1347_vm3 = vcmask 1045504   ;;  %vm3400_vm4 = vcmask 519168  }
  0x10   : > { %s6113_s21 = smov (!%p365_p4, %s4871_s21), 1  ;;  %4329 = vmatprep.subr.bf16.mxu0 %v4818_v1  ;;  %4170 = vmatpush3.bf16.msra.mxu1 %v4817_v0  ;;  %v4823_v6 = vld [vmem:[%s6063_s3 + $0x38] sm:$0xff]   ;;  %v4975_v21 = vld [vmem:[%s6063_s3] sm:$0xff]  }
  0x11   : > { %4330 = vmatpush3.bf16.msra.mxu0 %v4818_v1  ;;  %4171 = vmatprep.subr.bf16.mxu1 %v4819_v2  ;;  %s4949_s11 = sshll.u32 %s6113_s21, 7  ;;  %v4824_v9 = vld [vmem:[%s6063_s3 + $0x98] sm:$0xff]   ;;  %v4826_v29 = vld [vmem:[%s6063_s3 + $0xa0] sm:$0xff]  }
  0x12   : > { %4331 = vmatprep.subr.bf16.mxu0 %v4820_v3  ;;  %s4958_s16 = scalar_lea.vmem %s6060_s0, %s4949_s11  ;;  %s387_s19 = scalar_lea.vmem %s6061_s1, %s4949_s11 }
  0x13   : > { %v3902_v7 = vld [vmem:[%s4958_s16] sm:$0xff]   ;;  %v3974_v14 = vld [vmem:[%s4958_s16 + $0x8] sm:$0xff]   ;;  %v3975_v22 = vld [vmem:[%s4958_s16 + $0x10] sm:$0xff]   ;;  %s3867_s8 = sadd.s32 120, %s4949_s11 }
  0x14   : > { %4172 = vmatpush3.bf16.msra.mxu1 %v4819_v2  ;;  %v3966_v8 = vld [vmem:[%s387_s19] sm:$0xff]   ;;  %v3903_v10 = vunpack.c.l.bf16 %v3902_v7  ;;  %v3904_v11 = vunpack.c.h.bf16 %v3902_v7  ;;  %v3907_v15 = vunpack.c.l.bf16 %v3974_v14  ;;  %v3908_v16 = vunpack.c.h.bf16 %v3974_v14  ;;  %v3976_v52 = vld [vmem:[%s4958_s16 + $0x18] sm:$0xff]   ;;  %v4827_v2 = vld [vmem:[%s6063_s3 + $0xa8] sm:$0xff]   ;;  %s404_s12 = scalar_lea.vmem %s6062_s2, %s3867_s8  ;;  %s5921_s19 = scalar_lea.vmem %s6066_s6, %s4949_s11 }
  0x15   : > { %4332 = vmatpush3.bf16.msra.mxu0 %v4820_v3  ;;  %4173 = vmatprep.subr.bf16.mxu1 %v4821_v4  ;;  %v3967_v12 = vunpack.c.l.bf16 %v3966_v8  ;;  %v3968_v13 = vunpack.c.h.bf16 %v3966_v8  ;;  %v3911_v35 = vunpack.c.l.bf16 %v3975_v22  ;;  %v3912_v47 = vunpack.c.h.bf16 %v3975_v22  ;;  %v3977_v53 = vld [vmem:[%s4958_s16 + $0x20] sm:$0xff]   ;;  %v4828_v7 = vld [vmem:[%s6063_s3 + $0x8] sm:$0xff]  }
  0x16   : > { %4333 = vmatprep.subr.bf16.mxu0 %v4822_v5  ;;  %v545_v17 = vrot.slane %v3903_v10, 7  ;;  %v546_v18 = vrot.slane %v3904_v11, 7  ;;  %v548_v23 = vrot.slane %v3907_v15, 7  ;;  %v549_v24 = vrot.slane %v3908_v16, 7  ;;  %v3978_v8 = vld [vmem:[%s4958_s16 + $0x28] sm:$0xff]  }
  0x17   : > { %v496_v19 = vmul.f32 0.0, %v3967_v12  ;;  %v497_v20 = vmul.f32 0.0, %v3968_v13  ;;  %v551_v0 = vrot.slane %v3911_v35, 7  ;;  %v552_v1 = vrot.slane %v3912_v47, 7  ;;  %v3979_v35 = vld [vmem:[%s4958_s16 + $0x30] sm:$0xff]  }
  0x18   : > { %4174 = vmatpush3.bf16.msra.mxu1 %v4821_v4  ;;  %v4979_v25 = vsel %vm541_vm0, %v545_v17, %v546_v18  ;;  %v4982_v26 = vsel %vm541_vm0, 0.0, %v545_v17  ;;  %v4985_v27 = vsel %vm541_vm0, %v546_v18, 0.0  ;;  %v5004_v39 = vsel %vm541_vm0, %v548_v23, %v549_v24 }
  0x19   : > { %4334 = vmatpush3.bf16.msra.mxu0 %v4822_v5  ;;  %4175 = vmatprep.subr.bf16.mxu1 %v4823_v6  ;;  %v542_v28 = vrot.slane %v496_v19, 7  ;;  %v4992_v30 = vpack.c.bf16 %v4979_v25, %v4982_v26  ;;  %v748_v31 = vrot.slane %v4982_v26, 1  ;;  %v749_v32 = vrot.slane %v4979_v25, 1 }
  0x1a   : > { %4335 = vmatprep.subr.bf16.mxu0 %v4824_v9  ;;  %v751_v33 = vrot.slane %v4985_v27, 1  ;;  %v543_v34 = vrot.slane %v497_v20, 7  ;;  %v1353_v44 = vrot.slane %v4982_v26, 2  ;;  %v1354_v48 = vrot.slane %v4979_v25, 2 }
  0x1b   : > { %v750_v36 = vsel %vm742_vm1, %v748_v31, %v749_v32  ;;  %v5000_v38 = vsel %vm541_vm0, 0.0, %v542_v28  ;;  %v5019_v49 = vsel %vm541_vm0, 0.0, %v548_v23  ;;  %v5022_v50 = vsel %vm541_vm0, %v549_v24, 0.0 }
  0x1c   : > { %4176 = vmatpush3.bf16.msra.mxu1 %v4823_v6  ;;  %v752_v37 = vsel %vm742_vm1, %v749_v32, %v751_v33  ;;  %v5007_v41 = vsel %vm541_vm0, %v542_v28, %v543_v34  ;;  %v5010_v42 = vsel %vm541_vm0, %v543_v34, 0.0  ;;  %v743_v43 = vrot.slane %v5000_v38, 1  ;;  %v4829_v28 = vld [vmem:[%s6063_s3 + $0xb0] sm:$0xff]  }
  0x1d   : > { %4336 = vmatpush3.bf16.msra.mxu0 %v4824_v9  ;;  %4209 = vmatprep.subr.bf16.mxu1 %v4975_v21  ;;  %v856_v40 = vpack.c.bf16 %v752_v37, %v750_v36  ;;  %v744_v45 = vrot.slane %v5007_v41, 1  ;;  %v746_v46 = vrot.slane %v5010_v42, 1  ;;  %v754_v51 = vrot.slane %v5004_v39, 1 }
  0x1e   : > { %4369 = vmatprep.subr.bf16.mxu0 %v4826_v29  ;;  %v753_v56 = vrot.slane %v5019_v49, 1  ;;  %v756_v57 = vrot.slane %v5022_v50, 1  ;;  %v1356_v58 = vrot.slane %v4985_v27, 2  ;;  %v1358_v60 = vrot.slane %v5019_v49, 2 }
  0x1f   : > { %4337 = vmatprep.mubr.msk.bf16.mxu0 %vm904_vm2, %v856_v40  ;;  %v745_v54 = vsel %vm742_vm1, %v743_v43, %v744_v45  ;;  %v747_v55 = vsel %vm742_vm1, %v744_v45, %v746_v46  ;;  %v1359_v61 = vrot.slane %v5004_v39, 2  ;;  %v3915_v4 = vunpack.c.l.bf16 %v3976_v52  ;;  %v4833_v45 = vld [vmem:[%s6063_s3 + $0x18] sm:$0xff]  }
  0x20   : > { %v855_v59 = vpack.c.bf16 %v747_v55, %v745_v54  ;;  %v755_v62 = vsel %vm742_vm1, %v753_v56, %v754_v51  ;;  %v757_v63 = vsel %vm742_vm1, %v754_v51, %v756_v57  ;;  %v3916_v5 = vunpack.c.h.bf16 %v3976_v52 }
  0x21   : > { %v5040_v3 = vpack.c.bf16 %v757_v63, %v755_v62  ;;  %v3919_v6 = vunpack.c.l.bf16 %v3977_v53  ;;  %v5048_v9 = vsel %vm541_vm0, %v551_v0, %v552_v1  ;;  %v5051_v10 = vsel %vm541_vm0, 0.0, %v551_v0 }
  0x22   : > { %4177 = vmatprep.mubr.msk.bf16.mxu1 %vm904_vm2, %v855_v59  ;;  %v5054_v11 = vsel %vm541_vm0, %v552_v1, 0.0  ;;  %v3920_v12 = vunpack.c.h.bf16 %v3977_v53  ;;  %v758_v13 = vrot.slane %v5051_v10, 1  ;;  %v759_v14 = vrot.slane %v5048_v9, 1  ;;  %v3980_v53 = vld [vmem:[%s4958_s16 + $0x38] sm:$0xff]  }
  0x23   : > { %6084 = vst [vmem:[#allocation2_spill] sm:$0xff] %v5040_v3  ;;  %4178 = vmatmul.mubr.msk.bf16.vlgmr.msra.gmra.mrb[0].mxu1 %vm904_vm2, %v856_v40  ;;  %4338 = vmatmul.mubr.msk.bf16.vlgmr.msra.gmra.mrb[0].mxu0 %vm904_vm2, %v5040_v3  ;;  %v761_v15 = vrot.slane %v5054_v11, 1  ;;  %v554_v16 = vrot.slane %v3915_v4, 7  ;;  %v555_v17 = vrot.slane %v3916_v5, 7  ;;  %v557_v18 = vrot.slane %v3919_v6, 7  ;;  %v4830_v1 = vld [vmem:[%s6063_s3 + $0xb8] sm:$0xff]  }
  0x24   : > { %4210 = vmatpush3.bf16.msra.mxu1 %v4975_v21  ;;  %4370 = vmatpush3.bf16.msra.mxu0 %v4826_v29  ;;  %v558_v19 = vrot.slane %v3920_v12, 7  ;;  %v3923_v20 = vunpack.c.l.bf16 %v3978_v8  ;;  %v760_v22 = vsel %vm742_vm1, %v758_v13, %v759_v14  ;;  %v3924_v24 = vunpack.c.h.bf16 %v3978_v8  ;;  %v4831_v29 = vld [vmem:[%s6063_s3 + $0x10] sm:$0xff]  }
  0x25   : > { %4181 = vmatprep.mubr.msk.bf16.mxu1 %vm904_vm2, %v5040_v3  ;;  %v762_v21 = vsel %vm742_vm1, %v759_v14, %v761_v15  ;;  %v5067_v23 = vsel %vm541_vm0, 0.0, %v554_v16  ;;  %4371 = vmatprep.subr.bf16.mxu0 %v4827_v2  ;;  %v5078_v32 = vsel %vm541_vm0, %v554_v16, %v555_v17  ;;  %v5081_v33 = vsel %vm541_vm0, %v555_v17, 0.0 }
  0x26   : > { %4211 = vmatprep.subr.bf16.mxu1 %v4828_v7  ;;  %v5075_v31 = vpack.c.bf16 %v762_v21, %v760_v22  ;;  %v763_v34 = vrot.slane %v5067_v23, 1  ;;  %v764_v36 = vrot.slane %v5078_v32, 1  ;;  %v766_v37 = vrot.slane %v5081_v33, 1  ;;  %v5152_v21 = vld [vmem:[%s6063_s3 + $0xc0] sm:$0xff]  }
  0x27   : > { %v5088_v40 = vsel %vm541_vm0, %v557_v18, %v558_v19  ;;  %v5091_v43 = vsel %vm541_vm0, 0.0, %v557_v18  ;;  %v5099_v46 = vsel %vm541_vm0, %v558_v19, 0.0  ;;  %v560_v52 = vrot.slane %v3923_v20, 7 }
  0x28   : > { %6085 = vst [vmem:[#allocation3_spill] sm:$0xff] %v5075_v31  ;;  %4212 = vmatpush3.bf16.msra.mxu1 %v4828_v7  ;;  %4341 = vmatprep.mubr.msk.bf16.mxu0 %vm904_vm2, %v5075_v31  ;;  %v768_v47 = vrot.slane %v5091_v43, 1  ;;  %v769_v51 = vrot.slane %v5088_v40, 1  ;;  %v765_v54 = vsel %vm742_vm1, %v763_v34, %v764_v36  ;;  %v767_v55 = vsel %vm742_vm1, %v764_v36, %v766_v37  ;;  %v5129_v7 = vld [vmem:[%s6063_s3 + $0x40] sm:$0xff]  }
  0x29   : > { %4372 = vmatpush3.bf16.msra.mxu0 %v4827_v2  ;;  %v771_v56 = vrot.slane %v5099_v46, 1  ;;  %v561_v57 = vrot.slane %v3924_v24, 7  ;;  %4213 = vmatprep.subr.bf16.mxu1 %v4831_v29  ;;  %v5107_v59 = vpack.c.bf16 %v767_v55, %v765_v54  ;;  %v5113_v63 = vsel %vm541_vm0, 0.0, %v560_v52 }
  0x2a   : > { %4373 = vmatprep.subr.bf16.mxu0 %v4829_v28  ;;  %v770_v62 = vsel %vm742_vm1, %v768_v47, %v769_v51  ;;  %v3927_v0 = vunpack.c.l.bf16 %v3979_v35  ;;  %v773_v6 = vrot.slane %v5113_v63, 1  ;;  %v3928_v14 = vunpack.c.h.bf16 %v3979_v35 }
  0x2b   : > { %6086 = vst [vmem:[#allocation4_spill] sm:$0xff] %v5107_v59  ;;  %4182 = vmatmul.mubr.msk.bf16.gmra.mrb[4].mxu1 %vm904_vm2, %v5075_v31  ;;  %v772_v2 = vsel %vm742_vm1, %v769_v51, %v771_v56  ;;  %v5120_v4 = vsel %vm541_vm0, %v560_v52, %v561_v57  ;;  %v5123_v5 = vsel %vm541_vm0, %v561_v57, 0.0  ;;  %4342 = vmatmul.mubr.msk.bf16.gmra.mrb[4].mxu0 %vm904_vm2, %v5107_v59  ;;  %v1361_v15 = vrot.slane %v5022_v50, 2  ;;  %v3982_v57 = vld [vmem:[%s4958_s16 + $0x48] sm:$0xff]   ;;  %v5374_v31 = vld [vmem:[%s6063_s3 + $0xe0] sm:$0xff]  }
  0x2c   : > { %4214 = vmatpush3.bf16.msra.mxu1 %v4831_v29  ;;  %v5133_v8 = vpack.c.bf16 %v772_v2, %v770_v62  ;;  %4185 = vmatprep.mubr.msk.bf16.mxu1 %vm904_vm2, %v5107_v59  ;;  %v774_v12 = vrot.slane %v5120_v4, 1  ;;  %v776_v13 = vrot.slane %v5123_v5, 1  ;;  %v563_v16 = vrot.slane %v3927_v0, 7 }
  0x2d   : > { %4374 = vmatpush3.bf16.msra.mxu0 %v4829_v28  ;;  %v3931_v17 = vunpack.c.l.bf16 %v3980_v53  ;;  %v3932_v18 = vunpack.c.h.bf16 %v3980_v53  ;;  %4215 = vmatprep.subr.bf16.mxu1 %v4833_v45  ;;  %v564_v22 = vrot.slane %v3928_v14, 7  ;;  %v1355_v50 = vsel %vm1347_vm3, %v1353_v44, %v1354_v48 }
  0x2e   : > { %6087 = vst [vmem:[#allocation5_spill] sm:$0xff] %v5133_v8  ;;  %4345 = vmatprep.mubr.msk.bf16.mxu0 %vm904_vm2, %v5133_v8  ;;  %v775_v19 = vsel %vm742_vm1, %v773_v6, %v774_v12  ;;  %v777_v20 = vsel %vm742_vm1, %v774_v12, %v776_v13  ;;  %4375 = vmatprep.subr.bf16.mxu0 %v4830_v1  ;;  %v5155_v24 = vsel %vm541_vm0, 0.0, %v563_v16  ;;  %v1363_v6 = vrot.slane %v5051_v10, 2 }
  0x2f   : > { %v566_v28 = vrot.slane %v3931_v17, 7  ;;  %v567_v29 = vrot.slane %v3932_v18, 7  ;;  %v1357_v34 = vsel %vm1347_vm3, %v1354_v48, %v1356_v58  ;;  %v5162_v26 = vpack.c.bf16 %v777_v20, %v775_v19  ;;  %v3981_v58 = vld [vmem:[%s4958_s16 + $0x40] sm:$0xff]  }
  0x30   : > { %4216 = vmatpush3.bf16.msra.mxu1 %v4833_v45  ;;  %v5165_v44 = vsel %vm541_vm0, %v563_v16, %v564_v22  ;;  %v5168_v35 = vsel %vm541_vm0, %v564_v22, 0.0  ;;  %v778_v36 = vrot.slane %v5155_v24, 1  ;;  %v1360_v52 = vsel %vm1347_vm3, %v1358_v60, %v1359_v61  ;;  %v3983_v16 = vld [vmem:[%s4958_s16 + $0x50] sm:$0xff]  }
  0x31   : > { %6088 = vst [vmem:[#allocation6_spill] sm:$0xff] %v5162_v26  ;;  %4249 = vmatprep.subr.bf16.mxu1 %v5129_v7  ;;  %v779_v37 = vrot.slane %v5165_v44, 1  ;;  %v781_v27 = vrot.slane %v5168_v35, 1  ;;  %v5175_v25 = vsel %vm541_vm0, %v566_v28, %v567_v29  ;;  %v5178_v48 = vsel %vm541_vm0, 0.0, %v566_v28  ;;  %4376 = vmatpush3.bf16.msra.mxu0 %v4830_v1 }
  0x32   : > { %v5184_v45 = vsel %vm541_vm0, %v567_v29, 0.0  ;;  %v783_v47 = vrot.slane %v5178_v48, 1  ;;  %v784_v51 = vrot.slane %v5175_v25, 1  ;;  %4409 = vmatprep.subr.bf16.mxu0 %v5152_v21  ;;  %v1362_v56 = vsel %vm1347_vm3, %v1359_v61, %v1361_v15 }
  0x33   : > { %4186 = vmatmul.mubr.msk.bf16.gmra.mrb[8].mxu1 %vm904_vm2, %v5133_v8  ;;  %v780_v53 = vsel %vm742_vm1, %v778_v36, %v779_v37  ;;  %v782_v54 = vsel %vm742_vm1, %v779_v37, %v781_v27  ;;  %v786_v55 = vrot.slane %v5184_v45, 1  ;;  %4346 = vmatmul.mubr.msk.bf16.gmra.mrb[8].mxu0 %vm904_vm2, %v5162_v26  ;;  %v3935_v0 = vunpack.c.l.bf16 %v3981_v58 }
  0x34   : > { %4189 = vmatprep.mubr.msk.bf16.mxu1 %vm904_vm2, %v5162_v26  ;;  %v5205_v60 = vpack.c.bf16 %v782_v54, %v780_v53  ;;  %v785_v62 = vsel %vm742_vm1, %v783_v47, %v784_v51  ;;  %v3936_v2 = vunpack.c.h.bf16 %v3981_v58  ;;  %v1364_v12 = vrot.slane %v5048_v9, 2 }
  0x35   : > { %v787_v1 = vsel %vm742_vm1, %v784_v51, %v786_v55  ;;  %v5213_v61 = vpack.c.bf16 %v1357_v34, %v1355_v50  ;;  %v5215_v13 = vpack.c.bf16 %v1362_v56, %v1360_v52  ;;  %v569_v14 = vrot.slane %v3935_v0, 7 }
  0x36   : > { %6089 = vst [vmem:[#allocation7_spill] sm:$0xff] %v5205_v60  ;;  %4349 = vmatprep.mubr.msk.bf16.mxu0 %vm904_vm2, %v5205_v60  ;;  %v3939_v15 = vunpack.c.l.bf16 %v3982_v57  ;;  %v5218_v17 = vpack.c.bf16 %v787_v1, %v785_v62  ;;  %v570_v18 = vrot.slane %v3936_v2, 7  ;;  %v1366_v19 = vrot.slane %v5054_v11, 2 }
  0x37   : > { %v3940_v20 = vunpack.c.h.bf16 %v3982_v57  ;;  %v5222_v22 = vsel %vm541_vm0, 0.0, %v569_v14  ;;  %v1368_v29 = vrot.slane %v5067_v23, 2  ;;  %v1369_v50 = vrot.slane %v5078_v32, 2 }
  0x38   : > { %6090 = vst [vmem:[#allocation8_spill] sm:$0xff] %v5218_v17  ;;  %v572_v28 = vrot.slane %v3939_v15, 7  ;;  %v5227_v34 = vsel %vm541_vm0, %v569_v14, %v570_v18  ;;  %v5230_v36 = vsel %vm541_vm0, %v570_v18, 0.0  ;;  %v788_v37 = vrot.slane %v5222_v22, 1 }
  0x39   : > { %v1365_v27 = vsel %vm1347_vm3, %v1363_v6, %v1364_v12  ;;  %v789_v11 = vrot.slane %v5227_v34, 1  ;;  %v791_v58 = vrot.slane %v5230_v36, 1  ;;  %v573_v47 = vrot.slane %v3940_v20, 7 }
  0x3a   : > { %v5239_v51 = vsel %vm541_vm0, 0.0, %v572_v28  ;;  %v1367_v52 = vsel %vm1347_vm3, %v1364_v12, %v1366_v19  ;;  %v1371_v54 = vrot.slane %v5081_v33, 2  ;;  %v3943_v55 = vunpack.c.l.bf16 %v3983_v16  ;;  %v3984_v12 = vld [vmem:[%s4958_s16 + $0x58] sm:$0xff]  }
  0x3b   : > { %4190 = vmatmul.mubr.msk.bf16.gmra.mrb[12].mxu1 %vm904_vm2, %v5205_v60  ;;  %v793_v53 = vrot.slane %v5239_v51, 1  ;;  %4350 = vmatmul.mubr.msk.bf16.gmra.mrb[12].mxu0 %vm904_vm2, %v5218_v17  ;;  %v790_v56 = vsel %vm742_vm1, %v788_v37, %v789_v11  ;;  %v792_v57 = vsel %vm742_vm1, %v789_v11, %v791_v58  ;;  %v5251_v62 = vsel %vm541_vm0, %v572_v28, %v573_v47 }
  0x3c   : > { %4193 = vmatprep.mubr.msk.bf16.mxu1 %vm904_vm2, %v5218_v17  ;;  %v5254_v0 = vsel %vm541_vm0, %v573_v47, 0.0  ;;  %4377 = vmatprep.mubr.msk.bf16.mxu0 %vm904_vm2, %v5213_v61  ;;  %v5258_v1 = vpack.c.bf16 %v792_v57, %v790_v56  ;;  %v794_v33 = vrot.slane %v5251_v62, 1  ;;  %v1370_v6 = vsel %vm1347_vm3, %v1368_v29, %v1369_v50  ;;  %v3985_v56 = vld [vmem:[%s4958_s16 + $0x60] sm:$0xff]  }
  0x3d   : > { %v796_v2 = vrot.slane %v5254_v0, 1  ;;  %v1372_v14 = vsel %vm1347_vm3, %v1369_v50, %v1371_v54  ;;  %v3944_v15 = vunpack.c.h.bf16 %v3983_v16  ;;  %v575_v18 = vrot.slane %v3943_v55, 7 }
  0x3e   : > { %6091 = vst [vmem:[#allocation9_spill] sm:$0xff] %v5258_v1  ;;  %v1373_v19 = vrot.slane %v5091_v43, 2  ;;  %v795_v20 = vsel %vm742_vm1, %v793_v53, %v794_v33  ;;  %v1374_v37 = vrot.slane %v5088_v40, 2  ;;  %v1376_v11 = vrot.slane %v5099_v46, 2 }
  0x3f   : > { %v797_v28 = vsel %vm742_vm1, %v794_v33, %v796_v2  ;;  %v576_v47 = vrot.slane %v3944_v15, 7  ;;  %v5273_v29 = vsel %vm541_vm0, 0.0, %v575_v18  ;;  %v3947_v50 = vunpack.c.l.bf16 %v3984_v12 }
  0x40   : > { %v5270_v58 = vpack.c.bf16 %v797_v28, %v795_v20  ;;  %v5275_v54 = vpack.c.bf16 %v1367_v52, %v1365_v27  ;;  %v5277_v16 = vpack.c.bf16 %v1372_v14, %v1370_v6  ;;  %v798_v55 = vrot.slane %v5273_v29, 1  ;;  %v4834_v27 = vld [vmem:[%s6063_s3 + $0xc8] sm:$0xff]  }
  0x41   : > { %v3948_v53 = vunpack.c.h.bf16 %v3984_v12  ;;  %v5284_v46 = vsel %vm541_vm0, %v575_v18, %v576_v47  ;;  %v5287_v57 = vsel %vm541_vm0, %v576_v47, 0.0  ;;  %v1375_v33 = vsel %vm1347_vm3, %v1373_v19, %v1374_v37 }
  0x42   : > { %6092 = vst [vmem:[#allocation10_spill] sm:$0xff] %v5270_v58  ;;  %v578_v2 = vrot.slane %v3947_v50, 7  ;;  %v799_v52 = vrot.slane %v5284_v46, 1  ;;  %v801_v6 = vrot.slane %v5287_v57, 1  ;;  %v1377_v12 = vsel %vm1347_vm3, %v1374_v37, %v1376_v11 }
  0x43   : > { %4194 = vmatmul.mubr.msk.bf16.gmra.mrb[16].mxu1 %vm904_vm2, %v5258_v1  ;;  %v579_v14 = vrot.slane %v3948_v53, 7  ;;  %4378 = vmatmul.mubr.msk.bf16.vlgmr.msra.gmra.mrb[0].mxu0 %vm904_vm2, %v5215_v13  ;;  %v1378_v18 = vrot.slane %v5113_v63, 2  ;;  %v1379_v19 = vrot.slane %v5120_v4, 2  ;;  %v3951_v20 = vunpack.c.l.bf16 %v3985_v56  ;;  %v3986_v1 = vld [vmem:[%s4958_s16 + $0x68] sm:$0xff]  }
  0x44   : > { %4197 = vmatprep.mubr.msk.bf16.mxu1 %vm904_vm2, %v5270_v58  ;;  %v5301_v15 = vsel %vm541_vm0, 0.0, %v578_v2  ;;  %4410 = vmatpush3.bf16.msra.mxu0 %v5152_v21  ;;  %v800_v28 = vsel %vm742_vm1, %v798_v55, %v799_v52  ;;  %v802_v37 = vsel %vm742_vm1, %v799_v52, %v801_v6  ;;  %v4836_v55 = vld [vmem:[%s6063_s3 + $0xd0] sm:$0xff]   ;;  %v5324_v52 = vpack.c.bf16 %v1377_v12, %v1375_v33 }
  0x45   : > { %4381 = vmatprep.mubr.msk.bf16.mxu0 %vm904_vm2, %v5275_v54  ;;  %v5311_v11 = vsel %vm541_vm0, %v578_v2, %v579_v14  ;;  %v5314_v47 = vsel %vm541_vm0, %v579_v14, 0.0  ;;  %v5316_v50 = vpack.c.bf16 %v802_v37, %v800_v28  ;;  %v803_v53 = vrot.slane %v5301_v15, 1  ;;  %4411 = vmatprep.subr.bf16.mxu0 %v4834_v27 }
  0x46   : > { %v804_v21 = vrot.slane %v5311_v11, 1  ;;  %v806_v58 = vrot.slane %v5314_v47, 1  ;;  %v1381_v2 = vrot.slane %v5123_v5, 2  ;;  %v3952_v6 = vunpack.c.h.bf16 %v3985_v56 }
  0x47   : > { %6093 = vst [vmem:[#allocation11_spill] sm:$0xff] %v5316_v50  ;;  %v581_v14 = vrot.slane %v3951_v20, 7  ;;  %v1380_v17 = vsel %vm1347_vm3, %v1378_v18, %v1379_v19  ;;  %v1383_v60 = vrot.slane %v5155_v24, 2  ;;  %v1384_v5 = vrot.slane %v5165_v44, 2  ;;  %v4838_v20 = vld [vmem:[%s6063_s3 + $0xd8] sm:$0xff]  }
  0x48   : > { %v805_v28 = vsel %vm742_vm1, %v803_v53, %v804_v21  ;;  %v807_v37 = vsel %vm742_vm1, %v804_v21, %v806_v58  ;;  %v582_v8 = vrot.slane %v3952_v6, 7  ;;  %4412 = vmatpush3.bf16.msra.mxu0 %v4834_v27  ;;  %v1386_v58 = vrot.slane %v5168_v35, 2  ;;  %v3987_v6 = vld [vmem:[%s4958_s16 + $0x70] sm:$0xff]  }
  0x49   : > { %v5332_v26 = vpack.c.bf16 %v807_v37, %v805_v28  ;;  %v5335_v33 = vsel %vm541_vm0, 0.0, %v581_v14  ;;  %v3955_v12 = vunpack.c.l.bf16 %v3986_v1  ;;  %v3956_v18 = vunpack.c.h.bf16 %v3986_v1  ;;  %4413 = vmatprep.subr.bf16.mxu0 %v4836_v55 }
  0x4a   : > { %v808_v56 = vrot.slane %v5335_v33, 1  ;;  %v1382_v27 = vsel %vm1347_vm3, %v1379_v19, %v1381_v2  ;;  %v5349_v53 = vsel %vm541_vm0, %v581_v14, %v582_v8  ;;  %v5352_v21 = vsel %vm541_vm0, %v582_v8, 0.0 }
  0x4b   : > { %6094 = vst [vmem:[#allocation12_spill] sm:$0xff] %v5332_v26  ;;  %4198 = vmatmul.mubr.msk.bf16.gmra.mrb[20].mxu1 %vm904_vm2, %v5316_v50  ;;  %v1385_v35 = vsel %vm1347_vm3, %v1383_v60, %v1384_v5  ;;  %4382 = vmatmul.mubr.msk.bf16.gmra.mrb[4].mxu0 %vm904_vm2, %v5277_v16  ;;  %v809_v1 = vrot.slane %v5349_v53, 1  ;;  %v811_v28 = vrot.slane %v5352_v21, 1  ;;  %v584_v37 = vrot.slane %v3955_v12, 7 }
  0x4c   : > { %4201 = vmatprep.mubr.msk.bf16.mxu1 %vm904_vm2, %v5332_v26  ;;  %v1388_v26 = vrot.slane %v5178_v48, 2  ;;  %4385 = vmatprep.mubr.msk.bf16.mxu0 %vm904_vm2, %v5324_v52  ;;  %v1387_v19 = vsel %vm1347_vm3, %v1384_v5, %v1386_v58  ;;  %v585_v8 = vrot.slane %v3956_v18, 7  ;;  %v1389_v2 = vrot.slane %v5175_v25, 2 }
  0x4d   : > { %v1391_v60 = vrot.slane %v5184_v45, 2  ;;  %4414 = vmatpush3.bf16.msra.mxu0 %v4836_v55  ;;  %v810_v14 = vsel %vm742_vm1, %v808_v56, %v809_v1  ;;  %v812_v50 = vsel %vm742_vm1, %v809_v1, %v811_v28  ;;  %v5369_v59 = vsel %vm541_vm0, 0.0, %v584_v37 }
  0x4e   : > { %v3959_v12 = vunpack.c.l.bf16 %v3987_v6  ;;  %4415 = vmatprep.subr.bf16.mxu0 %v4838_v20  ;;  %v5376_v5 = vpack.c.bf16 %v812_v50, %v810_v14  ;;  %v5379_v58 = vsel %vm541_vm0, %v584_v37, %v585_v8  ;;  %v5382_v45 = vsel %vm541_vm0, %v585_v8, 0.0 }
  0x4f   : > { %v813_v55 = vrot.slane %v5369_v59, 1  ;;  %v5385_v56 = vpack.c.bf16 %v1382_v27, %v1380_v17  ;;  %v5387_v18 = vpack.c.bf16 %v1387_v19, %v1385_v35  ;;  %v814_v1 = vrot.slane %v5379_v58, 1 }
  0x50   : > { %v816_v28 = vrot.slane %v5382_v45, 1  ;;  %v1390_v3 = vsel %vm1347_vm3, %v1388_v26, %v1389_v2  ;;  %v3960_v50 = vunpack.c.h.bf16 %v3987_v6  ;;  %v587_v14 = vrot.slane %v3959_v12, 7 }
  0x51   : > { %v1393_v37 = vrot.slane %v5222_v22, 2  ;;  %4416 = vmatpush3.bf16.msra.mxu0 %v4838_v20  ;;  %v815_v8 = vsel %vm742_vm1, %v813_v55, %v814_v1  ;;  %v1394_v27 = vrot.slane %v5227_v34, 2  ;;  %v1396_v35 = vrot.slane %v5230_v36, 2 }
  0x52   : > { %v817_v17 = vsel %vm742_vm1, %v814_v1, %v816_v28  ;;  %4449 = vmatprep.subr.bf16.mxu0 %v5374_v31  ;;  %v1392_v26 = vsel %vm1347_vm3, %v1389_v2, %v1391_v60  ;;  %v588_v6 = vrot.slane %v3960_v50, 7  ;;  %v5404_v20 = vsel %vm541_vm0, 0.0, %v587_v14 }
  0x53   : > { %4202 = vmatmul.mubr.msk.bf16.gmra.mrb[24].mxu1 %vm904_vm2, %v5376_v5  ;;  %v5400_v19 = vpack.c.bf16 %v817_v17, %v815_v8  ;;  %4386 = vmatmul.mubr.msk.bf16.gmra.mrb[8].mxu0 %vm904_vm2, %v5385_v56  ;;  %v818_v12 = vrot.slane %v5404_v20, 1  ;;  %v1395_v55 = vsel %vm1347_vm3, %v1393_v37, %v1394_v27  ;;  %v1397_v1 = vsel %vm1347_vm3, %v1394_v27, %v1396_v35 }
  0x54   : > { %4389 = vmatprep.mubr.msk.bf16.mxu0 %vm904_vm2, %v5387_v18  ;;  %v5416_v36 = vsel %vm541_vm0, %v587_v14, %v588_v6  ;;  %v5419_v2 = vsel %vm541_vm0, %v588_v6, 0.0  ;;  %v5421_v60 = vpack.c.bf16 %v1392_v26, %v1390_v3  ;;  %v5425_v37 = vpack.c.bf16 %v1397_v1, %v1395_v55 }
  0x55   : > { %6095 = vst [vmem:[#allocation13_spill] sm:$0xff] %v5400_v19  ;;  %4205 = vmatprep.mubr.msk.bf16.mxu1 %vm904_vm2, %v5400_v19  ;;  %v819_v28 = vrot.slane %v5416_v36, 1  ;;  %v821_v50 = vrot.slane %v5419_v2, 1  ;;  %v686_v8 = vpack.c.bf16 %v5007_v41, %v5000_v38  ;;  %v1398_v17 = vrot.slane %v5239_v51, 2 }
  0x56   : > { %v5432_v14 = vpack.c.bf16 %v5004_v39, %v5019_v49  ;;  %v1399_v35 = vrot.slane %v5251_v62, 2  ;;  %v1401_v26 = vrot.slane %v5254_v0, 2  ;;  %v1403_v55 = vrot.slane %v5273_v29, 2 }
  0x57   : > { %v820_v27 = vsel %vm742_vm1, %v818_v12, %v819_v28  ;;  %v822_v3 = vsel %vm742_vm1, %v819_v28, %v821_v50  ;;  %v1404_v1 = vrot.slane %v5284_v46, 2  ;;  %v1406_v19 = vrot.slane %v5287_v57, 2 }
  0x58   : > { %v5438_v6 = vpack.c.bf16 %v822_v3, %v820_v27  ;;  %v5445_v39 = vpack.c.bf16 %v5048_v9, %v5051_v10  ;;  %v5451_v49 = vpack.c.bf16 %v5078_v32, %v5067_v23  ;;  %v1400_v0 = vsel %vm1347_vm3, %v1398_v17, %v1399_v35 }
  0x59   : > { %v1402_v57 = vsel %vm1347_vm3, %v1399_v35, %v1401_v26  ;;  %v1405_v9 = vsel %vm1347_vm3, %v1403_v55, %v1404_v1  ;;  %v1407_v10 = vsel %vm1347_vm3, %v1404_v1, %v1406_v19  ;;  %v1348_v12 = vrot.slane %v5000_v38, 2 }
  0x5a   : > { %v5465_v23 = vpack.c.bf16 %v5088_v40, %v5091_v43  ;;  %v1349_v32 = vrot.slane %v5007_v41, 2  ;;  %v5468_v28 = vpack.c.bf16 %v1402_v57, %v1400_v0  ;;  %v1408_v50 = vrot.slane %v5301_v15, 2 }
  0x5b   : > { %4206 = vmatmul.mubr.msk.bf16.gmra.mrb[28].mxu1 %vm904_vm2, %v5438_v6  ;;  %4390 = vmatmul.mubr.msk.bf16.gmra.mrb[12].mxu0 %vm904_vm2, %v5421_v60  ;;  %v5475_v17 = vpack.c.bf16 %v1407_v10, %v1405_v9  ;;  %v1409_v19 = vrot.slane %v5311_v11, 2  ;;  %v1411_v38 = vrot.slane %v5314_v47, 2  ;;  %v5481_v40 = vpack.c.bf16 %v5165_v44, %v5155_v24  ;;  %v4837_v24 = vld [vmem:[%s6063_s3 + $0x48] sm:$0xff]  }
  0x5c   : > { %4217 = vmatprep.mubr.msk.bf16.mxu1 %vm904_vm2, %v686_v8  ;;  %4393 = vmatprep.mubr.msk.bf16.mxu0 %vm904_vm2, %v5425_v37  ;;  %v5473_v8 = vpack.c.bf16 %v5120_v4, %v5113_v63  ;;  %v1413_v41 = vrot.slane %v5335_v33, 2  ;;  %v1414_v43 = vrot.slane %v5349_v53, 2  ;;  %v5487_v27 = vpack.c.bf16 %v5175_v25, %v5178_v48  ;;  %v3988_v25 = vld [vmem:[%s4958_s16 + $0x78] sm:$0xff]  }
  0x5d   : > { %v5491_v63 = vpack.c.bf16 %v5227_v34, %v5222_v22  ;;  %v1351_v4 = vrot.slane %v5010_v42, 2  ;;  %v1416_v47 = vrot.slane %v5352_v21, 2  ;;  %v5500_v44 = vpack.c.bf16 %v5251_v62, %v5239_v51 }
  0x5e   : > { %v5507_v48 = vpack.c.bf16 %v5284_v46, %v5273_v29  ;;  %v5511_v42 = vpack.c.bf16 %v5311_v11, %v5301_v15  ;;  %v5515_v22 = vpack.c.bf16 %v5349_v53, %v5335_v33  ;;  %v5519_v34 = vpack.c.bf16 %v5379_v58, %v5369_v59 }
  0x5f   : > { %v1410_v51 = vsel %vm1347_vm3, %v1408_v50, %v1409_v19  ;;  %v5527_v62 = vpack.c.bf16 %v5416_v36, %v5404_v20  ;;  %v1412_v29 = vsel %vm1347_vm3, %v1409_v19, %v1411_v38  ;;  %v1415_v46 = vsel %vm1347_vm3, %v1413_v41, %v1414_v43  ;;  %v4843_v38 = vld [vmem:[%s6063_s3 + $0x60] sm:$0xff]  }
  0x60   : > { %v5539_v15 = vsel %vm1347_vm3, %v1348_v12, %v1349_v32  ;;  %v1417_v11 = vsel %vm1347_vm3, %v1414_v43, %v1416_v47  ;;  %v3963_v33 = vunpack.c.l.bf16 %v3988_v25  ;;  %v3964_v53 = vunpack.c.h.bf16 %v3988_v25 }
  0x61   : > { %v5543_v21 = vsel %vm1347_vm3, %v1349_v32, %v1351_v4  ;;  %v5547_v35 = vpack.c.bf16 %v1412_v29, %v1410_v51  ;;  %v1418_v26 = vrot.slane %v5369_v59, 2  ;;  %v1419_v55 = vrot.slane %v5379_v58, 2  ;;  %v4841_v59 = vld [vmem:[%s6063_s3 + $0x58] sm:$0xff]  }
  0x62   : > { %v1460_v3 = vpack.c.bf16 %v5543_v21, %v5539_v15  ;;  %v5551_v1 = vpack.c.bf16 %v1417_v11, %v1415_v46  ;;  %v1421_v0 = vrot.slane %v5382_v45, 2  ;;  %v1423_v57 = vrot.slane %v5404_v20, 2 }
  0x63   : > { %4218 = vmatmul.mubr.msk.bf16.vlgmr.msra.gmra.mrb[0].mxu1 %vm904_vm2, %v4992_v30  ;;  %4394 = vmatmul.mubr.msk.bf16.gmra.mrb[16].mxu0 %vm904_vm2, %v5468_v28  ;;  %v1424_v9 = vrot.slane %v5416_v36, 2  ;;  %v1426_v10 = vrot.slane %v5419_v2, 2  ;;  %v590_v12 = vrot.slane %v3963_v33, 7  ;;  %v591_v32 = vrot.slane %v3964_v53, 7 }
  0x64   : > { %4250 = vmatpush3.bf16.msra.mxu1 %v5129_v7  ;;  %4397 = vmatprep.mubr.msk.bf16.mxu0 %vm904_vm2, %v5475_v17  ;;  %v4839_v7 = vld [vmem:[%s6063_s3 + $0x50] sm:$0xff]   ;;  %v1420_v58 = vsel %vm1347_vm3, %v1418_v26, %v1419_v55  ;;  %v1422_v45 = vsel %vm1347_vm3, %v1419_v55, %v1421_v0  ;;  %v4842_v55 = vld [vmem:[%s6063_s3 + $0xe8] sm:$0xff]  }
  0x65   : > { %4221 = vmatprep.mubr.msk.bf16.mxu1 %vm904_vm2, %v5432_v14  ;;  %4251 = vmatprep.subr.bf16.mxu1 %v4837_v24  ;;  %v1425_v20 = vsel %vm1347_vm3, %v1423_v57, %v1424_v9  ;;  %v1427_v36 = vsel %vm1347_vm3, %v1424_v9, %v1426_v10  ;;  %v5573_v2 = vsel %vm541_vm0, %v590_v12, %v591_v32  ;;  %v5576_v50 = vsel %vm541_vm0, 0.0, %v590_v12  ;;  %v4844_v0 = vld [vmem:[%s6063_s3 + $0xf0] sm:$0xff]   ;;  %v4846_v57 = vld [vmem:[%s6063_s3 + $0xf8] sm:$0xff]   ;;  %v3970_v9 = vld [vmem:[%s404_s12] sm:$0xff]  }
  0x66   : > { %v684_v19 = vsel %vm541_vm0, %v591_v32, 0.0  ;;  %v5582_v41 = vpack.c.bf16 %v1422_v45, %v1420_v58  ;;  %v5584_v43 = vpack.c.bf16 %v1427_v36, %v1425_v20  ;;  %v2219_v4 = vrot.slane %v5576_v50, 2  ;;  %v4845_v10 = vld [vmem:[%s6063_s3 + $0x68] sm:$0xff]   ;;  %v4849_v32 = vld [vmem:[%s6063_s3 + $0x78] sm:$0xff]  }
  0x67   : > { %v2220_v47 = vrot.slane %v5573_v2, 2  ;;  %v1982_v25 = vrot.slane %v5576_v50, 1  ;;  %v1983_v51 = vrot.slane %v5573_v2, 1  ;;  %v1985_v29 = vrot.slane %v684_v19, 1 }
  0x68   : > { %4252 = vmatpush3.bf16.msra.mxu1 %v4837_v24  ;;  %v2222_v24 = vrot.slane %v684_v19, 2  ;;  %v3971_v15 = vunpack.c.l.bf16 %v3970_v9  ;;  %v3972_v21 = vunpack.c.h.bf16 %v3970_v9  ;;  %v5701_v36 = vpack.c.bf16 %v5573_v2, %v5576_v50  ;;  %v6102_v9 = vld [vmem:[#allocation8_spill] sm:$0xff] }
  0x69   : > { %4253 = vmatprep.subr.bf16.mxu1 %v4839_v7  ;;  %v2221_v46 = vsel %vm1347_vm3, %v2219_v4, %v2220_v47  ;;  %v1984_v11 = vsel %vm742_vm1, %v1982_v25, %v1983_v51  ;;  %v1986_v33 = vsel %vm742_vm1, %v1983_v51, %v1985_v29  ;;  %v4853_v4 = vld [vmem:[%s6063_s3 + $0x80] sm:$0xff]  }
  0x6a   : > { %v5602_v53 = vpack.c.bf16 %v1986_v33, %v1984_v11  ;;  %v503_v12 = vmul.f32 0.0, %v3971_v15  ;;  %v6096_v29 = vld [vmem:[#allocation2_spill] sm:$0xff]  ;;  %v6098_v11 = vld [vmem:[#allocation4_spill] sm:$0xff] }
  0x6b   : > { %4222 = vmatmul.mubr.msk.bf16.gmra.mrb[4].mxu1 %vm904_vm2, %v5445_v39  ;;  %4398 = vmatmul.mubr.msk.bf16.gmra.mrb[20].mxu0 %vm904_vm2, %v5547_v35  ;;  %v4851_v33 = vld [vmem:[%s6063_s3 + $0x110] sm:$0xff]   ;;  %v6104_v15 = vld [vmem:[#allocation10_spill] sm:$0xff] }
  0x6c   : > { %4225 = vmatprep.mubr.msk.bf16.mxu1 %vm904_vm2, %v5451_v49  ;;  %4401 = vmatprep.mubr.msk.bf16.mxu0 %vm904_vm2, %v5551_v1 }
  0x6d   : > { %4254 = vmatpush3.bf16.msra.mxu1 %v4839_v7  ;;  %v2223_v7 = vsel %vm1347_vm3, %v2220_v47, %v2222_v24 }
  0x6e   : > { %4255 = vmatprep.subr.bf16.mxu1 %v4841_v59  ;;  %v5604_v26 = vpack.c.bf16 %v2223_v7, %v2221_v46  ;;  %v4850_v46 = vld [vmem:[%s6063_s3 + $0x108] sm:$0xff]  }
  0x6f   : > { %v6097_v7 = vld [vmem:[#allocation3_spill] sm:$0xff] }
  0x71   : > { %4256 = vmatpush3.bf16.msra.mxu1 %v4841_v59  ;;  %v593_v59 = vrot.slane %v503_v12, 7  ;;  %v4856_v12 = vld [vmem:[%s6063_s3 + $0x98] sm:$0xff]  }
  0x72   : > { %4289 = vmatprep.subr.bf16.mxu1 %v4843_v38 }
  0x73   : > { %4226 = vmatmul.mubr.msk.bf16.gmra.mrb[8].mxu1 %vm904_vm2, %v5465_v23  ;;  %4402 = vmatmul.mubr.msk.bf16.gmra.mrb[24].mxu0 %vm904_vm2, %v5582_v41  ;;  %v5697_v20 = vsel %vm541_vm0, 0.0, %v593_v59 }
  0x74   : > { %4229 = vmatprep.mubr.msk.bf16.mxu1 %vm904_vm2, %v5473_v8  ;;  %4405 = vmatprep.mubr.msk.bf16.mxu0 %vm904_vm2, %v5584_v43  ;;  %v2925_v19 = vrot.slane %v5697_v20, 2 }
  0x7b   : > { %4230 = vmatmul.mubr.msk.bf16.gmra.mrb[12].mxu1 %vm904_vm2, %v5481_v40  ;;  %4406 = vmatmul.mubr.msk.bf16.gmra.mrb[28].mxu0 %vm904_vm2, %v5604_v26 }
  0x7c   : > { %4233 = vmatprep.mubr.msk.bf16.mxu1 %vm904_vm2, %v5487_v27  ;;  %4417 = vmatprep.mubr.msk.bf16.mxu0 %vm904_vm2, %v5432_v14 }
  0x83   : > { %4234 = vmatmul.mubr.msk.bf16.gmra.mrb[16].mxu1 %vm904_vm2, %v5491_v63  ;;  %4418 = vmatmul.mubr.msk.bf16.vlgmr.msra.gmra.mrb[0].mxu0 %vm904_vm2, %v5445_v39 }
  0x84   : > { %4237 = vmatprep.mubr.msk.bf16.mxu1 %vm904_vm2, %v5500_v44  ;;  %4450 = vmatpush3.bf16.msra.mxu0 %v5374_v31  ;;  %v5643_v31 = vld [vmem:[%s6063_s3 + $0x100] sm:$0xff]  }
  0x85   : > { %4421 = vmatprep.mubr.msk.bf16.mxu0 %vm904_vm2, %v5451_v49  ;;  %4451 = vmatprep.subr.bf16.mxu0 %v4842_v55 }
  0x88   : > { %4452 = vmatpush3.bf16.msra.mxu0 %v4842_v55  ;;  %v4852_v55 = vld [vmem:[%s6063_s3 + $0x118] sm:$0xff]  }
  0x89   : > { %4453 = vmatprep.subr.bf16.mxu0 %v4844_v0 }
  0x8b   : > { %4238 = vmatmul.mubr.msk.bf16.gmra.mrb[20].mxu1 %vm904_vm2, %v5507_v48  ;;  %4422 = vmatmul.mubr.msk.bf16.gmra.mrb[4].mxu0 %vm904_vm2, %v5465_v23 }
  0x8c   : > { %4241 = vmatprep.mubr.msk.bf16.mxu1 %vm904_vm2, %v5511_v42  ;;  %4425 = vmatprep.mubr.msk.bf16.mxu0 %vm904_vm2, %v5473_v8 }
  0x8d   : > { %4454 = vmatpush3.bf16.msra.mxu0 %v4844_v0  ;;  %v6099_v0 = vld [vmem:[#allocation5_spill] sm:$0xff] }
  0x8e   : > { %4455 = vmatprep.subr.bf16.mxu0 %v4846_v57 }
  0x91   : > { %4456 = vmatpush3.bf16.msra.mxu0 %v4846_v57  ;;  %v6100_v57 = vld [vmem:[#allocation6_spill] sm:$0xff] }
  0x92   : > { %4489 = vmatprep.subr.bf16.mxu0 %v5643_v31 }
  0x93   : > { %4242 = vmatmul.mubr.msk.bf16.gmra.mrb[24].mxu1 %vm904_vm2, %v5515_v22  ;;  %4426 = vmatmul.mubr.msk.bf16.gmra.mrb[8].mxu0 %vm904_vm2, %v5481_v40 }
  0x94   : > { %4245 = vmatprep.mubr.msk.bf16.mxu1 %vm904_vm2, %v5519_v34  ;;  %4429 = vmatprep.mubr.msk.bf16.mxu0 %vm904_vm2, %v5487_v27 }
  0x9b   : > { %4246 = vmatmul.mubr.msk.bf16.gmra.mrb[28].mxu1 %vm904_vm2, %v5527_v62  ;;  %4430 = vmatmul.mubr.msk.bf16.gmra.mrb[12].mxu0 %vm904_vm2, %v5491_v63 }
  0x9c   : > { %4257 = vmatprep.mubr.msk.bf16.mxu1 %vm904_vm2, %v1460_v3  ;;  %4433 = vmatprep.mubr.msk.bf16.mxu0 %vm904_vm2, %v5500_v44  ;;  %v4847_v3 = vld [vmem:[%s6063_s3 + $0x70] sm:$0xff]  }
  0xa3   : > { %4258 = vmatmul.mubr.msk.bf16.vlgmr.msra.gmra.mrb[0].mxu1 %vm904_vm2, %v5213_v61  ;;  %4434 = vmatmul.mubr.msk.bf16.gmra.mrb[16].mxu0 %vm904_vm2, %v5507_v48  ;;  %v504_v61 = vmul.f32 0.0, %v3972_v21  ;;  %v6105_v21 = vld [vmem:[#allocation11_spill] sm:$0xff] }
  0xa4   : > { %4290 = vmatpush3.bf16.msra.mxu1 %v4843_v38  ;;  %4437 = vmatprep.mubr.msk.bf16.mxu0 %vm904_vm2, %v5511_v42 }
  0xa5   : > { %4261 = vmatprep.mubr.msk.bf16.mxu1 %vm904_vm2, %v5215_v13  ;;  %4291 = vmatprep.subr.bf16.mxu1 %v4845_v10  ;;  %v594_v58 = vrot.slane %v504_v61, 7  ;;  %v2688_v61 = vrot.slane %v5697_v20, 1 }
  0xa7   : > { %v5694_v45 = vsel %vm541_vm0, %v593_v59, %v594_v58  ;;  %v5715_v2 = vsel %vm541_vm0, %v594_v58, 0.0 }
  0xa8   : > { %4292 = vmatpush3.bf16.msra.mxu1 %v4845_v10  ;;  %v2926_v38 = vrot.slane %v5694_v45, 2  ;;  %v2928_v47 = vrot.slane %v5715_v2, 2  ;;  %v2456_v25 = vpack.c.bf16 %v5694_v45, %v5697_v20  ;;  %v6103_v10 = vld [vmem:[#allocation9_spill] sm:$0xff] }
  0xa9   : > { %4293 = vmatprep.subr.bf16.mxu1 %v4847_v3 }
  0xaa   : > { %v5720_v50 = vsel %vm1347_vm3, %v2925_v19, %v2926_v38  ;;  %v5724_v24 = vsel %vm1347_vm3, %v2926_v38, %v2928_v47 }
  0xab   : > { %4262 = vmatmul.mubr.msk.bf16.gmra.mrb[4].mxu1 %vm904_vm2, %v5275_v54  ;;  %4438 = vmatmul.mubr.msk.bf16.gmra.mrb[20].mxu0 %vm904_vm2, %v5515_v22  ;;  %v2932_v51 = vpack.c.bf16 %v5724_v24, %v5720_v50 }
  0xac   : > { %4265 = vmatprep.mubr.msk.bf16.mxu1 %vm904_vm2, %v5277_v16  ;;  %4441 = vmatprep.mubr.msk.bf16.mxu0 %vm904_vm2, %v5519_v34 }
  0xad   : > { %4294 = vmatpush3.bf16.msra.mxu1 %v4847_v3  ;;  %v6106_v3 = vld [vmem:[#allocation12_spill] sm:$0xff] }
  0xae   : > { %4295 = vmatprep.subr.bf16.mxu1 %v4849_v32 }
  0xb1   : > { %4296 = vmatpush3.bf16.msra.mxu1 %v4849_v32  ;;  %v2689_v32 = vrot.slane %v5694_v45, 1 }
  0xb2   : > { %4529 = vmatprep.subr.bf16.mxu1 %v4853_v4 }
  0xb3   : > { %4266 = vmatmul.mubr.msk.bf16.gmra.mrb[8].mxu1 %vm904_vm2, %v5324_v52  ;;  %4442 = vmatmul.mubr.msk.bf16.gmra.mrb[24].mxu0 %vm904_vm2, %v5527_v62 }
  0xb4   : > { %4269 = vmatprep.mubr.msk.bf16.mxu1 %vm904_vm2, %v5385_v56  ;;  %4445 = vmatprep.mubr.msk.bf16.mxu0 %vm904_vm2, %v5701_v36 }
  0xbb   : > { %4270 = vmatmul.mubr.msk.bf16.gmra.mrb[12].mxu1 %vm904_vm2, %v5387_v18  ;;  %4446 = vmatmul.mubr.msk.bf16.gmra.mrb[28].mxu0 %vm904_vm2, %v2456_v25 }
  0xbc   : > { %4273 = vmatprep.mubr.msk.bf16.mxu1 %vm904_vm2, %v5421_v60  ;;  %4457 = vmatprep.mubr.msk.bf16.mxu0 %vm904_vm2, %v6096_v29 }
  0xc3   : > { %4274 = vmatmul.mubr.msk.bf16.gmra.mrb[16].mxu1 %vm904_vm2, %v5425_v37  ;;  %4458 = vmatmul.mubr.msk.bf16.vlgmr.msra.gmra.mrb[0].mxu0 %vm904_vm2, %v6097_v7 }
  0xc4   : > { %4277 = vmatprep.mubr.msk.bf16.mxu1 %vm904_vm2, %v5468_v28  ;;  %4490 = vmatpush3.bf16.msra.mxu0 %v5643_v31  ;;  %v6101_v31 = vld [vmem:[#allocation7_spill] sm:$0xff] }
  0xc5   : > { %4461 = vmatprep.mubr.msk.bf16.mxu0 %vm904_vm2, %v6098_v11  ;;  %4491 = vmatprep.subr.bf16.mxu0 %v4850_v46 }
  0xc8   : > { %4492 = vmatpush3.bf16.msra.mxu0 %v4850_v46 }
  0xc9   : > { %4493 = vmatprep.subr.bf16.mxu0 %v4851_v33 }
  0xcb   : > { %4278 = vmatmul.mubr.msk.bf16.gmra.mrb[20].mxu1 %vm904_vm2, %v5475_v17  ;;  %4462 = vmatmul.mubr.msk.bf16.gmra.mrb[4].mxu0 %vm904_vm2, %v6099_v0 }
  0xcc   : > { %4281 = vmatprep.mubr.msk.bf16.mxu1 %vm904_vm2, %v5547_v35  ;;  %4465 = vmatprep.mubr.msk.bf16.mxu0 %vm904_vm2, %v6100_v57 }
  0xcd   : > { %4494 = vmatpush3.bf16.msra.mxu0 %v4851_v33 }
  0xce   : > { %4495 = vmatprep.subr.bf16.mxu0 %v4852_v55 }
  0xd1   : > { %4496 = vmatpush3.bf16.msra.mxu0 %v4852_v55 }
  0xd3   : > { %4282 = vmatmul.mubr.msk.bf16.gmra.mrb[24].mxu1 %vm904_vm2, %v5551_v1  ;;  %4466 = vmatmul.mubr.msk.bf16.gmra.mrb[8].mxu0 %vm904_vm2, %v6101_v31 }
  0xd4   : > { %4285 = vmatprep.mubr.msk.bf16.mxu1 %vm904_vm2, %v5582_v41  ;;  %4469 = vmatprep.mubr.msk.bf16.mxu0 %vm904_vm2, %v6102_v9 }
  0xdb   : > { %4286 = vmatmul.mubr.msk.bf16.gmra.mrb[28].mxu1 %vm904_vm2, %v5584_v43  ;;  %4470 = vmatmul.mubr.msk.bf16.gmra.mrb[12].mxu0 %vm904_vm2, %v6103_v10 }
  0xdc   : > { %4297 = vmatprep.mubr.msk.bf16.mxu1 %vm904_vm2, %v4992_v30  ;;  %4473 = vmatprep.mubr.msk.bf16.mxu0 %vm904_vm2, %v6104_v15  ;;  %v4854_v30 = vld [vmem:[%s6063_s3 + $0x88] sm:$0xff]  }
  0xe3   : > { %4298 = vmatmul.mubr.msk.bf16.vlgmr.msra.gmra.mrb[0].mxu1 %vm904_vm2, %v5432_v14  ;;  %4474 = vmatmul.mubr.msk.bf16.gmra.mrb[16].mxu0 %vm904_vm2, %v6105_v21  ;;  %v4855_v14 = vld [vmem:[%s6063_s3 + $0x90] sm:$0xff]  }
  0xe4   : > { %4533 = vmatpush3.bf16.msra.mxu1 %v4853_v4  ;;  %4477 = vmatprep.mubr.msk.bf16.mxu0 %vm904_vm2, %v6106_v3 }
  0xe5   : > { %4301 = vmatprep.mubr.msk.bf16.mxu1 %vm904_vm2, %v5445_v39  ;;  %4530 = vmatprep.subr.bf16.mxu1 %v4854_v30  ;;  %v6107_v39 = vld [vmem:[#allocation13_spill] sm:$0xff] }
  0xe8   : > { %4534 = vmatpush3.bf16.msra.mxu1 %v4854_v30 }
  0xe9   : > { %4531 = vmatprep.subr.bf16.mxu1 %v4855_v14 }
  0xeb   : > { %4302 = vmatmul.mubr.msk.bf16.gmra.mrb[4].mxu1 %vm904_vm2, %v5451_v49  ;;  %4478 = vmatmul.mubr.msk.bf16.gmra.mrb[20].mxu0 %vm904_vm2, %v5376_v5  ;;  %v2691_v49 = vrot.slane %v5715_v2, 1 }
  0xec   : > { %4305 = vmatprep.mubr.msk.bf16.mxu1 %vm904_vm2, %v5465_v23  ;;  %4481 = vmatprep.mubr.msk.bf16.mxu0 %vm904_vm2, %v6107_v39  ;;  %v2690_v23 = vsel %vm742_vm1, %v2688_v61, %v2689_v32 }
  0xed   : > { %4535 = vmatpush3.bf16.msra.mxu1 %v4855_v14  ;;  %v2692_v59 = vsel %vm742_vm1, %v2689_v32, %v2691_v49 }
  0xee   : > { %4532 = vmatprep.subr.bf16.mxu1 %v4856_v12  ;;  %v2695_v58 = vpack.c.bf16 %v2692_v59, %v2690_v23 }
  0xf1   : > { %4536 = vmatpush3.bf16.msra.mxu1 %v4856_v12 }
  0xf3   : > { %4306 = vmatmul.mubr.msk.bf16.gmra.mrb[8].mxu1 %vm904_vm2, %v5473_v8  ;;  %4482 = vmatmul.mubr.msk.bf16.gmra.mrb[24].mxu0 %vm904_vm2, %v5438_v6 }
  0xf4   : > { %4309 = vmatprep.mubr.msk.bf16.mxu1 %vm904_vm2, %v5481_v40  ;;  %4485 = vmatprep.mubr.msk.bf16.mxu0 %vm904_vm2, %v5602_v53 }
  0xfb   : > { %4310 = vmatmul.mubr.msk.bf16.gmra.mrb[12].mxu1 %vm904_vm2, %v5487_v27  ;;  %4486 = vmatmul.mubr.msk.bf16.gmra.mrb[28].mxu0 %vm904_vm2, %v2695_v58 }
  0xfc   : > { %4313 = vmatprep.mubr.msk.bf16.mxu1 %vm904_vm2, %v5491_v63  ;;  %4497 = vmatprep.mubr.msk.bf16.mxu0 %vm904_vm2, %v5215_v13 }
 0x103   : > { %4314 = vmatmul.mubr.msk.bf16.gmra.mrb[16].mxu1 %vm904_vm2, %v5500_v44  ;;  %4498 = vmatmul.mubr.msk.bf16.vlgmr.msra.gmra.mrb[0].mxu0 %vm904_vm2, %v5275_v54 }
 0x104   : > { %4317 = vmatprep.mubr.msk.bf16.mxu1 %vm904_vm2, %v5507_v48  ;;  %4501 = vmatprep.mubr.msk.bf16.mxu0 %vm904_vm2, %v5277_v16  ;;  %v5903_v48 = vld [vmem:[%s6064_s4] ss:$0 sm:$0xff] }
 0x10b   : > { %4318 = vmatmul.mubr.msk.bf16.gmra.mrb[20].mxu1 %vm904_vm2, %v5511_v42  ;;  %4502 = vmatmul.mubr.msk.bf16.gmra.mrb[4].mxu0 %vm904_vm2, %v5324_v52 }
 0x10c   : > { %4321 = vmatprep.mubr.msk.bf16.mxu1 %vm904_vm2, %v5515_v22  ;;  %4505 = vmatprep.mubr.msk.bf16.mxu0 %vm904_vm2, %v5385_v56 }
 0x113   : > { %4322 = vmatmul.mubr.msk.bf16.gmra.mrb[24].mxu1 %vm904_vm2, %v5519_v34  ;;  %4506 = vmatmul.mubr.msk.bf16.gmra.mrb[8].mxu0 %vm904_vm2, %v5387_v18  ;;  %v5908_v34 = vld [vmem:[%s6065_s5] ss:$0 sm:$0xff] }
 0x114   : > { %4325 = vmatprep.mubr.msk.bf16.mxu1 %vm904_vm2, %v5527_v62  ;;  %4509 = vmatprep.mubr.msk.bf16.mxu0 %vm904_vm2, %v5421_v60 }
 0x11b   : > { %4326 = vmatmul.mubr.msk.bf16.gmra.mrb[28].mxu1 %vm904_vm2, %v5701_v36  ;;  %4510 = vmatmul.mubr.msk.bf16.gmra.mrb[12].mxu0 %vm904_vm2, %v5425_v37 }
 0x11c   : > { %4353 = vmatprep.mubr.msk.bf16.mxu1 %vm904_vm2, %v6103_v10  ;;  %4513 = vmatprep.mubr.msk.bf16.mxu0 %vm904_vm2, %v5468_v28 }
 0x123   : > { %4354 = vmatmul.mubr.msk.bf16.vlgmr.msra.gmra.mrb[16].mxu1 %vm904_vm2, %v6104_v15  ;;  %4514 = vmatmul.mubr.msk.bf16.gmra.mrb[16].mxu0 %vm904_vm2, %v5475_v17 }
 0x124   : > { %4357 = vmatprep.mubr.msk.bf16.mxu1 %vm904_vm2, %v6105_v21  ;;  %4517 = vmatprep.mubr.msk.bf16.mxu0 %vm904_vm2, %v5547_v35 }
 0x12b   : > { %4358 = vmatmul.mubr.msk.bf16.gmra.mrb[20].mxu1 %vm904_vm2, %v6106_v3  ;;  %4518 = vmatmul.mubr.msk.bf16.gmra.mrb[20].mxu0 %vm904_vm2, %v5551_v1 }
 0x12c   : > { %4361 = vmatprep.mubr.msk.bf16.mxu1 %vm904_vm2, %v5376_v5  ;;  %4521 = vmatprep.mubr.msk.bf16.mxu0 %vm904_vm2, %v5582_v41 }
 0x133   : > { %4362 = vmatmul.mubr.msk.bf16.gmra.mrb[24].mxu1 %vm904_vm2, %v6107_v39  ;;  %4522 = vmatmul.mubr.msk.bf16.gmra.mrb[24].mxu0 %vm904_vm2, %v5584_v43 }
 0x134   : > { %4365 = vmatprep.mubr.msk.bf16.mxu1 %vm904_vm2, %v5438_v6  ;;  %4525 = vmatprep.mubr.msk.bf16.mxu0 %vm904_vm2, %v5604_v26 }
 0x13b   : > { %4366 = vmatmul.mubr.msk.bf16.gmra.mrb[28].mxu1 %vm904_vm2, %v5602_v53  ;;  %4526 = vmatmul.mubr.msk.bf16.gmra.mrb[28].mxu0 %vm904_vm2, %v2932_v51 }
 0x1b6   : > { %v4299_v13 = vpop.f32.mrb[0].mxu1 }
 0x1b7   : > { %v1821_v54 = vpop.f32.mrb[1].mxu1 }
 0x1b8   : > { %v4300_v16 = vpop.f32.mrb[2].mxu1 }
 0x1b9   : > { %v1824_v52 = vpop.f32.mrb[3].mxu1 }
 0x1be   : > { %v4303_v5 = vpop.f32.mrb[4].mxu1 }
 0x1bf   : > { %v1837_v56 = vpop.f32.mrb[5].mxu1 }
 0x1c0   : > { %v4304_v18 = vpop.f32.mrb[6].mxu1 }
 0x1c1   : > { %v1840_v60 = vpop.f32.mrb[7].mxu1 }
 0x1c6   : > { %v4307_v37 = vpop.f32.mrb[8].mxu1 }
 0x1c7   : > { %v5886_v6 = vpop.f32.mrb[9].mxu1 }
 0x1c8   : > { %v5888_v28 = vpop.f32.mrb[10].mxu1 }
 0x1c9   : > { %v5890_v8 = vpop.f32.mrb[11].mxu1 }
 0x1ce   : > { %v5892_v17 = vpop.f32.mrb[12].mxu1 }
 0x1cf   : > { %v5894_v40 = vpop.f32.mrb[13].mxu1 }
 0x1d0   : > { %v5896_v27 = vpop.f32.mrb[14].mxu1 }
 0x1d1   : > { %v5898_v63 = vpop.f32.mrb[15].mxu1 }
 0x1d6   : > { %v4499_v44 = vpop.f32.mrb[0].mxu0 }
 0x1d7   : > { %v4537_v42 = vadd.f32 %v4499_v44, %v4299_v13  ;;  %v3003_v22 = vpop.f32.mrb[1].mxu0 }
 0x1d8   : > { %v4538_v62 = vadd.f32 %v3003_v22, %v1821_v54  ;;  %v4500_v35 = vpop.f32.mrb[2].mxu0 }
 0x1d9   : > { %v3171_v1 = vmul.f32 %v4537_v42, %v5903_v48  ;;  %v4539_v41 = vadd.f32 %v4500_v35, %v4300_v16  ;;  %v3006_v43 = vpop.f32.mrb[3].mxu0 }
 0x1da   : > { %v3169_v53 = vmul.f32 %v4538_v62, %v5903_v48  ;;  %v4540_v26 = vadd.f32 %v3006_v43, %v1824_v52 }
 0x1db   : > { %v3210_v45 = vadd.f32 %v5908_v34, %v3171_v1  ;;  %v3172_v20 = vmul.f32 %v4539_v41, %v5903_v48 }
 0x1dc   : > { %v3208_v36 = vadd.f32 %v5908_v34, %v3169_v53  ;;  %v3170_v19 = vmul.f32 %v4540_v26, %v5903_v48 }
 0x1dd   : > { %v3242_v38 = vmax.f32 %v3210_v45, 0.0  ;;  %v3211_v4 = vadd.f32 %v5908_v34, %v3172_v20 }
 0x1de   : > { %v3240_v2 = vmax.f32 %v3208_v36, 0.0  ;;  %v3209_v50 = vadd.f32 %v5908_v34, %v3170_v19  ;;  %v4503_v47 = vpop.f32.mrb[4].mxu0 }
 0x1df   : > { %v3871_v24 = vpack.c.bf16 %v3242_v38, %v3242_v38  ;;  %v3243_v25 = vmax.f32 %v3211_v4, 0.0  ;;  %v4541_v51 = vadd.f32 %v4503_v47, %v4303_v5  ;;  %v3019_v29 = vpop.f32.mrb[5].mxu0 }
 0x1e0   : > { %v3869_v46 = vpack.c.bf16 %v3240_v2, %v3240_v2  ;;  %v3241_v7 = vmax.f32 %v3209_v50, 0.0  ;;  %v4542_v11 = vadd.f32 %v3019_v29, %v1837_v56  ;;  %v4504_v33 = vpop.f32.mrb[6].mxu0 }
 0x1e1   : > { %3403 = vst.msk [vmem:[%s5921_s19 + $0x8] sm:$0xf] %vm3400_vm4, %v3871_v24  ;;  %v3872_v55 = vpack.c.bf16 %v3243_v25, %v3243_v25  ;;  %v3175_v0 = vmul.f32 %v4541_v51, %v5903_v48  ;;  %v4543_v57 = vadd.f32 %v4504_v33, %v4304_v18  ;;  %v3022_v31 = vpop.f32.mrb[7].mxu0 }
 0x1e2   : > { %3401 = vst.msk [vmem:[%s5921_s19] sm:$0xf] %vm3400_vm4, %v3869_v46  ;;  %v3870_v9 = vpack.c.bf16 %v3241_v7, %v3241_v7  ;;  %v3173_v10 = vmul.f32 %v4542_v11, %v5903_v48  ;;  %v4544_v15 = vadd.f32 %v3022_v31, %v1840_v60 }
 0x1e3   : > { %3404 = vst.msk [vmem:[%s5921_s19 + $0xc] sm:$0xf] %vm3400_vm4, %v3872_v55  ;;  %v3214_v21 = vadd.f32 %v5908_v34, %v3175_v0  ;;  %v3176_v3 = vmul.f32 %v4543_v57, %v5903_v48 }
 0x1e4   : > { %3402 = vst.msk [vmem:[%s5921_s19 + $0x4] sm:$0xf] %vm3400_vm4, %v3870_v9  ;;  %v3212_v30 = vadd.f32 %v5908_v34, %v3173_v10  ;;  %v3174_v14 = vmul.f32 %v4544_v15, %v5903_v48 }
 0x1e5   : > { %v3246_v39 = vmax.f32 %v3214_v21, 0.0  ;;  %v3215_v12 = vadd.f32 %v5908_v34, %v3176_v3 }
 0x1e6   : > { %v3244_v61 = vmax.f32 %v3212_v30, 0.0  ;;  %v3213_v32 = vadd.f32 %v5908_v34, %v3174_v14  ;;  %v4507_v49 = vpop.f32.mrb[8].mxu0 }
 0x1e7   : > { %v3875_v23 = vpack.c.bf16 %v3246_v39, %v3246_v39  ;;  %v3247_v59 = vmax.f32 %v3215_v12, 0.0  ;;  %v4545_v58 = vadd.f32 %v4507_v49, %v4307_v37  ;;  %v3035_v13 = vpop.f32.mrb[9].mxu0 }
 0x1e8   : > { %v3873_v54 = vpack.c.bf16 %v3244_v61, %v3244_v61  ;;  %v3245_v16 = vmax.f32 %v3213_v32, 0.0  ;;  %v4546_v52 = vadd.f32 %v3035_v13, %v5886_v6  ;;  %v4508_v5 = vpop.f32.mrb[10].mxu0 }
 0x1e9   : > { %3407 = vst.msk [vmem:[%s5921_s19 + $0x18] sm:$0xf] %vm3400_vm4, %v3875_v23  ;;  %v3876_v56 = vpack.c.bf16 %v3247_v59, %v3247_v59  ;;  %v3179_v18 = vmul.f32 %v4545_v58, %v5903_v48  ;;  %v4547_v60 = vadd.f32 %v4508_v5, %v5888_v28  ;;  %v3038_v44 = vpop.f32.mrb[11].mxu0 }
 0x1ea   : > { %3405 = vst.msk [vmem:[%s5921_s19 + $0x10] sm:$0xf] %vm3400_vm4, %v3873_v54  ;;  %v3874_v42 = vpack.c.bf16 %v3245_v16, %v3245_v16  ;;  %v3177_v37 = vmul.f32 %v4546_v52, %v5903_v48  ;;  %v4548_v22 = vadd.f32 %v3038_v44, %v5890_v8 }
 0x1eb   : > { %3408 = vst.msk [vmem:[%s5921_s19 + $0x1c] sm:$0xf] %vm3400_vm4, %v3876_v56  ;;  %v3218_v6 = vadd.f32 %v5908_v34, %v3179_v18  ;;  %v3180_v62 = vmul.f32 %v4547_v60, %v5903_v48 }
 0x1ec   : > { %3406 = vst.msk [vmem:[%s5921_s19 + $0x14] sm:$0xf] %vm3400_vm4, %v3874_v42  ;;  %v3216_v35 = vadd.f32 %v5908_v34, %v3177_v37  ;;  %v3178_v28 = vmul.f32 %v4548_v22, %v5903_v48 }
 0x1ed   : > { %v3250_v1 = vmax.f32 %v3218_v6, 0.0  ;;  %v3219_v41 = vadd.f32 %v5908_v34, %v3180_v62 }
 0x1ee   : > { %v3248_v43 = vmax.f32 %v3216_v35, 0.0  ;;  %v3217_v8 = vadd.f32 %v5908_v34, %v3178_v28  ;;  %v4511_v53 = vpop.f32.mrb[12].mxu0 }
 0x1ef   : > { %v3879_v26 = vpack.c.bf16 %v3250_v1, %v3250_v1  ;;  %v3251_v45 = vmax.f32 %v3219_v41, 0.0  ;;  %v4549_v20 = vadd.f32 %v4511_v53, %v5892_v17  ;;  %v3051_v36 = vpop.f32.mrb[13].mxu0 }
 0x1f0   : > { %v3877_v19 = vpack.c.bf16 %v3248_v43, %v3248_v43  ;;  %v3249_v38 = vmax.f32 %v3217_v8, 0.0  ;;  %v4550_v4 = vadd.f32 %v3051_v36, %v5894_v40  ;;  %v4512_v2 = vpop.f32.mrb[14].mxu0 }
 0x1f1   : > { %3411 = vst.msk [vmem:[%s5921_s19 + $0x28] sm:$0xf] %vm3400_vm4, %v3879_v26  ;;  %v3880_v50 = vpack.c.bf16 %v3251_v45, %v3251_v45  ;;  %v3183_v47 = vmul.f32 %v4549_v20, %v5903_v48  ;;  %v4551_v24 = vadd.f32 %v4512_v2, %v5896_v27  ;;  %v3054_v25 = vpop.f32.mrb[15].mxu0 }
 0x1f2   : > { %3409 = vst.msk [vmem:[%s5921_s19 + $0x20] sm:$0xf] %vm3400_vm4, %v3877_v19  ;;  %v3878_v51 = vpack.c.bf16 %v3249_v38, %v3249_v38  ;;  %v3181_v17 = vmul.f32 %v4550_v4, %v5903_v48  ;;  %v4552_v29 = vadd.f32 %v3054_v25, %v5898_v63 }
 0x1f3   : > { %3412 = vst.msk [vmem:[%s5921_s19 + $0x2c] sm:$0xf] %vm3400_vm4, %v3880_v50  ;;  %v3222_v40 = vadd.f32 %v5908_v34, %v3183_v47  ;;  %v3184_v46 = vmul.f32 %v4551_v24, %v5903_v48 }
 0x1f4   : > { %3410 = vst.msk [vmem:[%s5921_s19 + $0x24] sm:$0xf] %vm3400_vm4, %v3878_v51  ;;  %v3220_v7 = vadd.f32 %v5908_v34, %v3181_v17  ;;  %v3182_v27 = vmul.f32 %v4552_v29, %v5903_v48 }
 0x1f5   : > { %v3254_v11 = vmax.f32 %v3222_v40, 0.0  ;;  %v3223_v33 = vadd.f32 %v5908_v34, %v3184_v46 }
 0x1f6   : > { %v4355_v55 = vpop.f32.mrb[16].mxu1  ;;  %v3252_v0 = vmax.f32 %v3220_v7, 0.0  ;;  %v3221_v63 = vadd.f32 %v5908_v34, %v3182_v27  ;;  %v4515_v57 = vpop.f32.mrb[16].mxu0 }
 0x1f7   : > { %v2124_v31 = vpop.f32.mrb[17].mxu1  ;;  %v3883_v9 = vpack.c.bf16 %v3254_v11, %v3254_v11  ;;  %v3255_v10 = vmax.f32 %v3223_v33, 0.0  ;;  %v4553_v15 = vadd.f32 %v4515_v57, %v4355_v55  ;;  %v3067_v21 = vpop.f32.mrb[17].mxu0 }
 0x1f8   : > { %v4356_v3 = vpop.f32.mrb[18].mxu1  ;;  %v3881_v30 = vpack.c.bf16 %v3252_v0, %v3252_v0  ;;  %v3253_v14 = vmax.f32 %v3221_v63, 0.0  ;;  %v4554_v39 = vadd.f32 %v3067_v21, %v2124_v31  ;;  %v4516_v12 = vpop.f32.mrb[18].mxu0 }
 0x1f9   : > { %v2127_v61 = vpop.f32.mrb[19].mxu1  ;;  %3415 = vst.msk [vmem:[%s5921_s19 + $0x38] sm:$0xf] %vm3400_vm4, %v3883_v9  ;;  %v3884_v32 = vpack.c.bf16 %v3255_v10, %v3255_v10  ;;  %v3187_v49 = vmul.f32 %v4553_v15, %v5903_v48  ;;  %v4555_v23 = vadd.f32 %v4516_v12, %v4356_v3  ;;  %v3070_v59 = vpop.f32.mrb[19].mxu0 }
 0x1fa   : > { %3413 = vst.msk [vmem:[%s5921_s19 + $0x30] sm:$0xf] %vm3400_vm4, %v3881_v30  ;;  %v3882_v58 = vpack.c.bf16 %v3253_v14, %v3253_v14  ;;  %v3185_v13 = vmul.f32 %v4554_v39, %v5903_v48  ;;  %v4556_v54 = vadd.f32 %v3070_v59, %v2127_v61 }
 0x1fb   : > { %3416 = vst.msk [vmem:[%s5921_s19 + $0x3c] sm:$0xf] %vm3400_vm4, %v3884_v32  ;;  %v3226_v16 = vadd.f32 %v5908_v34, %v3187_v49  ;;  %v3188_v52 = vmul.f32 %v4555_v23, %v5903_v48 }
 0x1fc   : > { %3414 = vst.msk [vmem:[%s5921_s19 + $0x34] sm:$0xf] %vm3400_vm4, %v3882_v58  ;;  %v3224_v5 = vadd.f32 %v5908_v34, %v3185_v13  ;;  %v3186_v56 = vmul.f32 %v4556_v54, %v5903_v48 }
 0x1fd   : > { %v3258_v18 = vmax.f32 %v3226_v16, 0.0  ;;  %v3227_v60 = vadd.f32 %v5908_v34, %v3188_v52 }
 0x1fe   : > { %v4359_v44 = vpop.f32.mrb[20].mxu1  ;;  %v3256_v42 = vmax.f32 %v3224_v5, 0.0  ;;  %v3225_v37 = vadd.f32 %v5908_v34, %v3186_v56  ;;  %v4519_v22 = vpop.f32.mrb[20].mxu0 }
 0x1ff   : > { %v2140_v6 = vpop.f32.mrb[21].mxu1  ;;  %v3887_v62 = vpack.c.bf16 %v3258_v18, %v3258_v18  ;;  %v3259_v35 = vmax.f32 %v3227_v60, 0.0  ;;  %v4557_v28 = vadd.f32 %v4519_v22, %v4359_v44  ;;  %v3083_v1 = vpop.f32.mrb[21].mxu0 }
 0x200   : > { %v4360_v41 = vpop.f32.mrb[22].mxu1  ;;  %v3885_v43 = vpack.c.bf16 %v3256_v42, %v3256_v42  ;;  %v3257_v8 = vmax.f32 %v3225_v37, 0.0  ;;  %v4558_v53 = vadd.f32 %v3083_v1, %v2140_v6  ;;  %v4520_v26 = vpop.f32.mrb[22].mxu0 }
 0x201   : > { %v2143_v45 = vpop.f32.mrb[23].mxu1  ;;  %3419 = vst.msk [vmem:[%s5921_s19 + $0x48] sm:$0xf] %vm3400_vm4, %v3887_v62  ;;  %v3888_v20 = vpack.c.bf16 %v3259_v35, %v3259_v35  ;;  %v3191_v36 = vmul.f32 %v4557_v28, %v5903_v48  ;;  %v4559_v19 = vadd.f32 %v4520_v26, %v4360_v41  ;;  %v3086_v38 = vpop.f32.mrb[23].mxu0 }
 0x202   : > { %3417 = vst.msk [vmem:[%s5921_s19 + $0x40] sm:$0xf] %vm3400_vm4, %v3885_v43  ;;  %v3886_v4 = vpack.c.bf16 %v3257_v8, %v3257_v8  ;;  %v3189_v2 = vmul.f32 %v4558_v53, %v5903_v48  ;;  %v4560_v50 = vadd.f32 %v3086_v38, %v2143_v45 }
 0x203   : > { %3420 = vst.msk [vmem:[%s5921_s19 + $0x4c] sm:$0xf] %vm3400_vm4, %v3888_v20  ;;  %v3230_v47 = vadd.f32 %v5908_v34, %v3191_v36  ;;  %v3192_v24 = vmul.f32 %v4559_v19, %v5903_v48 }
 0x204   : > { %3418 = vst.msk [vmem:[%s5921_s19 + $0x44] sm:$0xf] %vm3400_vm4, %v3886_v4  ;;  %v3228_v25 = vadd.f32 %v5908_v34, %v3189_v2  ;;  %v3190_v51 = vmul.f32 %v4560_v50, %v5903_v48 }
 0x205   : > { %v3262_v17 = vmax.f32 %v3230_v47, 0.0  ;;  %v3231_v29 = vadd.f32 %v5908_v34, %v3192_v24 }
 0x206   : > { %v4363_v40 = vpop.f32.mrb[24].mxu1  ;;  %v3260_v46 = vmax.f32 %v3228_v25, 0.0  ;;  %v3229_v7 = vadd.f32 %v5908_v34, %v3190_v51  ;;  %v4523_v27 = vpop.f32.mrb[24].mxu0 }
 0x207   : > { %v2156_v11 = vpop.f32.mrb[25].mxu1  ;;  %v3891_v33 = vpack.c.bf16 %v3262_v17, %v3262_v17  ;;  %v3263_v55 = vmax.f32 %v3231_v29, 0.0  ;;  %v4561_v0 = vadd.f32 %v4523_v27, %v4363_v40  ;;  %v3099_v63 = vpop.f32.mrb[25].mxu0 }
 0x208   : > { %v4364_v57 = vpop.f32.mrb[26].mxu1  ;;  %v3889_v31 = vpack.c.bf16 %v3260_v46, %v3260_v46  ;;  %v3261_v9 = vmax.f32 %v3229_v7, 0.0  ;;  %v4562_v10 = vadd.f32 %v3099_v63, %v2156_v11  ;;  %v4524_v15 = vpop.f32.mrb[26].mxu0 }
 0x209   : > { %v2159_v21 = vpop.f32.mrb[27].mxu1  ;;  %3423 = vst.msk [vmem:[%s5921_s19 + $0x58] sm:$0xf] %vm3400_vm4, %v3891_v33  ;;  %v3892_v3 = vpack.c.bf16 %v3263_v55, %v3263_v55  ;;  %v3195_v30 = vmul.f32 %v4561_v0, %v5903_v48  ;;  %v4563_v14 = vadd.f32 %v4524_v15, %v4364_v57  ;;  %v3102_v39 = vpop.f32.mrb[27].mxu0 }
 0x20a   : > { %3421 = vst.msk [vmem:[%s5921_s19 + $0x50] sm:$0xf] %vm3400_vm4, %v3889_v31  ;;  %v3890_v12 = vpack.c.bf16 %v3261_v9, %v3261_v9  ;;  %v3193_v61 = vmul.f32 %v4562_v10, %v5903_v48  ;;  %v4564_v32 = vadd.f32 %v3102_v39, %v2159_v21 }
 0x20b   : > { %3424 = vst.msk [vmem:[%s5921_s19 + $0x5c] sm:$0xf] %vm3400_vm4, %v3892_v3  ;;  %v3234_v49 = vadd.f32 %v5908_v34, %v3195_v30  ;;  %v3196_v23 = vmul.f32 %v4563_v14, %v5903_v48 }
 0x20c   : > { %3422 = vst.msk [vmem:[%s5921_s19 + $0x54] sm:$0xf] %vm3400_vm4, %v3890_v12  ;;  %v3232_v59 = vadd.f32 %v5908_v34, %v3193_v61  ;;  %v3194_v58 = vmul.f32 %v4564_v32, %v5903_v48 }
 0x20d   : > { %v3266_v13 = vmax.f32 %v3234_v49, 0.0  ;;  %v3235_v54 = vadd.f32 %v5908_v34, %v3196_v23 }
 0x20e   : > { %v4367_v16 = vpop.f32.mrb[28].mxu1  ;;  %v3264_v52 = vmax.f32 %v3232_v59, 0.0  ;;  %v3233_v5 = vadd.f32 %v5908_v34, %v3194_v58  ;;  %v4527_v56 = vpop.f32.mrb[28].mxu0 }
 0x20f   : > { %v2172_v18 = vpop.f32.mrb[29].mxu1  ;;  %v3895_v60 = vpack.c.bf16 %v3266_v13, %v3266_v13  ;;  %v3267_v44 = vmax.f32 %v3235_v54, 0.0  ;;  %v4565_v42 = vadd.f32 %v4527_v56, %v4367_v16  ;;  %v3115_v37 = vpop.f32.mrb[29].mxu0 }
 0x210   : > { %v4368_v22 = vpop.f32.mrb[30].mxu1  ;;  %v3893_v6 = vpack.c.bf16 %v3264_v52, %v3264_v52  ;;  %v3265_v62 = vmax.f32 %v3233_v5, 0.0  ;;  %v4566_v35 = vadd.f32 %v3115_v37, %v2172_v18  ;;  %v4528_v28 = vpop.f32.mrb[30].mxu0 }
 0x211   : > { %v2175_v1 = vpop.f32.mrb[31].mxu1  ;;  %3427 = vst.msk [vmem:[%s5921_s19 + $0x68] sm:$0xf] %vm3400_vm4, %v3895_v60  ;;  %v3896_v41 = vpack.c.bf16 %v3267_v44, %v3267_v44  ;;  %v3199_v43 = vmul.f32 %v4565_v42, %v5903_v48  ;;  %v4567_v8 = vadd.f32 %v4528_v28, %v4368_v22  ;;  %v3118_v53 = vpop.f32.mrb[31].mxu0 }
 0x212   : > { %3425 = vst.msk [vmem:[%s5921_s19 + $0x60] sm:$0xf] %vm3400_vm4, %v3893_v6  ;;  %v3894_v26 = vpack.c.bf16 %v3265_v62, %v3265_v62  ;;  %v3197_v45 = vmul.f32 %v4566_v35, %v5903_v48  ;;  %v4568_v20 = vadd.f32 %v3118_v53, %v2175_v1 }
 0x213   : > { %3428 = vst.msk [vmem:[%s5921_s19 + $0x6c] sm:$0xf] %vm3400_vm4, %v3896_v41  ;;  %v3238_v36 = vadd.f32 %v5908_v34, %v3199_v43  ;;  %v3200_v19 = vmul.f32 %v4567_v8, %v5903_v48 }
 0x214   : > { %3426 = vst.msk [vmem:[%s5921_s19 + $0x64] sm:$0xf] %vm3400_vm4, %v3894_v26  ;;  %v3236_v38 = vadd.f32 %v5908_v34, %v3197_v45  ;;  %v3198_v4 = vmul.f32 %v4568_v20, %v5903_v48 }
 0x215   : > { %v3270_v2 = vmax.f32 %v3238_v36, 0.0  ;;  %v3239_v50 = vadd.f32 %v5908_v34, %v3200_v19 }
 0x216   : > { %v3268_v47 = vmax.f32 %v3236_v38, 0.0  ;;  %v3237_v24 = vadd.f32 %v5908_v34, %v3198_v4 }
 0x217   : > { %v3899_v25 = vpack.c.bf16 %v3270_v2, %v3270_v2  ;;  %v3271_v51 = vmax.f32 %v3239_v50, 0.0 }
 0x218   : > { %v3897_v17 = vpack.c.bf16 %v3268_v47, %v3268_v47  ;;  %v3269_v29 = vmax.f32 %v3237_v24, 0.0 }
 0x219   : > { %3431 = vst.msk [vmem:[%s5921_s19 + $0x78] sm:$0xf] %vm3400_vm4, %v3899_v25  ;;  %v3900_v40 = vpack.c.bf16 %v3271_v51, %v3271_v51 }
 0x21a   : > { %3429 = vst.msk [vmem:[%s5921_s19 + $0x70] sm:$0xf] %vm3400_vm4, %v3897_v17  ;;  %v3898_v46 = vpack.c.bf16 %v3269_v29, %v3269_v29 }
 0x21b   : > { %3432 = vst.msk [vmem:[%s5921_s19 + $0x7c] sm:$0xf] %vm3400_vm4, %v3900_v40 }
 0x21c   : > { %3430 = vst.msk [vmem:[%s5921_s19 + $0x74] sm:$0xf] %vm3400_vm4, %v3898_v46 }
 0x21d PF: > { %s16_s23 = sadd.s32 1, %s4879_s23   ;;  %s6108_s21 = smov %s4875_s22 }
 0x21e   : > { %p13_p5 = scmp.ge.s32.totalorder %s16_s23, 4   ;;  %s6109_s22 = smov %s6111_s24 }
 0x220   :  { %15 = sbr.rel (!%p13_p5) target bundleno = 2 (0x2), region = 88 }

// kernel: sndncnn_forward.9
= control target key start
LH: loop header
LB: loop body
LE: loop exit
PB: predicated region body
PF: predicated region fallthrough
CT: control target
= control target key end

     0   :  { %s4707_s18 = smov 0   ;;  %s4709_s19 = smov 0   ;;  %s5808_s0 = inlined_call_operand.vmem [shape: bf16[2,16,16,64], index: 0, kind: input, shape index: {}, may-alias: {0,1,2}]   ;;  %s5809_s1 = inlined_call_operand.vmem [shape: bf16[2,16,16,64], index: 1, kind: input, shape index: {}, may-alias: {0,1,2}]   ;;  %s5810_s2 = inlined_call_operand.vmem [shape: bf16[2,16,16,64], index: 2, kind: input, shape index: {}, may-alias: {0,1,2}]   ;;  %s5811_s3 = inlined_call_operand.vmem [shape: bf16[9,64,4], index: 3, kind: input, shape index: {}]   ;;  %s5812_s4 = inlined_call_operand.vmem [shape: f32[2,16,16,4], index: 4, kind: input, shape index: {}]   ;;  %s5813_s5 = inlined_call_operand.vmem [shape: f32[2,16,16,4], index: 5, kind: output, shape index: {}]  }
   0x1   :  { %s4711_s20 = smov 0  }
   0x2 LB: > { %s27_s21 = sadd.s32 1, %s4671_s19  ;;  %p3434_p0 = scmp.ge.s32.totalorder %s4675_s20, 1  ;;  %s4675_s20 = sphi %s4711_s20, %s15_s20   ;;  %s4671_s19 = sphi %s4709_s19, %s5856_s19   ;;  %s4667_s18 = sphi %s4707_s18, %s5855_s18  }
   0x3   : > { %p29_p1 = scmp.ge.s32.totalorder %s27_s21, 2  ;;  %p291_p2 = scmp.lt.s32.totalorder %s4675_s20, 3 }
   0x5   : > { %s5858_s21 = smov (%p29_p1, %s27_s21), 0  ;;  %p292_p3 = pnand %p3434_p0, %p291_p2 }
   0x7   : > { %295 = sbr.rel (%p292_p3) target bundleno = 535 (0x217), region = 40 }
   0xe   : > { %v4613_v0 = vld [vmem:[%s5811_s3 + $0x20] sm:$0xff]   ;;  %p366_p4 = scmp.lt.s32.totalorder %s4667_s18, 1  ;;  %v4615_v2 = vld [vmem:[%s5811_s3 + $0x28] sm:$0xff]   ;;  %v4617_v4 = vld [vmem:[%s5811_s3 + $0x30] sm:$0xff]   ;;  %vm553_vm0 = vcmask 1040384   ;;  %vm754_vm1 = vcmask 1046528  }
   0xf   : > { %v4614_v1 = vld [vmem:[%s5811_s3 + $0x80] sm:$0xff]   ;;  %3965 = vmatprep.subr.bf16.mxu1 %v4613_v0  ;;  %v4616_v3 = vld [vmem:[%s5811_s3 + $0x88] sm:$0xff]   ;;  %v4618_v5 = vld [vmem:[%s5811_s3 + $0x90] sm:$0xff]   ;;  %vm916_vm2 = vcmask 523264   ;;  %vm1359_vm3 = vcmask 1045504   ;;  %vm3238_vm4 = vcmask 31744  }
  0x10   : > { %s5860_s18 = smov (!%p366_p4, %s4667_s18), 1  ;;  %4125 = vmatprep.subr.bf16.mxu0 %v4614_v1  ;;  %3966 = vmatpush3.bf16.msra.mxu1 %v4613_v0  ;;  %v4619_v6 = vld [vmem:[%s5811_s3 + $0x38] sm:$0xff]   ;;  %v4769_v21 = vld [vmem:[%s5811_s3] sm:$0xff]  }
  0x11   : > { %4126 = vmatpush3.bf16.msra.mxu0 %v4614_v1  ;;  %3967 = vmatprep.subr.bf16.mxu1 %v4615_v2  ;;  %s4743_s7 = sshll.u32 %s5860_s18, 7  ;;  %v4620_v9 = vld [vmem:[%s5811_s3 + $0x98] sm:$0xff]   ;;  %v4622_v29 = vld [vmem:[%s5811_s3 + $0xa0] sm:$0xff]  }
  0x12   : > { %4127 = vmatprep.subr.bf16.mxu0 %v4616_v3  ;;  %s4752_s12 = scalar_lea.vmem %s5808_s0, %s4743_s7  ;;  %s388_s15 = scalar_lea.vmem %s5809_s1, %s4743_s7 }
  0x13   : > { %v3698_v7 = vld [vmem:[%s4752_s12] sm:$0xff]   ;;  %v3770_v14 = vld [vmem:[%s4752_s12 + $0x8] sm:$0xff]   ;;  %v3771_v22 = vld [vmem:[%s4752_s12 + $0x10] sm:$0xff]   ;;  %s3694_s29 = sadd.s32 120, %s4743_s7 }
  0x14   : > { %3968 = vmatpush3.bf16.msra.mxu1 %v4615_v2  ;;  %v3762_v8 = vld [vmem:[%s388_s15] sm:$0xff]   ;;  %v3699_v10 = vunpack.c.l.bf16 %v3698_v7  ;;  %v3700_v11 = vunpack.c.h.bf16 %v3698_v7  ;;  %v3703_v15 = vunpack.c.l.bf16 %v3770_v14  ;;  %v3704_v16 = vunpack.c.h.bf16 %v3770_v14  ;;  %v3772_v52 = vld [vmem:[%s4752_s12 + $0x18] sm:$0xff]   ;;  %v4623_v2 = vld [vmem:[%s5811_s3 + $0xa8] sm:$0xff]   ;;  %s405_s8 = scalar_lea.vmem %s5810_s2, %s3694_s29 }
  0x15   : > { %4128 = vmatpush3.bf16.msra.mxu0 %v4616_v3  ;;  %3969 = vmatprep.subr.bf16.mxu1 %v4617_v4  ;;  %v3763_v12 = vunpack.c.l.bf16 %v3762_v8  ;;  %v3764_v13 = vunpack.c.h.bf16 %v3762_v8  ;;  %v3707_v35 = vunpack.c.l.bf16 %v3771_v22  ;;  %v3708_v47 = vunpack.c.h.bf16 %v3771_v22  ;;  %v3773_v53 = vld [vmem:[%s4752_s12 + $0x20] sm:$0xff]   ;;  %v4624_v7 = vld [vmem:[%s5811_s3 + $0x8] sm:$0xff]  }
  0x16   : > { %4129 = vmatprep.subr.bf16.mxu0 %v4618_v5  ;;  %v557_v17 = vrot.slane %v3699_v10, 7  ;;  %v558_v18 = vrot.slane %v3700_v11, 7  ;;  %v560_v23 = vrot.slane %v3703_v15, 7  ;;  %v561_v24 = vrot.slane %v3704_v16, 7  ;;  %v3774_v8 = vld [vmem:[%s4752_s12 + $0x28] sm:$0xff]  }
  0x17   : > { %v508_v19 = vmul.f32 0.0, %v3763_v12  ;;  %v509_v20 = vmul.f32 0.0, %v3764_v13  ;;  %v563_v0 = vrot.slane %v3707_v35, 7  ;;  %v564_v1 = vrot.slane %v3708_v47, 7  ;;  %v3775_v35 = vld [vmem:[%s4752_s12 + $0x30] sm:$0xff]  }
  0x18   : > { %3970 = vmatpush3.bf16.msra.mxu1 %v4617_v4  ;;  %v4773_v25 = vsel %vm553_vm0, %v557_v17, %v558_v18  ;;  %v4776_v26 = vsel %vm553_vm0, 0.0, %v557_v17  ;;  %v4779_v27 = vsel %vm553_vm0, %v558_v18, 0.0  ;;  %v4798_v39 = vsel %vm553_vm0, %v560_v23, %v561_v24 }
  0x19   : > { %4130 = vmatpush3.bf16.msra.mxu0 %v4618_v5  ;;  %3971 = vmatprep.subr.bf16.mxu1 %v4619_v6  ;;  %v554_v28 = vrot.slane %v508_v19, 7  ;;  %v4786_v30 = vpack.c.bf16 %v4773_v25, %v4776_v26  ;;  %v760_v31 = vrot.slane %v4776_v26, 1  ;;  %v761_v32 = vrot.slane %v4773_v25, 1 }
  0x1a   : > { %4131 = vmatprep.subr.bf16.mxu0 %v4620_v9  ;;  %v763_v33 = vrot.slane %v4779_v27, 1  ;;  %v555_v34 = vrot.slane %v509_v20, 7  ;;  %v1365_v44 = vrot.slane %v4776_v26, 2  ;;  %v1366_v48 = vrot.slane %v4773_v25, 2 }
  0x1b   : > { %v762_v36 = vsel %vm754_vm1, %v760_v31, %v761_v32  ;;  %v4794_v38 = vsel %vm553_vm0, 0.0, %v554_v28  ;;  %v4813_v49 = vsel %vm553_vm0, 0.0, %v560_v23  ;;  %v4816_v50 = vsel %vm553_vm0, %v561_v24, 0.0 }
  0x1c   : > { %3972 = vmatpush3.bf16.msra.mxu1 %v4619_v6  ;;  %v764_v37 = vsel %vm754_vm1, %v761_v32, %v763_v33  ;;  %v4801_v41 = vsel %vm553_vm0, %v554_v28, %v555_v34  ;;  %v4804_v42 = vsel %vm553_vm0, %v555_v34, 0.0  ;;  %v755_v43 = vrot.slane %v4794_v38, 1  ;;  %v4625_v28 = vld [vmem:[%s5811_s3 + $0xb0] sm:$0xff]  }
  0x1d   : > { %4132 = vmatpush3.bf16.msra.mxu0 %v4620_v9  ;;  %4005 = vmatprep.subr.bf16.mxu1 %v4769_v21  ;;  %v868_v40 = vpack.c.bf16 %v764_v37, %v762_v36  ;;  %v756_v45 = vrot.slane %v4801_v41, 1  ;;  %v758_v46 = vrot.slane %v4804_v42, 1  ;;  %v766_v51 = vrot.slane %v4798_v39, 1 }
  0x1e   : > { %4165 = vmatprep.subr.bf16.mxu0 %v4622_v29  ;;  %v765_v56 = vrot.slane %v4813_v49, 1  ;;  %v768_v57 = vrot.slane %v4816_v50, 1  ;;  %v1368_v58 = vrot.slane %v4779_v27, 2  ;;  %v1370_v60 = vrot.slane %v4813_v49, 2 }
  0x1f   : > { %4133 = vmatprep.mubr.msk.bf16.mxu0 %vm916_vm2, %v868_v40  ;;  %v757_v54 = vsel %vm754_vm1, %v755_v43, %v756_v45  ;;  %v759_v55 = vsel %vm754_vm1, %v756_v45, %v758_v46  ;;  %v1371_v61 = vrot.slane %v4798_v39, 2  ;;  %v3711_v4 = vunpack.c.l.bf16 %v3772_v52  ;;  %v4629_v45 = vld [vmem:[%s5811_s3 + $0x18] sm:$0xff]  }
  0x20   : > { %v867_v59 = vpack.c.bf16 %v759_v55, %v757_v54  ;;  %v767_v62 = vsel %vm754_vm1, %v765_v56, %v766_v51  ;;  %v769_v63 = vsel %vm754_vm1, %v766_v51, %v768_v57  ;;  %v3712_v5 = vunpack.c.h.bf16 %v3772_v52 }
  0x21   : > { %v4834_v3 = vpack.c.bf16 %v769_v63, %v767_v62  ;;  %v3715_v6 = vunpack.c.l.bf16 %v3773_v53  ;;  %v4842_v9 = vsel %vm553_vm0, %v563_v0, %v564_v1  ;;  %v4845_v10 = vsel %vm553_vm0, 0.0, %v563_v0 }
  0x22   : > { %3973 = vmatprep.mubr.msk.bf16.mxu1 %vm916_vm2, %v867_v59  ;;  %v4848_v11 = vsel %vm553_vm0, %v564_v1, 0.0  ;;  %v3716_v12 = vunpack.c.h.bf16 %v3773_v53  ;;  %v770_v13 = vrot.slane %v4845_v10, 1  ;;  %v771_v14 = vrot.slane %v4842_v9, 1  ;;  %v3776_v53 = vld [vmem:[%s4752_s12 + $0x38] sm:$0xff]  }
  0x23   : > { %5831 = vst [vmem:[#allocation2_spill] sm:$0xff] %v4834_v3  ;;  %3974 = vmatmul.mubr.msk.bf16.vlgmr.msra.gmra.mrb[0].mxu1 %vm916_vm2, %v868_v40  ;;  %4134 = vmatmul.mubr.msk.bf16.vlgmr.msra.gmra.mrb[0].mxu0 %vm916_vm2, %v4834_v3  ;;  %v773_v15 = vrot.slane %v4848_v11, 1  ;;  %v566_v16 = vrot.slane %v3711_v4, 7  ;;  %v567_v17 = vrot.slane %v3712_v5, 7  ;;  %v569_v18 = vrot.slane %v3715_v6, 7  ;;  %v4626_v1 = vld [vmem:[%s5811_s3 + $0xb8] sm:$0xff]  }
  0x24   : > { %4006 = vmatpush3.bf16.msra.mxu1 %v4769_v21  ;;  %4166 = vmatpush3.bf16.msra.mxu0 %v4622_v29  ;;  %v570_v19 = vrot.slane %v3716_v12, 7  ;;  %v3719_v20 = vunpack.c.l.bf16 %v3774_v8  ;;  %v772_v22 = vsel %vm754_vm1, %v770_v13, %v771_v14  ;;  %v3720_v24 = vunpack.c.h.bf16 %v3774_v8  ;;  %v4627_v29 = vld [vmem:[%s5811_s3 + $0x10] sm:$0xff]  }
  0x25   : > { %3977 = vmatprep.mubr.msk.bf16.mxu1 %vm916_vm2, %v4834_v3  ;;  %v774_v21 = vsel %vm754_vm1, %v771_v14, %v773_v15  ;;  %v4861_v23 = vsel %vm553_vm0, 0.0, %v566_v16  ;;  %4167 = vmatprep.subr.bf16.mxu0 %v4623_v2  ;;  %v4872_v32 = vsel %vm553_vm0, %v566_v16, %v567_v17  ;;  %v4875_v33 = vsel %vm553_vm0, %v567_v17, 0.0 }
  0x26   : > { %4007 = vmatprep.subr.bf16.mxu1 %v4624_v7  ;;  %v4869_v31 = vpack.c.bf16 %v774_v21, %v772_v22  ;;  %v775_v34 = vrot.slane %v4861_v23, 1  ;;  %v776_v36 = vrot.slane %v4872_v32, 1  ;;  %v778_v37 = vrot.slane %v4875_v33, 1  ;;  %v4946_v21 = vld [vmem:[%s5811_s3 + $0xc0] sm:$0xff]  }
  0x27   : > { %v4882_v40 = vsel %vm553_vm0, %v569_v18, %v570_v19  ;;  %v4885_v43 = vsel %vm553_vm0, 0.0, %v569_v18  ;;  %v4893_v46 = vsel %vm553_vm0, %v570_v19, 0.0  ;;  %v572_v52 = vrot.slane %v3719_v20, 7 }
  0x28   : > { %5832 = vst [vmem:[#allocation3_spill] sm:$0xff] %v4869_v31  ;;  %4008 = vmatpush3.bf16.msra.mxu1 %v4624_v7  ;;  %4137 = vmatprep.mubr.msk.bf16.mxu0 %vm916_vm2, %v4869_v31  ;;  %v780_v47 = vrot.slane %v4885_v43, 1  ;;  %v781_v51 = vrot.slane %v4882_v40, 1  ;;  %v777_v54 = vsel %vm754_vm1, %v775_v34, %v776_v36  ;;  %v779_v55 = vsel %vm754_vm1, %v776_v36, %v778_v37  ;;  %v4923_v7 = vld [vmem:[%s5811_s3 + $0x40] sm:$0xff]  }
  0x29   : > { %4168 = vmatpush3.bf16.msra.mxu0 %v4623_v2  ;;  %v783_v56 = vrot.slane %v4893_v46, 1  ;;  %v573_v57 = vrot.slane %v3720_v24, 7  ;;  %4009 = vmatprep.subr.bf16.mxu1 %v4627_v29  ;;  %v4901_v59 = vpack.c.bf16 %v779_v55, %v777_v54  ;;  %v4907_v63 = vsel %vm553_vm0, 0.0, %v572_v52 }
  0x2a   : > { %4169 = vmatprep.subr.bf16.mxu0 %v4625_v28  ;;  %v782_v62 = vsel %vm754_vm1, %v780_v47, %v781_v51  ;;  %v3723_v0 = vunpack.c.l.bf16 %v3775_v35  ;;  %v785_v6 = vrot.slane %v4907_v63, 1  ;;  %v3724_v14 = vunpack.c.h.bf16 %v3775_v35 }
  0x2b   : > { %5833 = vst [vmem:[#allocation4_spill] sm:$0xff] %v4901_v59  ;;  %3978 = vmatmul.mubr.msk.bf16.gmra.mrb[4].mxu1 %vm916_vm2, %v4869_v31  ;;  %v784_v2 = vsel %vm754_vm1, %v781_v51, %v783_v56  ;;  %v4914_v4 = vsel %vm553_vm0, %v572_v52, %v573_v57  ;;  %v4917_v5 = vsel %vm553_vm0, %v573_v57, 0.0  ;;  %4138 = vmatmul.mubr.msk.bf16.gmra.mrb[4].mxu0 %vm916_vm2, %v4901_v59  ;;  %v1373_v15 = vrot.slane %v4816_v50, 2  ;;  %v3778_v57 = vld [vmem:[%s4752_s12 + $0x48] sm:$0xff]   ;;  %v5168_v31 = vld [vmem:[%s5811_s3 + $0xe0] sm:$0xff]  }
  0x2c   : > { %4010 = vmatpush3.bf16.msra.mxu1 %v4627_v29  ;;  %v4927_v8 = vpack.c.bf16 %v784_v2, %v782_v62  ;;  %3981 = vmatprep.mubr.msk.bf16.mxu1 %vm916_vm2, %v4901_v59  ;;  %v786_v12 = vrot.slane %v4914_v4, 1  ;;  %v788_v13 = vrot.slane %v4917_v5, 1  ;;  %v575_v16 = vrot.slane %v3723_v0, 7 }
  0x2d   : > { %4170 = vmatpush3.bf16.msra.mxu0 %v4625_v28  ;;  %v3727_v17 = vunpack.c.l.bf16 %v3776_v53  ;;  %v3728_v18 = vunpack.c.h.bf16 %v3776_v53  ;;  %4011 = vmatprep.subr.bf16.mxu1 %v4629_v45  ;;  %v576_v22 = vrot.slane %v3724_v14, 7  ;;  %v1367_v50 = vsel %vm1359_vm3, %v1365_v44, %v1366_v48 }
  0x2e   : > { %5834 = vst [vmem:[#allocation5_spill] sm:$0xff] %v4927_v8  ;;  %4141 = vmatprep.mubr.msk.bf16.mxu0 %vm916_vm2, %v4927_v8  ;;  %v787_v19 = vsel %vm754_vm1, %v785_v6, %v786_v12  ;;  %v789_v20 = vsel %vm754_vm1, %v786_v12, %v788_v13  ;;  %4171 = vmatprep.subr.bf16.mxu0 %v4626_v1  ;;  %v4949_v24 = vsel %vm553_vm0, 0.0, %v575_v16  ;;  %v1375_v6 = vrot.slane %v4845_v10, 2 }
  0x2f   : > { %v578_v28 = vrot.slane %v3727_v17, 7  ;;  %v579_v29 = vrot.slane %v3728_v18, 7  ;;  %v1369_v34 = vsel %vm1359_vm3, %v1366_v48, %v1368_v58  ;;  %v4956_v26 = vpack.c.bf16 %v789_v20, %v787_v19  ;;  %v3777_v58 = vld [vmem:[%s4752_s12 + $0x40] sm:$0xff]  }
  0x30   : > { %4012 = vmatpush3.bf16.msra.mxu1 %v4629_v45  ;;  %v4959_v44 = vsel %vm553_vm0, %v575_v16, %v576_v22  ;;  %v4962_v35 = vsel %vm553_vm0, %v576_v22, 0.0  ;;  %v790_v36 = vrot.slane %v4949_v24, 1  ;;  %v1372_v52 = vsel %vm1359_vm3, %v1370_v60, %v1371_v61  ;;  %v3779_v16 = vld [vmem:[%s4752_s12 + $0x50] sm:$0xff]  }
  0x31   : > { %5835 = vst [vmem:[#allocation6_spill] sm:$0xff] %v4956_v26  ;;  %4045 = vmatprep.subr.bf16.mxu1 %v4923_v7  ;;  %v791_v37 = vrot.slane %v4959_v44, 1  ;;  %v793_v27 = vrot.slane %v4962_v35, 1  ;;  %v4969_v25 = vsel %vm553_vm0, %v578_v28, %v579_v29  ;;  %v4972_v48 = vsel %vm553_vm0, 0.0, %v578_v28  ;;  %4172 = vmatpush3.bf16.msra.mxu0 %v4626_v1 }
  0x32   : > { %v4978_v45 = vsel %vm553_vm0, %v579_v29, 0.0  ;;  %v795_v47 = vrot.slane %v4972_v48, 1  ;;  %v796_v51 = vrot.slane %v4969_v25, 1  ;;  %4205 = vmatprep.subr.bf16.mxu0 %v4946_v21  ;;  %v1374_v56 = vsel %vm1359_vm3, %v1371_v61, %v1373_v15 }
  0x33   : > { %3982 = vmatmul.mubr.msk.bf16.gmra.mrb[8].mxu1 %vm916_vm2, %v4927_v8  ;;  %v792_v53 = vsel %vm754_vm1, %v790_v36, %v791_v37  ;;  %v794_v54 = vsel %vm754_vm1, %v791_v37, %v793_v27  ;;  %v798_v55 = vrot.slane %v4978_v45, 1  ;;  %4142 = vmatmul.mubr.msk.bf16.gmra.mrb[8].mxu0 %vm916_vm2, %v4956_v26  ;;  %v3731_v0 = vunpack.c.l.bf16 %v3777_v58 }
  0x34   : > { %3985 = vmatprep.mubr.msk.bf16.mxu1 %vm916_vm2, %v4956_v26  ;;  %v4999_v60 = vpack.c.bf16 %v794_v54, %v792_v53  ;;  %v797_v62 = vsel %vm754_vm1, %v795_v47, %v796_v51  ;;  %v3732_v2 = vunpack.c.h.bf16 %v3777_v58  ;;  %v1376_v12 = vrot.slane %v4842_v9, 2 }
  0x35   : > { %v799_v1 = vsel %vm754_vm1, %v796_v51, %v798_v55  ;;  %v5007_v61 = vpack.c.bf16 %v1369_v34, %v1367_v50  ;;  %v5009_v13 = vpack.c.bf16 %v1374_v56, %v1372_v52  ;;  %v581_v14 = vrot.slane %v3731_v0, 7 }
  0x36   : > { %5836 = vst [vmem:[#allocation7_spill] sm:$0xff] %v4999_v60  ;;  %4145 = vmatprep.mubr.msk.bf16.mxu0 %vm916_vm2, %v4999_v60  ;;  %v3735_v15 = vunpack.c.l.bf16 %v3778_v57  ;;  %v5012_v17 = vpack.c.bf16 %v799_v1, %v797_v62  ;;  %v582_v18 = vrot.slane %v3732_v2, 7  ;;  %v1378_v19 = vrot.slane %v4848_v11, 2 }
  0x37   : > { %v3736_v20 = vunpack.c.h.bf16 %v3778_v57  ;;  %v5016_v22 = vsel %vm553_vm0, 0.0, %v581_v14  ;;  %v1380_v29 = vrot.slane %v4861_v23, 2  ;;  %v1381_v50 = vrot.slane %v4872_v32, 2 }
  0x38   : > { %5837 = vst [vmem:[#allocation8_spill] sm:$0xff] %v5012_v17  ;;  %v584_v28 = vrot.slane %v3735_v15, 7  ;;  %v5021_v34 = vsel %vm553_vm0, %v581_v14, %v582_v18  ;;  %v5024_v36 = vsel %vm553_vm0, %v582_v18, 0.0  ;;  %v800_v37 = vrot.slane %v5016_v22, 1 }
  0x39   : > { %v1377_v27 = vsel %vm1359_vm3, %v1375_v6, %v1376_v12  ;;  %v801_v11 = vrot.slane %v5021_v34, 1  ;;  %v803_v58 = vrot.slane %v5024_v36, 1  ;;  %v585_v47 = vrot.slane %v3736_v20, 7 }
  0x3a   : > { %v5033_v51 = vsel %vm553_vm0, 0.0, %v584_v28  ;;  %v1379_v52 = vsel %vm1359_vm3, %v1376_v12, %v1378_v19  ;;  %v1383_v54 = vrot.slane %v4875_v33, 2  ;;  %v3739_v55 = vunpack.c.l.bf16 %v3779_v16  ;;  %v3780_v12 = vld [vmem:[%s4752_s12 + $0x58] sm:$0xff]  }
  0x3b   : > { %3986 = vmatmul.mubr.msk.bf16.gmra.mrb[12].mxu1 %vm916_vm2, %v4999_v60  ;;  %v805_v53 = vrot.slane %v5033_v51, 1  ;;  %4146 = vmatmul.mubr.msk.bf16.gmra.mrb[12].mxu0 %vm916_vm2, %v5012_v17  ;;  %v802_v56 = vsel %vm754_vm1, %v800_v37, %v801_v11  ;;  %v804_v57 = vsel %vm754_vm1, %v801_v11, %v803_v58  ;;  %v5045_v62 = vsel %vm553_vm0, %v584_v28, %v585_v47 }
  0x3c   : > { %3989 = vmatprep.mubr.msk.bf16.mxu1 %vm916_vm2, %v5012_v17  ;;  %v5048_v0 = vsel %vm553_vm0, %v585_v47, 0.0  ;;  %4173 = vmatprep.mubr.msk.bf16.mxu0 %vm916_vm2, %v5007_v61  ;;  %v5052_v1 = vpack.c.bf16 %v804_v57, %v802_v56  ;;  %v806_v33 = vrot.slane %v5045_v62, 1  ;;  %v1382_v6 = vsel %vm1359_vm3, %v1380_v29, %v1381_v50  ;;  %v3781_v56 = vld [vmem:[%s4752_s12 + $0x60] sm:$0xff]  }
  0x3d   : > { %v808_v2 = vrot.slane %v5048_v0, 1  ;;  %v1384_v14 = vsel %vm1359_vm3, %v1381_v50, %v1383_v54  ;;  %v3740_v15 = vunpack.c.h.bf16 %v3779_v16  ;;  %v587_v18 = vrot.slane %v3739_v55, 7 }
  0x3e   : > { %5838 = vst [vmem:[#allocation9_spill] sm:$0xff] %v5052_v1  ;;  %v1385_v19 = vrot.slane %v4885_v43, 2  ;;  %v807_v20 = vsel %vm754_vm1, %v805_v53, %v806_v33  ;;  %v1386_v37 = vrot.slane %v4882_v40, 2  ;;  %v1388_v11 = vrot.slane %v4893_v46, 2 }
  0x3f   : > { %v809_v28 = vsel %vm754_vm1, %v806_v33, %v808_v2  ;;  %v588_v47 = vrot.slane %v3740_v15, 7  ;;  %v5067_v29 = vsel %vm553_vm0, 0.0, %v587_v18  ;;  %v3743_v50 = vunpack.c.l.bf16 %v3780_v12 }
  0x40   : > { %v5064_v58 = vpack.c.bf16 %v809_v28, %v807_v20  ;;  %v5069_v54 = vpack.c.bf16 %v1379_v52, %v1377_v27  ;;  %v5071_v16 = vpack.c.bf16 %v1384_v14, %v1382_v6  ;;  %v810_v55 = vrot.slane %v5067_v29, 1  ;;  %v4630_v27 = vld [vmem:[%s5811_s3 + $0xc8] sm:$0xff]  }
  0x41   : > { %v3744_v53 = vunpack.c.h.bf16 %v3780_v12  ;;  %v5078_v46 = vsel %vm553_vm0, %v587_v18, %v588_v47  ;;  %v5081_v57 = vsel %vm553_vm0, %v588_v47, 0.0  ;;  %v1387_v33 = vsel %vm1359_vm3, %v1385_v19, %v1386_v37 }
  0x42   : > { %5839 = vst [vmem:[#allocation10_spill] sm:$0xff] %v5064_v58  ;;  %v590_v2 = vrot.slane %v3743_v50, 7  ;;  %v811_v52 = vrot.slane %v5078_v46, 1  ;;  %v813_v6 = vrot.slane %v5081_v57, 1  ;;  %v1389_v12 = vsel %vm1359_vm3, %v1386_v37, %v1388_v11 }
  0x43   : > { %3990 = vmatmul.mubr.msk.bf16.gmra.mrb[16].mxu1 %vm916_vm2, %v5052_v1  ;;  %v591_v14 = vrot.slane %v3744_v53, 7  ;;  %4174 = vmatmul.mubr.msk.bf16.vlgmr.msra.gmra.mrb[0].mxu0 %vm916_vm2, %v5009_v13  ;;  %v1390_v18 = vrot.slane %v4907_v63, 2  ;;  %v1391_v19 = vrot.slane %v4914_v4, 2  ;;  %v3747_v20 = vunpack.c.l.bf16 %v3781_v56  ;;  %v3782_v1 = vld [vmem:[%s4752_s12 + $0x68] sm:$0xff]  }
  0x44   : > { %3993 = vmatprep.mubr.msk.bf16.mxu1 %vm916_vm2, %v5064_v58  ;;  %v5095_v15 = vsel %vm553_vm0, 0.0, %v590_v2  ;;  %4206 = vmatpush3.bf16.msra.mxu0 %v4946_v21  ;;  %v812_v28 = vsel %vm754_vm1, %v810_v55, %v811_v52  ;;  %v814_v37 = vsel %vm754_vm1, %v811_v52, %v813_v6  ;;  %v4632_v55 = vld [vmem:[%s5811_s3 + $0xd0] sm:$0xff]   ;;  %v5118_v52 = vpack.c.bf16 %v1389_v12, %v1387_v33 }
  0x45   : > { %4177 = vmatprep.mubr.msk.bf16.mxu0 %vm916_vm2, %v5069_v54  ;;  %v5105_v11 = vsel %vm553_vm0, %v590_v2, %v591_v14  ;;  %v5108_v47 = vsel %vm553_vm0, %v591_v14, 0.0  ;;  %v5110_v50 = vpack.c.bf16 %v814_v37, %v812_v28  ;;  %v815_v53 = vrot.slane %v5095_v15, 1  ;;  %4207 = vmatprep.subr.bf16.mxu0 %v4630_v27 }
  0x46   : > { %v816_v21 = vrot.slane %v5105_v11, 1  ;;  %v818_v58 = vrot.slane %v5108_v47, 1  ;;  %v1393_v2 = vrot.slane %v4917_v5, 2  ;;  %v3748_v6 = vunpack.c.h.bf16 %v3781_v56 }
  0x47   : > { %5840 = vst [vmem:[#allocation11_spill] sm:$0xff] %v5110_v50  ;;  %v593_v14 = vrot.slane %v3747_v20, 7  ;;  %v1392_v17 = vsel %vm1359_vm3, %v1390_v18, %v1391_v19  ;;  %v1395_v60 = vrot.slane %v4949_v24, 2  ;;  %v1396_v5 = vrot.slane %v4959_v44, 2  ;;  %v4634_v20 = vld [vmem:[%s5811_s3 + $0xd8] sm:$0xff]  }
  0x48   : > { %v817_v28 = vsel %vm754_vm1, %v815_v53, %v816_v21  ;;  %v819_v37 = vsel %vm754_vm1, %v816_v21, %v818_v58  ;;  %v594_v8 = vrot.slane %v3748_v6, 7  ;;  %4208 = vmatpush3.bf16.msra.mxu0 %v4630_v27  ;;  %v1398_v58 = vrot.slane %v4962_v35, 2  ;;  %v3783_v6 = vld [vmem:[%s4752_s12 + $0x70] sm:$0xff]  }
  0x49   : > { %v5126_v26 = vpack.c.bf16 %v819_v37, %v817_v28  ;;  %v5129_v33 = vsel %vm553_vm0, 0.0, %v593_v14  ;;  %v3751_v12 = vunpack.c.l.bf16 %v3782_v1  ;;  %v3752_v18 = vunpack.c.h.bf16 %v3782_v1  ;;  %4209 = vmatprep.subr.bf16.mxu0 %v4632_v55 }
  0x4a   : > { %v820_v56 = vrot.slane %v5129_v33, 1  ;;  %v1394_v27 = vsel %vm1359_vm3, %v1391_v19, %v1393_v2  ;;  %v5143_v53 = vsel %vm553_vm0, %v593_v14, %v594_v8  ;;  %v5146_v21 = vsel %vm553_vm0, %v594_v8, 0.0 }
  0x4b   : > { %5841 = vst [vmem:[#allocation12_spill] sm:$0xff] %v5126_v26  ;;  %3994 = vmatmul.mubr.msk.bf16.gmra.mrb[20].mxu1 %vm916_vm2, %v5110_v50  ;;  %v1397_v35 = vsel %vm1359_vm3, %v1395_v60, %v1396_v5  ;;  %4178 = vmatmul.mubr.msk.bf16.gmra.mrb[4].mxu0 %vm916_vm2, %v5071_v16  ;;  %v821_v1 = vrot.slane %v5143_v53, 1  ;;  %v823_v28 = vrot.slane %v5146_v21, 1  ;;  %v596_v37 = vrot.slane %v3751_v12, 7 }
  0x4c   : > { %3997 = vmatprep.mubr.msk.bf16.mxu1 %vm916_vm2, %v5126_v26  ;;  %v1400_v26 = vrot.slane %v4972_v48, 2  ;;  %4181 = vmatprep.mubr.msk.bf16.mxu0 %vm916_vm2, %v5118_v52  ;;  %v1399_v19 = vsel %vm1359_vm3, %v1396_v5, %v1398_v58  ;;  %v597_v8 = vrot.slane %v3752_v18, 7  ;;  %v1401_v2 = vrot.slane %v4969_v25, 2 }
  0x4d   : > { %v1403_v60 = vrot.slane %v4978_v45, 2  ;;  %4210 = vmatpush3.bf16.msra.mxu0 %v4632_v55  ;;  %v822_v14 = vsel %vm754_vm1, %v820_v56, %v821_v1  ;;  %v824_v50 = vsel %vm754_vm1, %v821_v1, %v823_v28  ;;  %v5163_v59 = vsel %vm553_vm0, 0.0, %v596_v37 }
  0x4e   : > { %v3755_v12 = vunpack.c.l.bf16 %v3783_v6  ;;  %4211 = vmatprep.subr.bf16.mxu0 %v4634_v20  ;;  %v5170_v5 = vpack.c.bf16 %v824_v50, %v822_v14  ;;  %v5173_v58 = vsel %vm553_vm0, %v596_v37, %v597_v8  ;;  %v5176_v45 = vsel %vm553_vm0, %v597_v8, 0.0 }
  0x4f   : > { %v825_v55 = vrot.slane %v5163_v59, 1  ;;  %v5179_v56 = vpack.c.bf16 %v1394_v27, %v1392_v17  ;;  %v5181_v18 = vpack.c.bf16 %v1399_v19, %v1397_v35  ;;  %v826_v1 = vrot.slane %v5173_v58, 1 }
  0x50   : > { %v828_v28 = vrot.slane %v5176_v45, 1  ;;  %v1402_v3 = vsel %vm1359_vm3, %v1400_v26, %v1401_v2  ;;  %v3756_v50 = vunpack.c.h.bf16 %v3783_v6  ;;  %v599_v14 = vrot.slane %v3755_v12, 7 }
  0x51   : > { %v1405_v37 = vrot.slane %v5016_v22, 2  ;;  %4212 = vmatpush3.bf16.msra.mxu0 %v4634_v20  ;;  %v827_v8 = vsel %vm754_vm1, %v825_v55, %v826_v1  ;;  %v1406_v27 = vrot.slane %v5021_v34, 2  ;;  %v1408_v35 = vrot.slane %v5024_v36, 2 }
  0x52   : > { %v829_v17 = vsel %vm754_vm1, %v826_v1, %v828_v28  ;;  %4245 = vmatprep.subr.bf16.mxu0 %v5168_v31  ;;  %v1404_v26 = vsel %vm1359_vm3, %v1401_v2, %v1403_v60  ;;  %v600_v6 = vrot.slane %v3756_v50, 7  ;;  %v5198_v20 = vsel %vm553_vm0, 0.0, %v599_v14 }
  0x53   : > { %3998 = vmatmul.mubr.msk.bf16.gmra.mrb[24].mxu1 %vm916_vm2, %v5170_v5  ;;  %v5194_v19 = vpack.c.bf16 %v829_v17, %v827_v8  ;;  %4182 = vmatmul.mubr.msk.bf16.gmra.mrb[8].mxu0 %vm916_vm2, %v5179_v56  ;;  %v830_v12 = vrot.slane %v5198_v20, 1  ;;  %v1407_v55 = vsel %vm1359_vm3, %v1405_v37, %v1406_v27  ;;  %v1409_v1 = vsel %vm1359_vm3, %v1406_v27, %v1408_v35 }
  0x54   : > { %4185 = vmatprep.mubr.msk.bf16.mxu0 %vm916_vm2, %v5181_v18  ;;  %v5210_v36 = vsel %vm553_vm0, %v599_v14, %v600_v6  ;;  %v5213_v2 = vsel %vm553_vm0, %v600_v6, 0.0  ;;  %v5215_v60 = vpack.c.bf16 %v1404_v26, %v1402_v3  ;;  %v5219_v37 = vpack.c.bf16 %v1409_v1, %v1407_v55 }
  0x55   : > { %5842 = vst [vmem:[#allocation13_spill] sm:$0xff] %v5194_v19  ;;  %4001 = vmatprep.mubr.msk.bf16.mxu1 %vm916_vm2, %v5194_v19  ;;  %v831_v28 = vrot.slane %v5210_v36, 1  ;;  %v833_v50 = vrot.slane %v5213_v2, 1  ;;  %v698_v8 = vpack.c.bf16 %v4801_v41, %v4794_v38  ;;  %v1410_v17 = vrot.slane %v5033_v51, 2 }
  0x56   : > { %v5226_v14 = vpack.c.bf16 %v4798_v39, %v4813_v49  ;;  %v1411_v35 = vrot.slane %v5045_v62, 2  ;;  %v1413_v26 = vrot.slane %v5048_v0, 2  ;;  %v1415_v55 = vrot.slane %v5067_v29, 2 }
  0x57   : > { %v832_v27 = vsel %vm754_vm1, %v830_v12, %v831_v28  ;;  %v834_v3 = vsel %vm754_vm1, %v831_v28, %v833_v50  ;;  %v1416_v1 = vrot.slane %v5078_v46, 2  ;;  %v1418_v19 = vrot.slane %v5081_v57, 2 }
  0x58   : > { %v5232_v6 = vpack.c.bf16 %v834_v3, %v832_v27  ;;  %v5239_v39 = vpack.c.bf16 %v4842_v9, %v4845_v10  ;;  %v5245_v49 = vpack.c.bf16 %v4872_v32, %v4861_v23  ;;  %v1412_v0 = vsel %vm1359_vm3, %v1410_v17, %v1411_v35 }
  0x59   : > { %v1414_v57 = vsel %vm1359_vm3, %v1411_v35, %v1413_v26  ;;  %v1417_v9 = vsel %vm1359_vm3, %v1415_v55, %v1416_v1  ;;  %v1419_v10 = vsel %vm1359_vm3, %v1416_v1, %v1418_v19  ;;  %v1360_v12 = vrot.slane %v4794_v38, 2 }
  0x5a   : > { %v5259_v23 = vpack.c.bf16 %v4882_v40, %v4885_v43  ;;  %v1361_v32 = vrot.slane %v4801_v41, 2  ;;  %v5262_v28 = vpack.c.bf16 %v1414_v57, %v1412_v0  ;;  %v1420_v50 = vrot.slane %v5095_v15, 2 }
  0x5b   : > { %4002 = vmatmul.mubr.msk.bf16.gmra.mrb[28].mxu1 %vm916_vm2, %v5232_v6  ;;  %4186 = vmatmul.mubr.msk.bf16.gmra.mrb[12].mxu0 %vm916_vm2, %v5215_v60  ;;  %v5269_v17 = vpack.c.bf16 %v1419_v10, %v1417_v9  ;;  %v1421_v19 = vrot.slane %v5105_v11, 2  ;;  %v1423_v38 = vrot.slane %v5108_v47, 2  ;;  %v5275_v40 = vpack.c.bf16 %v4959_v44, %v4949_v24  ;;  %v4633_v24 = vld [vmem:[%s5811_s3 + $0x48] sm:$0xff]  }
  0x5c   : > { %4013 = vmatprep.mubr.msk.bf16.mxu1 %vm916_vm2, %v698_v8  ;;  %4189 = vmatprep.mubr.msk.bf16.mxu0 %vm916_vm2, %v5219_v37  ;;  %v5267_v8 = vpack.c.bf16 %v4914_v4, %v4907_v63  ;;  %v1425_v41 = vrot.slane %v5129_v33, 2  ;;  %v1426_v43 = vrot.slane %v5143_v53, 2  ;;  %v5281_v27 = vpack.c.bf16 %v4969_v25, %v4972_v48  ;;  %v3784_v25 = vld [vmem:[%s4752_s12 + $0x78] sm:$0xff]  }
  0x5d   : > { %v5285_v63 = vpack.c.bf16 %v5021_v34, %v5016_v22  ;;  %v1363_v4 = vrot.slane %v4804_v42, 2  ;;  %v1428_v47 = vrot.slane %v5146_v21, 2  ;;  %v5294_v44 = vpack.c.bf16 %v5045_v62, %v5033_v51 }
  0x5e   : > { %v5301_v48 = vpack.c.bf16 %v5078_v46, %v5067_v29  ;;  %v5305_v42 = vpack.c.bf16 %v5105_v11, %v5095_v15  ;;  %v5309_v22 = vpack.c.bf16 %v5143_v53, %v5129_v33  ;;  %v5313_v34 = vpack.c.bf16 %v5173_v58, %v5163_v59 }
  0x5f   : > { %v1422_v51 = vsel %vm1359_vm3, %v1420_v50, %v1421_v19  ;;  %v5321_v62 = vpack.c.bf16 %v5210_v36, %v5198_v20  ;;  %v1424_v29 = vsel %vm1359_vm3, %v1421_v19, %v1423_v38  ;;  %v1427_v46 = vsel %vm1359_vm3, %v1425_v41, %v1426_v43  ;;  %v4639_v38 = vld [vmem:[%s5811_s3 + $0x60] sm:$0xff]  }
  0x60   : > { %v5333_v15 = vsel %vm1359_vm3, %v1360_v12, %v1361_v32  ;;  %v1429_v11 = vsel %vm1359_vm3, %v1426_v43, %v1428_v47  ;;  %v3759_v33 = vunpack.c.l.bf16 %v3784_v25  ;;  %v3760_v53 = vunpack.c.h.bf16 %v3784_v25 }
  0x61   : > { %v5337_v21 = vsel %vm1359_vm3, %v1361_v32, %v1363_v4  ;;  %v5341_v35 = vpack.c.bf16 %v1424_v29, %v1422_v51  ;;  %v1430_v26 = vrot.slane %v5163_v59, 2  ;;  %v1431_v55 = vrot.slane %v5173_v58, 2  ;;  %v4637_v59 = vld [vmem:[%s5811_s3 + $0x58] sm:$0xff]  }
  0x62   : > { %v1472_v3 = vpack.c.bf16 %v5337_v21, %v5333_v15  ;;  %v5345_v1 = vpack.c.bf16 %v1429_v11, %v1427_v46  ;;  %v1433_v0 = vrot.slane %v5176_v45, 2  ;;  %v1435_v57 = vrot.slane %v5198_v20, 2 }
  0x63   : > { %4014 = vmatmul.mubr.msk.bf16.vlgmr.msra.gmra.mrb[0].mxu1 %vm916_vm2, %v4786_v30  ;;  %4190 = vmatmul.mubr.msk.bf16.gmra.mrb[16].mxu0 %vm916_vm2, %v5262_v28  ;;  %v1436_v9 = vrot.slane %v5210_v36, 2  ;;  %v1438_v10 = vrot.slane %v5213_v2, 2  ;;  %v602_v12 = vrot.slane %v3759_v33, 7  ;;  %v603_v32 = vrot.slane %v3760_v53, 7 }
  0x64   : > { %4046 = vmatpush3.bf16.msra.mxu1 %v4923_v7  ;;  %4193 = vmatprep.mubr.msk.bf16.mxu0 %vm916_vm2, %v5269_v17  ;;  %v4635_v7 = vld [vmem:[%s5811_s3 + $0x50] sm:$0xff]   ;;  %v1432_v58 = vsel %vm1359_vm3, %v1430_v26, %v1431_v55  ;;  %v1434_v45 = vsel %vm1359_vm3, %v1431_v55, %v1433_v0  ;;  %v4638_v55 = vld [vmem:[%s5811_s3 + $0xe8] sm:$0xff]  }
  0x65   : > { %4017 = vmatprep.mubr.msk.bf16.mxu1 %vm916_vm2, %v5226_v14  ;;  %4047 = vmatprep.subr.bf16.mxu1 %v4633_v24  ;;  %v1437_v20 = vsel %vm1359_vm3, %v1435_v57, %v1436_v9  ;;  %v1439_v36 = vsel %vm1359_vm3, %v1436_v9, %v1438_v10  ;;  %v5367_v2 = vsel %vm553_vm0, %v602_v12, %v603_v32  ;;  %v5370_v50 = vsel %vm553_vm0, 0.0, %v602_v12  ;;  %v4640_v0 = vld [vmem:[%s5811_s3 + $0xf0] sm:$0xff]   ;;  %v4642_v57 = vld [vmem:[%s5811_s3 + $0xf8] sm:$0xff]   ;;  %v3766_v9 = vld [vmem:[%s405_s8] sm:$0xff]   ;;  %s3695_s8 = sshll.u32 %s5860_s18, 8 }
  0x66   : > { %v696_v19 = vsel %vm553_vm0, %v603_v32, 0.0  ;;  %v5376_v41 = vpack.c.bf16 %v1434_v45, %v1432_v58  ;;  %v5378_v43 = vpack.c.bf16 %v1439_v36, %v1437_v20  ;;  %v2231_v4 = vrot.slane %v5370_v50, 2  ;;  %v4641_v10 = vld [vmem:[%s5811_s3 + $0x68] sm:$0xff]   ;;  %v4645_v32 = vld [vmem:[%s5811_s3 + $0x78] sm:$0xff]   ;;  %s5692_s7 = scalar_lea.vmem %s5812_s4, %s3695_s8  ;;  %s5699_s18 = scalar_lea.vmem %s5813_s5, %s3695_s8 }
  0x67   : > { %v2232_v47 = vrot.slane %v5367_v2, 2  ;;  %v1994_v25 = vrot.slane %v5370_v50, 1  ;;  %v1995_v51 = vrot.slane %v5367_v2, 1  ;;  %v1997_v29 = vrot.slane %v696_v19, 1 }
  0x68   : > { %4048 = vmatpush3.bf16.msra.mxu1 %v4633_v24  ;;  %v2234_v24 = vrot.slane %v696_v19, 2  ;;  %v3767_v15 = vunpack.c.l.bf16 %v3766_v9  ;;  %v3768_v21 = vunpack.c.h.bf16 %v3766_v9  ;;  %v5495_v36 = vpack.c.bf16 %v5367_v2, %v5370_v50  ;;  %v5849_v9 = vld [vmem:[#allocation8_spill] sm:$0xff] }
  0x69   : > { %4049 = vmatprep.subr.bf16.mxu1 %v4635_v7  ;;  %v2233_v46 = vsel %vm1359_vm3, %v2231_v4, %v2232_v47  ;;  %v1996_v11 = vsel %vm754_vm1, %v1994_v25, %v1995_v51  ;;  %v1998_v33 = vsel %vm754_vm1, %v1995_v51, %v1997_v29  ;;  %v4649_v4 = vld [vmem:[%s5811_s3 + $0x80] sm:$0xff]  }
  0x6a   : > { %v5396_v53 = vpack.c.bf16 %v1998_v33, %v1996_v11  ;;  %v515_v12 = vmul.f32 0.0, %v3767_v15  ;;  %v5843_v29 = vld [vmem:[#allocation2_spill] sm:$0xff]  ;;  %v5845_v11 = vld [vmem:[#allocation4_spill] sm:$0xff] }
  0x6b   : > { %4018 = vmatmul.mubr.msk.bf16.gmra.mrb[4].mxu1 %vm916_vm2, %v5239_v39  ;;  %4194 = vmatmul.mubr.msk.bf16.gmra.mrb[20].mxu0 %vm916_vm2, %v5341_v35  ;;  %v4647_v33 = vld [vmem:[%s5811_s3 + $0x110] sm:$0xff]   ;;  %v5851_v15 = vld [vmem:[#allocation10_spill] sm:$0xff] }
  0x6c   : > { %4021 = vmatprep.mubr.msk.bf16.mxu1 %vm916_vm2, %v5245_v49  ;;  %4197 = vmatprep.mubr.msk.bf16.mxu0 %vm916_vm2, %v5345_v1 }
  0x6d   : > { %4050 = vmatpush3.bf16.msra.mxu1 %v4635_v7  ;;  %v2235_v7 = vsel %vm1359_vm3, %v2232_v47, %v2234_v24 }
  0x6e   : > { %4051 = vmatprep.subr.bf16.mxu1 %v4637_v59  ;;  %v5398_v26 = vpack.c.bf16 %v2235_v7, %v2233_v46  ;;  %v4646_v46 = vld [vmem:[%s5811_s3 + $0x108] sm:$0xff]  }
  0x6f   : > { %v5844_v7 = vld [vmem:[#allocation3_spill] sm:$0xff] }
  0x71   : > { %4052 = vmatpush3.bf16.msra.mxu1 %v4637_v59  ;;  %v605_v59 = vrot.slane %v515_v12, 7  ;;  %v4652_v12 = vld [vmem:[%s5811_s3 + $0x98] sm:$0xff]  }
  0x72   : > { %4085 = vmatprep.subr.bf16.mxu1 %v4639_v38 }
  0x73   : > { %4022 = vmatmul.mubr.msk.bf16.gmra.mrb[8].mxu1 %vm916_vm2, %v5259_v23  ;;  %4198 = vmatmul.mubr.msk.bf16.gmra.mrb[24].mxu0 %vm916_vm2, %v5376_v41  ;;  %v5491_v20 = vsel %vm553_vm0, 0.0, %v605_v59 }
  0x74   : > { %4025 = vmatprep.mubr.msk.bf16.mxu1 %vm916_vm2, %v5267_v8  ;;  %4201 = vmatprep.mubr.msk.bf16.mxu0 %vm916_vm2, %v5378_v43  ;;  %v2937_v19 = vrot.slane %v5491_v20, 2 }
  0x7b   : > { %4026 = vmatmul.mubr.msk.bf16.gmra.mrb[12].mxu1 %vm916_vm2, %v5275_v40  ;;  %4202 = vmatmul.mubr.msk.bf16.gmra.mrb[28].mxu0 %vm916_vm2, %v5398_v26 }
  0x7c   : > { %4029 = vmatprep.mubr.msk.bf16.mxu1 %vm916_vm2, %v5281_v27  ;;  %4213 = vmatprep.mubr.msk.bf16.mxu0 %vm916_vm2, %v5226_v14 }
  0x83   : > { %4030 = vmatmul.mubr.msk.bf16.gmra.mrb[16].mxu1 %vm916_vm2, %v5285_v63  ;;  %4214 = vmatmul.mubr.msk.bf16.vlgmr.msra.gmra.mrb[0].mxu0 %vm916_vm2, %v5239_v39 }
  0x84   : > { %4033 = vmatprep.mubr.msk.bf16.mxu1 %vm916_vm2, %v5294_v44  ;;  %4246 = vmatpush3.bf16.msra.mxu0 %v5168_v31  ;;  %v5437_v31 = vld [vmem:[%s5811_s3 + $0x100] sm:$0xff]  }
  0x85   : > { %4217 = vmatprep.mubr.msk.bf16.mxu0 %vm916_vm2, %v5245_v49  ;;  %4247 = vmatprep.subr.bf16.mxu0 %v4638_v55 }
  0x88   : > { %4248 = vmatpush3.bf16.msra.mxu0 %v4638_v55  ;;  %v4648_v55 = vld [vmem:[%s5811_s3 + $0x118] sm:$0xff]  }
  0x89   : > { %4249 = vmatprep.subr.bf16.mxu0 %v4640_v0 }
  0x8b   : > { %4034 = vmatmul.mubr.msk.bf16.gmra.mrb[20].mxu1 %vm916_vm2, %v5301_v48  ;;  %4218 = vmatmul.mubr.msk.bf16.gmra.mrb[4].mxu0 %vm916_vm2, %v5259_v23 }
  0x8c   : > { %4037 = vmatprep.mubr.msk.bf16.mxu1 %vm916_vm2, %v5305_v42  ;;  %4221 = vmatprep.mubr.msk.bf16.mxu0 %vm916_vm2, %v5267_v8 }
  0x8d   : > { %4250 = vmatpush3.bf16.msra.mxu0 %v4640_v0  ;;  %v5846_v0 = vld [vmem:[#allocation5_spill] sm:$0xff] }
  0x8e   : > { %4251 = vmatprep.subr.bf16.mxu0 %v4642_v57 }
  0x91   : > { %4252 = vmatpush3.bf16.msra.mxu0 %v4642_v57  ;;  %v5847_v57 = vld [vmem:[#allocation6_spill] sm:$0xff] }
  0x92   : > { %4285 = vmatprep.subr.bf16.mxu0 %v5437_v31 }
  0x93   : > { %4038 = vmatmul.mubr.msk.bf16.gmra.mrb[24].mxu1 %vm916_vm2, %v5309_v22  ;;  %4222 = vmatmul.mubr.msk.bf16.gmra.mrb[8].mxu0 %vm916_vm2, %v5275_v40 }
  0x94   : > { %4041 = vmatprep.mubr.msk.bf16.mxu1 %vm916_vm2, %v5313_v34  ;;  %4225 = vmatprep.mubr.msk.bf16.mxu0 %vm916_vm2, %v5281_v27 }
  0x9b   : > { %4042 = vmatmul.mubr.msk.bf16.gmra.mrb[28].mxu1 %vm916_vm2, %v5321_v62  ;;  %4226 = vmatmul.mubr.msk.bf16.gmra.mrb[12].mxu0 %vm916_vm2, %v5285_v63 }
  0x9c   : > { %4053 = vmatprep.mubr.msk.bf16.mxu1 %vm916_vm2, %v1472_v3  ;;  %4229 = vmatprep.mubr.msk.bf16.mxu0 %vm916_vm2, %v5294_v44  ;;  %v4643_v3 = vld [vmem:[%s5811_s3 + $0x70] sm:$0xff]  }
  0xa3   : > { %4054 = vmatmul.mubr.msk.bf16.vlgmr.msra.gmra.mrb[0].mxu1 %vm916_vm2, %v5007_v61  ;;  %4230 = vmatmul.mubr.msk.bf16.gmra.mrb[16].mxu0 %vm916_vm2, %v5301_v48  ;;  %v516_v61 = vmul.f32 0.0, %v3768_v21  ;;  %v5852_v21 = vld [vmem:[#allocation11_spill] sm:$0xff] }
  0xa4   : > { %4086 = vmatpush3.bf16.msra.mxu1 %v4639_v38  ;;  %4233 = vmatprep.mubr.msk.bf16.mxu0 %vm916_vm2, %v5305_v42 }
  0xa5   : > { %4057 = vmatprep.mubr.msk.bf16.mxu1 %vm916_vm2, %v5009_v13  ;;  %4087 = vmatprep.subr.bf16.mxu1 %v4641_v10  ;;  %v606_v58 = vrot.slane %v516_v61, 7  ;;  %v2700_v61 = vrot.slane %v5491_v20, 1 }
  0xa7   : > { %v5488_v45 = vsel %vm553_vm0, %v605_v59, %v606_v58  ;;  %v5509_v2 = vsel %vm553_vm0, %v606_v58, 0.0 }
  0xa8   : > { %4088 = vmatpush3.bf16.msra.mxu1 %v4641_v10  ;;  %v2938_v38 = vrot.slane %v5488_v45, 2  ;;  %v2940_v47 = vrot.slane %v5509_v2, 2  ;;  %v2468_v25 = vpack.c.bf16 %v5488_v45, %v5491_v20  ;;  %v5850_v10 = vld [vmem:[#allocation9_spill] sm:$0xff] }
  0xa9   : > { %4089 = vmatprep.subr.bf16.mxu1 %v4643_v3 }
  0xaa   : > { %v5514_v50 = vsel %vm1359_vm3, %v2937_v19, %v2938_v38  ;;  %v5518_v24 = vsel %vm1359_vm3, %v2938_v38, %v2940_v47  ;;  %v3178_v47 = vld [vmem:[%s5692_s7 + $0x20] sm:$0xff] }
  0xab   : > { %4058 = vmatmul.mubr.msk.bf16.gmra.mrb[4].mxu1 %vm916_vm2, %v5069_v54  ;;  %4234 = vmatmul.mubr.msk.bf16.gmra.mrb[20].mxu0 %vm916_vm2, %v5309_v22  ;;  %v2944_v51 = vpack.c.bf16 %v5518_v24, %v5514_v50 }
  0xac   : > { %4061 = vmatprep.mubr.msk.bf16.mxu1 %vm916_vm2, %v5071_v16  ;;  %4237 = vmatprep.mubr.msk.bf16.mxu0 %vm916_vm2, %v5313_v34 }
  0xad   : > { %4090 = vmatpush3.bf16.msra.mxu1 %v4643_v3  ;;  %v5853_v3 = vld [vmem:[#allocation12_spill] sm:$0xff] }
  0xae   : > { %4091 = vmatprep.subr.bf16.mxu1 %v4645_v32 }
  0xb1   : > { %4092 = vmatpush3.bf16.msra.mxu1 %v4645_v32  ;;  %v2701_v32 = vrot.slane %v5488_v45, 1 }
  0xb2   : > { %4325 = vmatprep.subr.bf16.mxu1 %v4649_v4 }
  0xb3   : > { %4062 = vmatmul.mubr.msk.bf16.gmra.mrb[8].mxu1 %vm916_vm2, %v5118_v52  ;;  %4238 = vmatmul.mubr.msk.bf16.gmra.mrb[24].mxu0 %vm916_vm2, %v5321_v62 }
  0xb4   : > { %4065 = vmatprep.mubr.msk.bf16.mxu1 %vm916_vm2, %v5179_v56  ;;  %4241 = vmatprep.mubr.msk.bf16.mxu0 %vm916_vm2, %v5495_v36 }
  0xbb   : > { %4066 = vmatmul.mubr.msk.bf16.gmra.mrb[12].mxu1 %vm916_vm2, %v5181_v18  ;;  %4242 = vmatmul.mubr.msk.bf16.gmra.mrb[28].mxu0 %vm916_vm2, %v2468_v25 }
  0xbc   : > { %4069 = vmatprep.mubr.msk.bf16.mxu1 %vm916_vm2, %v5215_v60  ;;  %4253 = vmatprep.mubr.msk.bf16.mxu0 %vm916_vm2, %v5843_v29 }
  0xc3   : > { %4070 = vmatmul.mubr.msk.bf16.gmra.mrb[16].mxu1 %vm916_vm2, %v5219_v37  ;;  %4254 = vmatmul.mubr.msk.bf16.vlgmr.msra.gmra.mrb[0].mxu0 %vm916_vm2, %v5844_v7 }
  0xc4   : > { %4073 = vmatprep.mubr.msk.bf16.mxu1 %vm916_vm2, %v5262_v28  ;;  %4286 = vmatpush3.bf16.msra.mxu0 %v5437_v31  ;;  %v5848_v31 = vld [vmem:[#allocation7_spill] sm:$0xff] }
  0xc5   : > { %4257 = vmatprep.mubr.msk.bf16.mxu0 %vm916_vm2, %v5845_v11  ;;  %4287 = vmatprep.subr.bf16.mxu0 %v4646_v46  ;;  %v3179_v11 = vld [vmem:[%s5692_s7 + $0x28] sm:$0xff] }
  0xc8   : > { %4288 = vmatpush3.bf16.msra.mxu0 %v4646_v46 }
  0xc9   : > { %4289 = vmatprep.subr.bf16.mxu0 %v4647_v33 }
  0xcb   : > { %4074 = vmatmul.mubr.msk.bf16.gmra.mrb[20].mxu1 %vm916_vm2, %v5269_v17  ;;  %4258 = vmatmul.mubr.msk.bf16.gmra.mrb[4].mxu0 %vm916_vm2, %v5846_v0 }
  0xcc   : > { %4077 = vmatprep.mubr.msk.bf16.mxu1 %vm916_vm2, %v5341_v35  ;;  %4261 = vmatprep.mubr.msk.bf16.mxu0 %vm916_vm2, %v5847_v57 }
  0xcd   : > { %4290 = vmatpush3.bf16.msra.mxu0 %v4647_v33 }
  0xce   : > { %4291 = vmatprep.subr.bf16.mxu0 %v4648_v55 }
  0xd1   : > { %4292 = vmatpush3.bf16.msra.mxu0 %v4648_v55 }
  0xd3   : > { %4078 = vmatmul.mubr.msk.bf16.gmra.mrb[24].mxu1 %vm916_vm2, %v5345_v1  ;;  %4262 = vmatmul.mubr.msk.bf16.gmra.mrb[8].mxu0 %vm916_vm2, %v5848_v31 }
  0xd4   : > { %4081 = vmatprep.mubr.msk.bf16.mxu1 %vm916_vm2, %v5376_v41  ;;  %4265 = vmatprep.mubr.msk.bf16.mxu0 %vm916_vm2, %v5849_v9  ;;  %v3184_v9 = vld [vmem:[%s5692_s7 + $0x50] sm:$0xff] }
  0xdb   : > { %4082 = vmatmul.mubr.msk.bf16.gmra.mrb[28].mxu1 %vm916_vm2, %v5378_v43  ;;  %4266 = vmatmul.mubr.msk.bf16.gmra.mrb[12].mxu0 %vm916_vm2, %v5850_v10 }
  0xdc   : > { %4093 = vmatprep.mubr.msk.bf16.mxu1 %vm916_vm2, %v4786_v30  ;;  %4269 = vmatprep.mubr.msk.bf16.mxu0 %vm916_vm2, %v5851_v15  ;;  %v4650_v30 = vld [vmem:[%s5811_s3 + $0x88] sm:$0xff]  }
  0xe3   : > { %4094 = vmatmul.mubr.msk.bf16.vlgmr.msra.gmra.mrb[0].mxu1 %vm916_vm2, %v5226_v14  ;;  %4270 = vmatmul.mubr.msk.bf16.gmra.mrb[16].mxu0 %vm916_vm2, %v5852_v21  ;;  %v4651_v14 = vld [vmem:[%s5811_s3 + $0x90] sm:$0xff]  }
  0xe4   : > { %4329 = vmatpush3.bf16.msra.mxu1 %v4649_v4  ;;  %4273 = vmatprep.mubr.msk.bf16.mxu0 %vm916_vm2, %v5853_v3  ;;  %v3180_v4 = vld [vmem:[%s5692_s7 + $0x30] sm:$0xff] }
  0xe5   : > { %4097 = vmatprep.mubr.msk.bf16.mxu1 %vm916_vm2, %v5239_v39  ;;  %4326 = vmatprep.subr.bf16.mxu1 %v4650_v30  ;;  %v5854_v39 = vld [vmem:[#allocation13_spill] sm:$0xff] }
  0xe8   : > { %4330 = vmatpush3.bf16.msra.mxu1 %v4650_v30 }
  0xe9   : > { %4327 = vmatprep.subr.bf16.mxu1 %v4651_v14 }
  0xeb   : > { %4098 = vmatmul.mubr.msk.bf16.gmra.mrb[4].mxu1 %vm916_vm2, %v5245_v49  ;;  %4274 = vmatmul.mubr.msk.bf16.gmra.mrb[20].mxu0 %vm916_vm2, %v5170_v5  ;;  %v2703_v49 = vrot.slane %v5509_v2, 1 }
  0xec   : > { %4101 = vmatprep.mubr.msk.bf16.mxu1 %vm916_vm2, %v5259_v23  ;;  %4277 = vmatprep.mubr.msk.bf16.mxu0 %vm916_vm2, %v5854_v39  ;;  %v2702_v23 = vsel %vm754_vm1, %v2700_v61, %v2701_v32 }
  0xed   : > { %4331 = vmatpush3.bf16.msra.mxu1 %v4651_v14  ;;  %v2704_v59 = vsel %vm754_vm1, %v2701_v32, %v2703_v49  ;;  %v3185_v14 = vld [vmem:[%s5692_s7 + $0x58] sm:$0xff]  ;;  %v3183_v32 = vld [vmem:[%s5692_s7 + $0x48] sm:$0xff] }
  0xee   : > { %4328 = vmatprep.subr.bf16.mxu1 %v4652_v12  ;;  %v2707_v58 = vpack.c.bf16 %v2704_v59, %v2702_v23 }
  0xf1   : > { %4332 = vmatpush3.bf16.msra.mxu1 %v4652_v12 }
  0xf3   : > { %4102 = vmatmul.mubr.msk.bf16.gmra.mrb[8].mxu1 %vm916_vm2, %v5267_v8  ;;  %4278 = vmatmul.mubr.msk.bf16.gmra.mrb[24].mxu0 %vm916_vm2, %v5232_v6 }
  0xf4   : > { %4105 = vmatprep.mubr.msk.bf16.mxu1 %vm916_vm2, %v5275_v40  ;;  %4281 = vmatprep.mubr.msk.bf16.mxu0 %vm916_vm2, %v5396_v53 }
  0xfb   : > { %4106 = vmatmul.mubr.msk.bf16.gmra.mrb[12].mxu1 %vm916_vm2, %v5281_v27  ;;  %4282 = vmatmul.mubr.msk.bf16.gmra.mrb[28].mxu0 %vm916_vm2, %v2707_v58 }
  0xfc   : > { %4109 = vmatprep.mubr.msk.bf16.mxu1 %vm916_vm2, %v5285_v63  ;;  %4293 = vmatprep.mubr.msk.bf16.mxu0 %vm916_vm2, %v5009_v13 }
 0x103   : > { %4110 = vmatmul.mubr.msk.bf16.gmra.mrb[16].mxu1 %vm916_vm2, %v5294_v44  ;;  %4294 = vmatmul.mubr.msk.bf16.vlgmr.msra.gmra.mrb[0].mxu0 %vm916_vm2, %v5069_v54 }
 0x104   : > { %4113 = vmatprep.mubr.msk.bf16.mxu1 %vm916_vm2, %v5301_v48  ;;  %4297 = vmatprep.mubr.msk.bf16.mxu0 %vm916_vm2, %v5071_v16  ;;  %v3176_v48 = vld [vmem:[%s5692_s7 + $0x10] sm:$0xff] }
 0x10b   : > { %4114 = vmatmul.mubr.msk.bf16.gmra.mrb[20].mxu1 %vm916_vm2, %v5305_v42  ;;  %4298 = vmatmul.mubr.msk.bf16.gmra.mrb[4].mxu0 %vm916_vm2, %v5118_v52 }
 0x10c   : > { %4117 = vmatprep.mubr.msk.bf16.mxu1 %vm916_vm2, %v5309_v22  ;;  %4301 = vmatprep.mubr.msk.bf16.mxu0 %vm916_vm2, %v5179_v56 }
 0x113   : > { %4118 = vmatmul.mubr.msk.bf16.gmra.mrb[24].mxu1 %vm916_vm2, %v5313_v34  ;;  %4302 = vmatmul.mubr.msk.bf16.gmra.mrb[8].mxu0 %vm916_vm2, %v5181_v18  ;;  %v3174_v34 = vld [vmem:[%s5692_s7] sm:$0xff] }
 0x114   : > { %4121 = vmatprep.mubr.msk.bf16.mxu1 %vm916_vm2, %v5321_v62  ;;  %4305 = vmatprep.mubr.msk.bf16.mxu0 %vm916_vm2, %v5215_v60 }
 0x11b   : > { %4122 = vmatmul.mubr.msk.bf16.gmra.mrb[28].mxu1 %vm916_vm2, %v5495_v36  ;;  %4306 = vmatmul.mubr.msk.bf16.gmra.mrb[12].mxu0 %vm916_vm2, %v5219_v37 }
 0x11c   : > { %4149 = vmatprep.mubr.msk.bf16.mxu1 %vm916_vm2, %v5850_v10  ;;  %4309 = vmatprep.mubr.msk.bf16.mxu0 %vm916_vm2, %v5262_v28 }
 0x123   : > { %4150 = vmatmul.mubr.msk.bf16.vlgmr.msra.gmra.mrb[16].mxu1 %vm916_vm2, %v5851_v15  ;;  %4310 = vmatmul.mubr.msk.bf16.gmra.mrb[16].mxu0 %vm916_vm2, %v5269_v17 }
 0x124   : > { %4153 = vmatprep.mubr.msk.bf16.mxu1 %vm916_vm2, %v5852_v21  ;;  %4313 = vmatprep.mubr.msk.bf16.mxu0 %vm916_vm2, %v5341_v35  ;;  %v3182_v21 = vld [vmem:[%s5692_s7 + $0x40] sm:$0xff] }
 0x12b   : > { %4154 = vmatmul.mubr.msk.bf16.gmra.mrb[20].mxu1 %vm916_vm2, %v5853_v3  ;;  %4314 = vmatmul.mubr.msk.bf16.gmra.mrb[20].mxu0 %vm916_vm2, %v5345_v1  ;;  %v3177_v1 = vld [vmem:[%s5692_s7 + $0x18] sm:$0xff] }
 0x12c   : > { %4157 = vmatprep.mubr.msk.bf16.mxu1 %vm916_vm2, %v5170_v5  ;;  %4317 = vmatprep.mubr.msk.bf16.mxu0 %vm916_vm2, %v5376_v41 }
 0x133   : > { %4158 = vmatmul.mubr.msk.bf16.gmra.mrb[24].mxu1 %vm916_vm2, %v5854_v39  ;;  %4318 = vmatmul.mubr.msk.bf16.gmra.mrb[24].mxu0 %vm916_vm2, %v5378_v43 }
 0x134   : > { %4161 = vmatprep.mubr.msk.bf16.mxu1 %vm916_vm2, %v5232_v6  ;;  %4321 = vmatprep.mubr.msk.bf16.mxu0 %vm916_vm2, %v5398_v26  ;;  %v3175_v26 = vld [vmem:[%s5692_s7 + $0x8] sm:$0xff] }
 0x13b   : > { %4162 = vmatmul.mubr.msk.bf16.gmra.mrb[28].mxu1 %vm916_vm2, %v5396_v53  ;;  %4322 = vmatmul.mubr.msk.bf16.gmra.mrb[28].mxu0 %vm916_vm2, %v2944_v51  ;;  %v3181_v51 = vld [vmem:[%s5692_s7 + $0x38] sm:$0xff] }
 0x1b6   : > { %v4095_v13 = vpop.f32.mrb[0].mxu1 }
 0x1b7   : > { %v1833_v54 = vpop.f32.mrb[1].mxu1 }
 0x1b8   : > { %v4096_v16 = vpop.f32.mrb[2].mxu1 }
 0x1b9   : > { %v1836_v52 = vpop.f32.mrb[3].mxu1 }
 0x1be   : > { %v4099_v5 = vpop.f32.mrb[4].mxu1 }
 0x1bf   : > { %v1849_v56 = vpop.f32.mrb[5].mxu1 }
 0x1c0   : > { %v4100_v18 = vpop.f32.mrb[6].mxu1 }
 0x1c1   : > { %v1852_v60 = vpop.f32.mrb[7].mxu1 }
 0x1c6   : > { %v4103_v37 = vpop.f32.mrb[8].mxu1 }
 0x1c7   : > { %v1865_v6 = vpop.f32.mrb[9].mxu1 }
 0x1c8   : > { %v4104_v28 = vpop.f32.mrb[10].mxu1 }
 0x1c9   : > { %v1868_v8 = vpop.f32.mrb[11].mxu1 }
 0x1ce   : > { %v5680_v17 = vpop.f32.mrb[12].mxu1 }
 0x1cf   : > { %v5682_v40 = vpop.f32.mrb[13].mxu1 }
 0x1d0   : > { %v5684_v27 = vpop.f32.mrb[14].mxu1 }
 0x1d1   : > { %v5687_v63 = vpop.f32.mrb[15].mxu1 }
 0x1d6   : > { %v4295_v44 = vpop.f32.mrb[0].mxu0 }
 0x1d7   : > { %v4333_v42 = vadd.f32 %v4295_v44, %v4095_v13  ;;  %v3015_v22 = vpop.f32.mrb[1].mxu0 }
 0x1d8   : > { %v4334_v62 = vadd.f32 %v3015_v22, %v1833_v54  ;;  %v4296_v35 = vpop.f32.mrb[2].mxu0  ;;  %v3188_v54 = vld [vmem:[%s5692_s7 + $0x70] sm:$0xff] }
 0x1d9   : > { %v3208_v41 = vsub.f32 %v3176_v48, %v4333_v42  ;;  %v4335_v43 = vadd.f32 %v4296_v35, %v4096_v16  ;;  %v3018_v53 = vpop.f32.mrb[3].mxu0  ;;  %v3192_v22 = vld [vmem:[%s5692_s7 + $0x90] sm:$0xff]  ;;  %v3190_v35 = vld [vmem:[%s5692_s7 + $0x80] sm:$0xff] }
 0x1da   : > { %v3206_v45 = vsub.f32 %v3174_v34, %v4334_v62  ;;  %v4336_v20 = vadd.f32 %v3018_v53, %v1836_v52  ;;  %v3193_v53 = vld [vmem:[%s5692_s7 + $0x98] sm:$0xff] }
 0x1db   : > { %3241 = vst.msk [vmem:[%s5699_s18 + $0x10] sm:$0xff] %vm3238_vm4, %v3208_v41  ;;  %v3209_v36 = vsub.f32 %v3177_v1, %v4335_v43 }
 0x1dc   : > { %3239 = vst.msk [vmem:[%s5699_s18] sm:$0xff] %vm3238_vm4, %v3206_v45  ;;  %v3207_v19 = vsub.f32 %v3175_v26, %v4336_v20 }
 0x1dd   : > { %3242 = vst.msk [vmem:[%s5699_s18 + $0x18] sm:$0xff] %vm3238_vm4, %v3209_v36 }
 0x1de   : > { %3240 = vst.msk [vmem:[%s5699_s18 + $0x8] sm:$0xff] %vm3238_vm4, %v3207_v19  ;;  %v4299_v38 = vpop.f32.mrb[4].mxu0  ;;  %v3191_v19 = vld [vmem:[%s5692_s7 + $0x88] sm:$0xff] }
 0x1df   : > { %v4337_v2 = vadd.f32 %v4299_v38, %v4099_v5  ;;  %v3031_v50 = vpop.f32.mrb[5].mxu0  ;;  %v3186_v5 = vld [vmem:[%s5692_s7 + $0x60] sm:$0xff] }
 0x1e0   : > { %v4338_v24 = vadd.f32 %v3031_v50, %v1849_v56  ;;  %v4300_v25 = vpop.f32.mrb[6].mxu0 }
 0x1e1   : > { %v3212_v29 = vsub.f32 %v3180_v4, %v4337_v2  ;;  %v4339_v46 = vadd.f32 %v4300_v25, %v4100_v18  ;;  %v3034_v7 = vpop.f32.mrb[7].mxu0  ;;  %v3196_v25 = vld [vmem:[%s5692_s7 + $0xb0] sm:$0xff] }
 0x1e2   : > { %v3210_v33 = vsub.f32 %v3178_v47, %v4338_v24  ;;  %v4340_v55 = vadd.f32 %v3034_v7, %v1852_v60  ;;  %v3189_v60 = vld [vmem:[%s5692_s7 + $0x78] sm:$0xff]  ;;  %v3194_v7 = vld [vmem:[%s5692_s7 + $0xa0] sm:$0xff] }
 0x1e3   : > { %3245 = vst.msk [vmem:[%s5699_s18 + $0x30] sm:$0xff] %vm3238_vm4, %v3212_v29  ;;  %v3213_v0 = vsub.f32 %v3181_v51, %v4339_v46 }
 0x1e4   : > { %3243 = vst.msk [vmem:[%s5699_s18 + $0x20] sm:$0xff] %vm3238_vm4, %v3210_v33  ;;  %v3211_v57 = vsub.f32 %v3179_v11, %v4340_v55 }
 0x1e5   : > { %3246 = vst.msk [vmem:[%s5699_s18 + $0x38] sm:$0xff] %vm3238_vm4, %v3213_v0  ;;  %v3197_v0 = vld [vmem:[%s5692_s7 + $0xb8] sm:$0xff] }
 0x1e6   : > { %3244 = vst.msk [vmem:[%s5699_s18 + $0x28] sm:$0xff] %vm3238_vm4, %v3211_v57  ;;  %v4303_v31 = vpop.f32.mrb[8].mxu0 }
 0x1e7   : > { %v4341_v10 = vadd.f32 %v4303_v31, %v4103_v37  ;;  %v3047_v15 = vpop.f32.mrb[9].mxu0 }
 0x1e8   : > { %v4342_v3 = vadd.f32 %v3047_v15, %v1865_v6  ;;  %v4304_v30 = vpop.f32.mrb[10].mxu0  ;;  %v3195_v15 = vld [vmem:[%s5692_s7 + $0xa8] sm:$0xff] }
 0x1e9   : > { %v3216_v39 = vsub.f32 %v3184_v9, %v4341_v10  ;;  %v4343_v12 = vadd.f32 %v4304_v30, %v4104_v28  ;;  %v3050_v61 = vpop.f32.mrb[11].mxu0 }
 0x1ea   : > { %v3214_v49 = vsub.f32 %v3182_v21, %v4342_v3  ;;  %v4344_v23 = vadd.f32 %v3050_v61, %v1868_v8  ;;  %v3187_v8 = vld [vmem:[%s5692_s7 + $0x68] sm:$0xff]  ;;  %v3200_v61 = vld [vmem:[%s5692_s7 + $0xd0] sm:$0xff] }
 0x1eb   : > { %3249 = vst.msk [vmem:[%s5699_s18 + $0x50] sm:$0xff] %vm3238_vm4, %v3216_v39  ;;  %v3217_v59 = vsub.f32 %v3185_v14, %v4343_v12 }
 0x1ec   : > { %3247 = vst.msk [vmem:[%s5699_s18 + $0x40] sm:$0xff] %vm3238_vm4, %v3214_v49  ;;  %v3215_v58 = vsub.f32 %v3183_v32, %v4344_v23 }
 0x1ed   : > { %3250 = vst.msk [vmem:[%s5699_s18 + $0x58] sm:$0xff] %vm3238_vm4, %v3217_v59  ;;  %v3198_v59 = vld [vmem:[%s5692_s7 + $0xc0] sm:$0xff] }
 0x1ee   : > { %3248 = vst.msk [vmem:[%s5699_s18 + $0x48] sm:$0xff] %vm3238_vm4, %v3215_v58  ;;  %v4307_v13 = vpop.f32.mrb[12].mxu0 }
 0x1ef   : > { %v4345_v16 = vadd.f32 %v4307_v13, %v5680_v17  ;;  %v3063_v52 = vpop.f32.mrb[13].mxu0 }
 0x1f0   : > { %v4346_v56 = vadd.f32 %v3063_v52, %v5682_v40  ;;  %v4308_v18 = vpop.f32.mrb[14].mxu0 }
 0x1f1   : > { %v3220_v37 = vsub.f32 %v3188_v54, %v4345_v16  ;;  %v4347_v6 = vadd.f32 %v4308_v18, %v5684_v27  ;;  %v3066_v28 = vpop.f32.mrb[15].mxu0  ;;  %v3201_v16 = vld [vmem:[%s5692_s7 + $0xd8] sm:$0xff] }
 0x1f2   : > { %v3218_v44 = vsub.f32 %v3186_v5, %v4346_v56  ;;  %v4348_v48 = vadd.f32 %v3066_v28, %v5687_v63 }
 0x1f3   : > { %3253 = vst.msk [vmem:[%s5699_s18 + $0x70] sm:$0xff] %vm3238_vm4, %v3220_v37  ;;  %v3221_v17 = vsub.f32 %v3189_v60, %v4347_v6  ;;  %v3199_v60 = vld [vmem:[%s5692_s7 + $0xc8] sm:$0xff] }
 0x1f4   : > { %3251 = vst.msk [vmem:[%s5699_s18 + $0x60] sm:$0xff] %vm3238_vm4, %v3218_v44  ;;  %v3219_v42 = vsub.f32 %v3187_v8, %v4348_v48 }
 0x1f5   : > { %3254 = vst.msk [vmem:[%s5699_s18 + $0x78] sm:$0xff] %vm3238_vm4, %v3221_v17  ;;  %v3204_v17 = vld [vmem:[%s5692_s7 + $0xf0] sm:$0xff] }
 0x1f6   : > { %v4151_v40 = vpop.f32.mrb[16].mxu1  ;;  %3252 = vst.msk [vmem:[%s5699_s18 + $0x68] sm:$0xff] %vm3238_vm4, %v3219_v42  ;;  %v4311_v27 = vpop.f32.mrb[16].mxu0 }
 0x1f7   : > { %v2136_v34 = vpop.f32.mrb[17].mxu1  ;;  %v4349_v62 = vadd.f32 %v4311_v27, %v4151_v40  ;;  %v3079_v63 = vpop.f32.mrb[17].mxu0 }
 0x1f8   : > { %v4152_v1 = vpop.f32.mrb[18].mxu1  ;;  %v4350_v41 = vadd.f32 %v3079_v63, %v2136_v34  ;;  %v4312_v43 = vpop.f32.mrb[18].mxu0 }
 0x1f9   : > { %v2139_v26 = vpop.f32.mrb[19].mxu1  ;;  %v3224_v45 = vsub.f32 %v3192_v22, %v4349_v62  ;;  %v4351_v20 = vadd.f32 %v4312_v43, %v4152_v1  ;;  %v3082_v36 = vpop.f32.mrb[19].mxu0  ;;  %v3202_v22 = vld [vmem:[%s5692_s7 + $0xe0] sm:$0xff] }
 0x1fa   : > { %v3222_v38 = vsub.f32 %v3190_v35, %v4350_v41  ;;  %v4352_v4 = vadd.f32 %v3082_v36, %v2139_v26  ;;  %v3205_v35 = vld [vmem:[%s5692_s7 + $0xf8] sm:$0xff]  ;;  %v3203_v26 = vld [vmem:[%s5692_s7 + $0xe8] sm:$0xff] }
 0x1fb   : > { %3257 = vst.msk [vmem:[%s5699_s18 + $0x90] sm:$0xff] %vm3238_vm4, %v3224_v45  ;;  %v3225_v2 = vsub.f32 %v3193_v53, %v4351_v20 }
 0x1fc   : > { %3255 = vst.msk [vmem:[%s5699_s18 + $0x80] sm:$0xff] %vm3238_vm4, %v3222_v38  ;;  %v3223_v50 = vsub.f32 %v3191_v19, %v4352_v4 }
 0x1fd   : > { %3258 = vst.msk [vmem:[%s5699_s18 + $0x98] sm:$0xff] %vm3238_vm4, %v3225_v2 }
 0x1fe   : > { %v4155_v47 = vpop.f32.mrb[20].mxu1  ;;  %3256 = vst.msk [vmem:[%s5699_s18 + $0x88] sm:$0xff] %vm3238_vm4, %v3223_v50  ;;  %v4315_v24 = vpop.f32.mrb[20].mxu0 }
 0x1ff   : > { %v2152_v51 = vpop.f32.mrb[21].mxu1  ;;  %v4353_v29 = vadd.f32 %v4315_v24, %v4155_v47  ;;  %v3095_v46 = vpop.f32.mrb[21].mxu0 }
 0x200   : > { %v4156_v11 = vpop.f32.mrb[22].mxu1  ;;  %v4354_v33 = vadd.f32 %v3095_v46, %v2152_v51  ;;  %v4316_v55 = vpop.f32.mrb[22].mxu0 }
 0x201   : > { %v2155_v57 = vpop.f32.mrb[23].mxu1  ;;  %v3228_v31 = vsub.f32 %v3196_v25, %v4353_v29  ;;  %v4355_v9 = vadd.f32 %v4316_v55, %v4156_v11  ;;  %v3098_v10 = vpop.f32.mrb[23].mxu0 }
 0x202   : > { %v3226_v21 = vsub.f32 %v3194_v7, %v4354_v33  ;;  %v4356_v3 = vadd.f32 %v3098_v10, %v2155_v57 }
 0x203   : > { %3261 = vst.msk [vmem:[%s5699_s18 + $0xb0] sm:$0xff] %vm3238_vm4, %v3228_v31  ;;  %v3229_v30 = vsub.f32 %v3197_v0, %v4355_v9 }
 0x204   : > { %3259 = vst.msk [vmem:[%s5699_s18 + $0xa0] sm:$0xff] %vm3238_vm4, %v3226_v21  ;;  %v3227_v14 = vsub.f32 %v3195_v15, %v4356_v3 }
 0x205   : > { %3262 = vst.msk [vmem:[%s5699_s18 + $0xb8] sm:$0xff] %vm3238_vm4, %v3229_v30 }
 0x206   : > { %v4159_v39 = vpop.f32.mrb[24].mxu1  ;;  %3260 = vst.msk [vmem:[%s5699_s18 + $0xa8] sm:$0xff] %vm3238_vm4, %v3227_v14  ;;  %v4319_v12 = vpop.f32.mrb[24].mxu0 }
 0x207   : > { %v2168_v32 = vpop.f32.mrb[25].mxu1  ;;  %v4357_v49 = vadd.f32 %v4319_v12, %v4159_v39  ;;  %v3111_v23 = vpop.f32.mrb[25].mxu0 }
 0x208   : > { %v4160_v58 = vpop.f32.mrb[26].mxu1  ;;  %v4358_v13 = vadd.f32 %v3111_v23, %v2168_v32  ;;  %v4320_v54 = vpop.f32.mrb[26].mxu0 }
 0x209   : > { %v2171_v52 = vpop.f32.mrb[27].mxu1  ;;  %v3232_v5 = vsub.f32 %v3200_v61, %v4357_v49  ;;  %v4359_v56 = vadd.f32 %v4320_v54, %v4160_v58  ;;  %v3114_v18 = vpop.f32.mrb[27].mxu0 }
 0x20a   : > { %v3230_v37 = vsub.f32 %v3198_v59, %v4358_v13  ;;  %v4360_v6 = vadd.f32 %v3114_v18, %v2171_v52 }
 0x20b   : > { %3265 = vst.msk [vmem:[%s5699_s18 + $0xd0] sm:$0xff] %vm3238_vm4, %v3232_v5  ;;  %v3233_v28 = vsub.f32 %v3201_v16, %v4359_v56 }
 0x20c   : > { %3263 = vst.msk [vmem:[%s5699_s18 + $0xc0] sm:$0xff] %vm3238_vm4, %v3230_v37  ;;  %v3231_v8 = vsub.f32 %v3199_v60, %v4360_v6 }
 0x20d   : > { %3266 = vst.msk [vmem:[%s5699_s18 + $0xd8] sm:$0xff] %vm3238_vm4, %v3233_v28 }
 0x20e   : > { %v4163_v44 = vpop.f32.mrb[28].mxu1  ;;  %3264 = vst.msk [vmem:[%s5699_s18 + $0xc8] sm:$0xff] %vm3238_vm4, %v3231_v8  ;;  %v4323_v48 = vpop.f32.mrb[28].mxu0 }
 0x20f   : > { %v2184_v42 = vpop.f32.mrb[29].mxu1  ;;  %v4361_v40 = vadd.f32 %v4323_v48, %v4163_v44  ;;  %v3127_v27 = vpop.f32.mrb[29].mxu0 }
 0x210   : > { %v4164_v34 = vpop.f32.mrb[30].mxu1  ;;  %v4362_v62 = vadd.f32 %v3127_v27, %v2184_v42  ;;  %v4324_v63 = vpop.f32.mrb[30].mxu0 }
 0x211   : > { %v2187_v1 = vpop.f32.mrb[31].mxu1  ;;  %v3236_v41 = vsub.f32 %v3204_v17, %v4361_v40  ;;  %v4363_v43 = vadd.f32 %v4324_v63, %v4164_v34  ;;  %v3130_v53 = vpop.f32.mrb[31].mxu0 }
 0x212   : > { %v3234_v45 = vsub.f32 %v3202_v22, %v4362_v62  ;;  %v4364_v20 = vadd.f32 %v3130_v53, %v2187_v1 }
 0x213   : > { %3269 = vst.msk [vmem:[%s5699_s18 + $0xf0] sm:$0xff] %vm3238_vm4, %v3236_v41  ;;  %v3237_v36 = vsub.f32 %v3205_v35, %v4363_v43 }
 0x214   : > { %3267 = vst.msk [vmem:[%s5699_s18 + $0xe0] sm:$0xff] %vm3238_vm4, %v3234_v45  ;;  %v3235_v19 = vsub.f32 %v3203_v26, %v4364_v20 }
 0x215   : > { %3270 = vst.msk [vmem:[%s5699_s18 + $0xf8] sm:$0xff] %vm3238_vm4, %v3237_v36 }
 0x216   : > { %3268 = vst.msk [vmem:[%s5699_s18 + $0xe8] sm:$0xff] %vm3238_vm4, %v3235_v19 }
 0x217 PF: > { %s15_s20 = sadd.s32 1, %s4675_s20   ;;  %s5855_s18 = smov %s4671_s19 }
 0x218   : > { %p12_p5 = scmp.ge.s32.totalorder %s15_s20, 4   ;;  %s5856_s19 = smov %s5858_s21 }
 0x21a   :  { %14 = sbr.rel (!%p12_p5) target bundleno = 2 (0x2), region = 87 }

</bundles_post_ra>
